<compile_context>
chip_gen: v5e
topology: v5e:2x2
jax: 0.10.0
libtpu: 0.0.40
codegen_flags: <defaults>
</compile_context>

<pallas_src>
import functools

import jax
import jax.numpy as jnp
from jax.experimental import pallas as pl
from jax.experimental.pallas import tpu as pltpu

EPS = 1e-5
LANE = 128


def _round_up(x, m):
    return (x + m - 1) // m * m


def _vmem_limit_bytes():
    cap = 128 * 1024 * 1024
    try:
        cap = int(getattr(pltpu.get_tpu_info(), "vmem_capacity_bytes", cap))
    except Exception:
        pass
    # Half the physical VMEM, capped at 100 MiB (v5e/v6e), floored at the
    # 32 MiB default so v7x (64 MiB physical) stays safe.
    return max(32 * 1024 * 1024, min(cap // 2, 100 * 1024 * 1024))


def _pick_row_tile(ho, wo, cp, vmem_limit):
    """Largest divisor of Ho whose per-tile f32 working set fits the budget.

    Grows M = TR*Wo (>=256 whenever possible) so the MXU is not starved; the
    budget is a fraction of scoped VMEM so resident weights / whole-sample
    blocks / double-buffered outputs still fit beside the accumulator."""
    budget = vmem_limit // 6
    per_row = wo * (2 * cp) * 4 * 4        # acc + tap/activation temporaries
    for tr in range(ho, 0, -1):
        if ho % tr == 0 and tr * per_row <= budget:
            return tr
    return 1


# ---------------------------------------------------------------------------
# Kernel 1: fused conv1 (3x3, stride 2) + downsample (1x1, stride 2) GEMM
#           (downsample folded into the centre tap along the N axis)
#           + per-tile BN partial stats for both branches.
# ---------------------------------------------------------------------------
def _stage1_kernel(tr, wo, cin, cp, chs,
                   x00, x01, x10, x11, w_ref,
                   y1_ref, yd_ref, st_ref):
    t = pl.program_id(1)
    r0 = t * tr
    if tr % 8 == 0:
        r0 = pl.multiple_of(r0, 8)
    m = tr * wo
    phases = ((x00, x01), (x10, x11))

    acc = jnp.zeros((m, 2 * cp), jnp.float32)
    for ki in range(3):
        for kj in range(3):
            ref = phases[ki % 2][kj % 2]
            tap = ref[0, pl.ds(r0 + ki // 2, tr), pl.ds(kj // 2, wo), :]
            acc = acc + jnp.dot(tap.reshape(m, cin), w_ref[ki * 3 + kj],
                                preferred_element_type=jnp.float32)

    a1 = acc[:, :cp]                      # conv1 branch   (columns [0, CP))
    ad = acc[:, cp:]                      # downsample br. (columns [CP, 2CP))
    y1_ref[0, :, :, :] = a1[:, :chs].astype(y1_ref.dtype).reshape(tr, wo, chs)
    yd_ref[0, :, :, :] = ad[:, :chs].astype(yd_ref.dtype).reshape(tr, wo, chs)
    st_ref[0, 0, :, :] = jnp.concatenate(
        [jnp.sum(a1, axis=0, keepdims=True),
         jnp.sum(a1 * a1, axis=0, keepdims=True),
         jnp.sum(ad, axis=0, keepdims=True),
         jnp.sum(ad * ad, axis=0, keepdims=True)], axis=0)


# ---------------------------------------------------------------------------
# Kernel 2: conv2 (3x3, stride 1) GEMM with bn1+relu folded into the tap
#           loads, + per-tile BN2 partial stats.
# ---------------------------------------------------------------------------
def _stage2_kernel(tr, wo, chs, cp,
                   y1p_ref, s1_ref, w2_ref,
                   y2_ref, st_ref):
    t = pl.program_id(1)
    r0 = t * tr
    if tr % 8 == 0:
        r0 = pl.multiple_of(r0, 8)
    m = tr * wo
    scale = s1_ref[0:1, :]
    shift = s1_ref[1:2, :]

    acc = jnp.zeros((m, cp), jnp.float32)
    for ki in range(3):
        for kj in range(3):
            tap = y1p_ref[0, pl.ds(r0 + ki, tr), pl.ds(kj, wo), :].reshape(m, chs)
            a = jnp.maximum(tap.astype(jnp.float32) * scale + shift, 0.0)
            acc = acc + jnp.dot(a.astype(jnp.bfloat16), w2_ref[ki * 3 + kj],
                                preferred_element_type=jnp.float32)

    y2_ref[0, :, :, :] = acc[:, :chs].astype(y2_ref.dtype).reshape(tr, wo, chs)
    st_ref[0, 0, :, :] = jnp.concatenate(
        [jnp.sum(acc, axis=0, keepdims=True),
         jnp.sum(acc * acc, axis=0, keepdims=True)], axis=0)


# ---------------------------------------------------------------------------
# Kernel 3: normalize both branches + residual add + ReLU (per-sample blocks).
# ---------------------------------------------------------------------------
def _finalize_kernel(ho, wo, chs,
                     y2_ref, yd_ref, s2_ref, sd_ref, o_ref):
    m = ho * wo
    y2 = y2_ref[0, :, :, :].reshape(m, chs).astype(jnp.float32)
    yd = yd_ref[0, :, :, :].reshape(m, chs).astype(jnp.float32)
    out = y2 * s2_ref[0:1, :] + s2_ref[1:2, :]
    idy = yd * sd_ref[0:1, :] + sd_ref[1:2, :]
    o_ref[0, :, :, :] = jnp.maximum(out + idy, 0.0).reshape(ho, wo, chs)


# ---------------------------------------------------------------------------
# JAX glue
# ---------------------------------------------------------------------------
def _bn_scale_shift(s, ss, count, gamma, beta):
    mean = s / count
    var = jnp.maximum(ss / count - mean * mean, 0.0)
    scale = gamma * jax.lax.rsqrt(var + EPS)
    return jnp.stack([scale, beta - mean * scale], axis=0).astype(jnp.float32)


def block_forward(x_nchw, params, stride=2):
    if stride != 2:
        # TODO(synk): stride=1 / no-downsample variant (no phase split needed).
        raise NotImplementedError("only the stride=2 + downsample Block is implemented")

    w1, g1, b1 = params["w1"], params["g1"], params["b1"]
    w2, g2, b2 = params["w2"], params["g2"], params["b2"]
    wd, gd, bd = params["wd"], params["gd"], params["bd"]

    N, Cin, H, W = x_nchw.shape
    hidden = w1.shape[0]
    CP = _round_up(hidden, LANE)          # MXU-operand lane padding only
    CHS = hidden                          # HBM intermediates carry real channels
    assert H % 2 == 0 and W % 2 == 0, "even spatial dims required for stride-2 phases"
    Ho, Wo = H // 2, W // 2
    vmem_limit = _vmem_limit_bytes()
    TR = _pick_row_tile(Ho, Wo, CP, vmem_limit)
    ntiles = Ho // TR
    Mrows = N * Ho * Wo
    f32, bf16 = jnp.float32, jnp.bfloat16

    # ---- layout plumbing (bf16 so XLA copies move half the bytes) ----------
    # TODO(synk): fold the phase split into kernel index_maps to avoid the
    # extra HBM copies of x when Cin is large.
    x = jnp.transpose(x_nchw, (0, 2, 3, 1)).astype(bf16)           # NHWC
    xp = jnp.pad(x, ((0, 0), (1, 1), (1, 1), (0, 0)), mode="reflect")
    # stride-2 phase views: ph[pi][pj][n,i,j,c] == xp[n, 2i+pi, 2j+pj, c]
    ph = [[xp[:, pi::2, pj::2, :] for pj in (0, 1)] for pi in (0, 1)]
    Hh, Wh = ph[0][0].shape[1], ph[0][0].shape[2]

    # conv1 weight (9, Cin, 2*CP) with the 1x1 stride-2 downsample weight
    # folded into the centre tap's [CP:CP+hidden] columns (the downsample
    # input x[:, ::2, ::2] is byte-identical to that tap).
    w1g = jnp.transpose(w1, (2, 3, 1, 0)).reshape(9, Cin, hidden)
    wdg = jnp.transpose(wd, (2, 3, 1, 0)).reshape(Cin, hidden)
    w1d = jnp.zeros((9, Cin, 2 * CP), f32)
    w1d = w1d.at[:, :, :hidden].set(w1g)
    w1d = w1d.at[4, :, CP:CP + hidden].set(wdg)
    w1d = w1d.astype(bf16)                                         # (9, Cin, 2CP)

    w2g = jnp.transpose(w2, (2, 3, 1, 0)).reshape(9, hidden, hidden)
    w2g = jnp.pad(w2g, ((0, 0), (0, 0), (0, CP - hidden))).astype(bf16)  # (9, CHS, CP)

    grid = (N, ntiles)
    cparams = pltpu.CompilerParams(
        dimension_semantics=("parallel", "parallel"),
        vmem_limit_bytes=vmem_limit)

    resident = lambda shape: pl.BlockSpec(shape, lambda n, t: (0,) * len(shape))
    per_sample = lambda shape: pl.BlockSpec(
        shape, lambda n, t: (n,) + (0,) * (len(shape) - 1))
    per_tile = lambda shape: pl.BlockSpec(
        shape, lambda n, t: (n, t) + (0,) * (len(shape) - 2))

    # ---- stage 1: fused conv1 + downsample GEMM + BN partials ---------------
    y1, yd, st1 = pl.pallas_call(
        functools.partial(_stage1_kernel, TR, Wo, Cin, CP, CHS),
        grid=grid,
        in_specs=[per_sample((1, Hh, Wh, Cin))] * 4 + [resident((9, Cin, 2 * CP))],
        out_specs=[per_tile((1, TR, Wo, CHS)),
                   per_tile((1, TR, Wo, CHS)),
                   per_tile((1, 1, 4, CP))],
        out_shape=[jax.ShapeDtypeStruct((N, Ho, Wo, CHS), bf16),
                   jax.ShapeDtypeStruct((N, Ho, Wo, CHS), bf16),
                   jax.ShapeDtypeStruct((N, ntiles, 4, CP), f32)],
        compiler_params=cparams,
    )(ph[0][0], ph[0][1], ph[1][0], ph[1][1], w1d)

    tot1 = jnp.sum(st1, axis=(0, 1))                               # (4, CP)
    s1 = _bn_scale_shift(tot1[0, :hidden], tot1[1, :hidden], Mrows, g1, b1)
    sd = _bn_scale_shift(tot1[2, :hidden], tot1[3, :hidden], Mrows, gd, bd)

    # Reflect-pad the RAW conv1 output (bf16, `hidden` channels only — 8x
    # cheaper than an f32/128-padded pad); bn1+relu commute with the pad and
    # are applied on the taps inside stage 2 (no HBM round trip of the
    # activated tensor).
    # TODO(synk): emit the halo from stage 1 / handle it in stage 2 to remove
    # this remaining extra HBM pass entirely.
    y1p = jnp.pad(y1, ((0, 0), (1, 1), (1, 1), (0, 0)), mode="reflect")

    # ---- stage 2: conv2 GEMM (bn1+relu fused on taps) + BN2 partials --------
    y2, st2 = pl.pallas_call(
        functools.partial(_stage2_kernel, TR, Wo, CHS, CP),
        grid=grid,
        in_specs=[per_sample((1, Ho + 2, Wo + 2, CHS)),
                  resident((2, CHS)),
                  resident((9, CHS, CP))],
        out_specs=[per_tile((1, TR, Wo, CHS)),
                   per_tile((1, 1, 2, CP))],
        out_shape=[jax.ShapeDtypeStruct((N, Ho, Wo, CHS), bf16),
                   jax.ShapeDtypeStruct((N, ntiles, 2, CP), f32)],
        compiler_params=cparams,
    )(y1p, s1, w2g)

    tot2 = jnp.sum(st2, axis=(0, 1))
    s2 = _bn_scale_shift(tot2[0, :hidden], tot2[1, :hidden], Mrows, g2, b2)

    # ---- stage 3: normalize + residual add + ReLU (per-sample blocks) -------
    out = pl.pallas_call(
        functools.partial(_finalize_kernel, Ho, Wo, CHS),
        grid=(N,),
        in_specs=[pl.BlockSpec((1, Ho, Wo, CHS), lambda n: (n, 0, 0, 0)),
                  pl.BlockSpec((1, Ho, Wo, CHS), lambda n: (n, 0, 0, 0)),
                  pl.BlockSpec((2, CHS), lambda n: (0, 0)),
                  pl.BlockSpec((2, CHS), lambda n: (0, 0))],
        out_specs=pl.BlockSpec((1, Ho, Wo, CHS), lambda n: (n, 0, 0, 0)),
        out_shape=jax.ShapeDtypeStruct((N, Ho, Wo, CHS), f32),
        compiler_params=pltpu.CompilerParams(
            dimension_semantics=("parallel",),
            vmem_limit_bytes=vmem_limit),
    )(y2, yd, s2, sd)

    return jnp.transpose(out, (0, 3, 1, 2))                        # NCHW


# ---------------------------------------------------------------------------
# Pure-JAX reference (f32, matches the PyTorch module's forward)
# ---------------------------------------------------------------------------
def _ref_forward(x, params, stride=2):
    def conv(x, w, s):
        return jax.lax.conv_general_dilated(
            x, w, (s, s), "VALID",
            dimension_numbers=("NCHW", "OIHW", "NCHW"),
            precision=jax.lax.Precision.HIGHEST)

    def bn(y, g, b):
        m = jnp.mean(y, axis=(0, 2, 3), keepdims=True)
        v = jnp.mean(jnp.square(y - m), axis=(0, 2, 3), keepdims=True)
        return ((y - m) * jax.lax.rsqrt(v + EPS)
                * g.reshape(1, -1, 1, 1) + b.reshape(1, -1, 1, 1))

    pad = lambda t: jnp.pad(t, ((0, 0), (0, 0), (1, 1), (1, 1)), mode="reflect")
    out = jnp.maximum(bn(conv(pad(x), params["w1"], stride),
                         params["g1"], params["b1"]), 0.0)
    out = bn(conv(pad(out), params["w2"], 1), params["g2"], params["b2"])
    idy = bn(conv(x, params["wd"], stride), params["gd"], params["bd"])
    return jnp.maximum(out + idy, 0.0)


# ---------------------------------------------------------------------------
if __name__ == "__main__":
    N, C_in, H, W = 2, 4, 16, 16
    hidden, stride = 32, 2

    key = jax.random.PRNGKey(0)
    kx, k1, k2, k3, k4, k5 = jax.random.split(key, 6)
    x = jax.random.normal(kx, (N, C_in, H, W), jnp.float32)

    params = {
        # conv weights (PyTorch OIHW layout), no bias
        "w1": 0.1 * jax.random.normal(k1, (hidden, C_in, 3, 3), jnp.float32),
        "w2": 0.1 * jax.random.normal(k2, (hidden, hidden, 3, 3), jnp.float32),
        "wd": 0.1 * jax.random.normal(k3, (hidden, C_in, 1, 1), jnp.float32),
        # BatchNorm affine params (perturbed so the affine path is exercised)
        "g1": 1.0 + 0.1 * jax.random.normal(k4, (hidden,), jnp.float32),
        "b1": 0.05 * jnp.arange(hidden, dtype=jnp.float32),
        "g2": 1.0 + 0.1 * jax.random.normal(k5, (hidden,), jnp.float32),
        "b2": -0.05 * jnp.arange(hidden, dtype=jnp.float32),
        "gd": jnp.ones((hidden,), jnp.float32),
        "bd": jnp.zeros((hidden,), jnp.float32),
    }

    fwd = jax.jit(functools.partial(block_forward, stride=stride))
    ref_fn = jax.jit(functools.partial(_ref_forward, stride=stride))

    out = jax.block_until_ready(fwd(x, params))
    ref = jax.block_until_ready(ref_fn(x, params))

    assert out.shape == (N, hidden, H // stride, W // stride), out.shape
    max_err = float(jnp.max(jnp.abs(out - ref)))
    # bf16 MXU matmuls + bf16-stored intermediates vs the f32 HIGHEST
    # reference -> loosened tolerance (all reductions stay f32).
    assert jnp.allclose(out, ref, atol=7.5e-2, rtol=5e-2), max_err

    print("KERNEL_OK")
</pallas_src>

<mosaic_0001>
module attributes {stable_mosaic.version = 11 : i64} {
  func.func @_stage1_kernel(%arg0: i32, %arg1: i32, %arg2: memref<1x9x9x4xbf16, #tpu.memory_space<vmem>>, %arg3: memref<1x9x9x4xbf16, #tpu.memory_space<vmem>>, %arg4: memref<1x9x9x4xbf16, #tpu.memory_space<vmem>>, %arg5: memref<1x9x9x4xbf16, #tpu.memory_space<vmem>>, %arg6: memref<9x4x256xbf16, #tpu.memory_space<vmem>>, %arg7: memref<1x8x8x32xbf16, #tpu.memory_space<vmem>>, %arg8: memref<1x8x8x32xbf16, #tpu.memory_space<vmem>>, %arg9: memref<1x1x4x128xf32, #tpu.memory_space<vmem>>) attributes {dimension_semantics = [#tpu.dimension_semantics<parallel>, #tpu.dimension_semantics<parallel>], iteration_bounds = array<i64: 2, 1>, scalar_prefetch = 0 : i64, scratch_operands = 0 : i64, tpu.core_type = #tpu.core_type<tc>, window_params = [{transform_indices = @transform_0, window_bounds = array<i64: 1, 9, 9, 4>}, {transform_indices = @transform_1, window_bounds = array<i64: 1, 9, 9, 4>}, {transform_indices = @transform_2, window_bounds = array<i64: 1, 9, 9, 4>}, {transform_indices = @transform_3, window_bounds = array<i64: 1, 9, 9, 4>}, {pipeline_mode = #tpu.pipeline_mode<synchronous>, transform_indices = @transform_4, window_bounds = array<i64: 9, 4, 256>}, {transform_indices = @transform_5, window_bounds = array<i64: 1, 8, 8, 32>}, {transform_indices = @transform_6, window_bounds = array<i64: 1, 8, 8, 32>}, {transform_indices = @transform_7, window_bounds = array<i64: 1, 1, 4, 128>}]} {
    %c8_i32 = arith.constant 8 : i32
    %0 = arith.muli %arg1, %c8_i32 : i32
    %1 = tpu.assume_multiple %0, 8 : i32
    %cst = arith.constant 0.000000e+00 : f32
    %2 = vector.broadcast %cst : f32 to vector<64x256xf32>
    %c0_i32 = arith.constant 0 : i32
    %3 = arith.addi %1, %c0_i32 : i32
    %c0 = arith.constant 0 : index
    %4 = arith.index_cast %3 : i32 to index
    %c0_0 = arith.constant 0 : index
    %c0_1 = arith.constant 0 : index
    %5 = vector.load %arg2[%c0, %4, %c0_0, %c0_1] : memref<1x9x9x4xbf16, #tpu.memory_space<vmem>>, vector<1x8x8x4xbf16>
    %6 = vector.shape_cast %5 : vector<1x8x8x4xbf16> to vector<8x8x4xbf16>
    %7 = vector.shape_cast %6 : vector<8x8x4xbf16> to vector<64x4xbf16>
    %c0_2 = arith.constant 0 : index
    %c0_3 = arith.constant 0 : index
    %c0_4 = arith.constant 0 : index
    %8 = vector.load %arg6[%c0_2, %c0_3, %c0_4] : memref<9x4x256xbf16, #tpu.memory_space<vmem>>, vector<1x4x256xbf16>
    %9 = vector.shape_cast %8 : vector<1x4x256xbf16> to vector<4x256xbf16>
    %cst_5 = arith.constant dense<0.000000e+00> : vector<64x256xf32>
    %10 = tpu.matmul %7, %9, %cst_5 {dimension_numbers = #tpu.dot_dimension_numbers<[1], [0], [0], [1], [0, 0, 1, 1], [], []>} : vector<64x4xbf16>, vector<4x256xbf16>, vector<64x256xf32> -> vector<64x256xf32>
    %11 = arith.addf %2, %10 : vector<64x256xf32>
    %c0_i32_6 = arith.constant 0 : i32
    %12 = arith.addi %1, %c0_i32_6 : i32
    %c0_7 = arith.constant 0 : index
    %13 = arith.index_cast %12 : i32 to index
    %c0_8 = arith.constant 0 : index
    %c0_9 = arith.constant 0 : index
    %14 = vector.load %arg3[%c0_7, %13, %c0_8, %c0_9] : memref<1x9x9x4xbf16, #tpu.memory_space<vmem>>, vector<1x8x8x4xbf16>
    %15 = vector.shape_cast %14 : vector<1x8x8x4xbf16> to vector<8x8x4xbf16>
    %16 = vector.shape_cast %15 : vector<8x8x4xbf16> to vector<64x4xbf16>
    %c1 = arith.constant 1 : index
    %c0_10 = arith.constant 0 : index
    %c0_11 = arith.constant 0 : index
    %17 = vector.load %arg6[%c1, %c0_10, %c0_11] : memref<9x4x256xbf16, #tpu.memory_space<vmem>>, vector<1x4x256xbf16>
    %18 = vector.shape_cast %17 : vector<1x4x256xbf16> to vector<4x256xbf16>
    %cst_12 = arith.constant dense<0.000000e+00> : vector<64x256xf32>
    %19 = tpu.matmul %16, %18, %cst_12 {dimension_numbers = #tpu.dot_dimension_numbers<[1], [0], [0], [1], [0, 0, 1, 1], [], []>} : vector<64x4xbf16>, vector<4x256xbf16>, vector<64x256xf32> -> vector<64x256xf32>
    %20 = arith.addf %11, %19 : vector<64x256xf32>
    %c0_i32_13 = arith.constant 0 : i32
    %21 = arith.addi %1, %c0_i32_13 : i32
    %c0_14 = arith.constant 0 : index
    %22 = arith.index_cast %21 : i32 to index
    %c1_15 = arith.constant 1 : index
    %c0_16 = arith.constant 0 : index
    %23 = vector.load %arg2[%c0_14, %22, %c1_15, %c0_16] : memref<1x9x9x4xbf16, #tpu.memory_space<vmem>>, vector<1x8x8x4xbf16>
    %24 = vector.shape_cast %23 : vector<1x8x8x4xbf16> to vector<8x8x4xbf16>
    %25 = vector.shape_cast %24 : vector<8x8x4xbf16> to vector<64x4xbf16>
    %c2 = arith.constant 2 : index
    %c0_17 = arith.constant 0 : index
    %c0_18 = arith.constant 0 : index
    %26 = vector.load %arg6[%c2, %c0_17, %c0_18] : memref<9x4x256xbf16, #tpu.memory_space<vmem>>, vector<1x4x256xbf16>
    %27 = vector.shape_cast %26 : vector<1x4x256xbf16> to vector<4x256xbf16>
    %cst_19 = arith.constant dense<0.000000e+00> : vector<64x256xf32>
    %28 = tpu.matmul %25, %27, %cst_19 {dimension_numbers = #tpu.dot_dimension_numbers<[1], [0], [0], [1], [0, 0, 1, 1], [], []>} : vector<64x4xbf16>, vector<4x256xbf16>, vector<64x256xf32> -> vector<64x256xf32>
    %29 = arith.addf %20, %28 : vector<64x256xf32>
    %c0_i32_20 = arith.constant 0 : i32
    %30 = arith.addi %1, %c0_i32_20 : i32
    %c0_21 = arith.constant 0 : index
    %31 = arith.index_cast %30 : i32 to index
    %c0_22 = arith.constant 0 : index
    %c0_23 = arith.constant 0 : index
    %32 = vector.load %arg4[%c0_21, %31, %c0_22, %c0_23] : memref<1x9x9x4xbf16, #tpu.memory_space<vmem>>, vector<1x8x8x4xbf16>
    %33 = vector.shape_cast %32 : vector<1x8x8x4xbf16> to vector<8x8x4xbf16>
    %34 = vector.shape_cast %33 : vector<8x8x4xbf16> to vector<64x4xbf16>
    %c3 = arith.constant 3 : index
    %c0_24 = arith.constant 0 : index
    %c0_25 = arith.constant 0 : index
    %35 = vector.load %arg6[%c3, %c0_24, %c0_25] : memref<9x4x256xbf16, #tpu.memory_space<vmem>>, vector<1x4x256xbf16>
    %36 = vector.shape_cast %35 : vector<1x4x256xbf16> to vector<4x256xbf16>
    %cst_26 = arith.constant dense<0.000000e+00> : vector<64x256xf32>
    %37 = tpu.matmul %34, %36, %cst_26 {dimension_numbers = #tpu.dot_dimension_numbers<[1], [0], [0], [1], [0, 0, 1, 1], [], []>} : vector<64x4xbf16>, vector<4x256xbf16>, vector<64x256xf32> -> vector<64x256xf32>
    %38 = arith.addf %29, %37 : vector<64x256xf32>
    %c0_i32_27 = arith.constant 0 : i32
    %39 = arith.addi %1, %c0_i32_27 : i32
    %c0_28 = arith.constant 0 : index
    %40 = arith.index_cast %39 : i32 to index
    %c0_29 = arith.constant 0 : index
    %c0_30 = arith.constant 0 : index
    %41 = vector.load %arg5[%c0_28, %40, %c0_29, %c0_30] : memref<1x9x9x4xbf16, #tpu.memory_space<vmem>>, vector<1x8x8x4xbf16>
    %42 = vector.shape_cast %41 : vector<1x8x8x4xbf16> to vector<8x8x4xbf16>
    %43 = vector.shape_cast %42 : vector<8x8x4xbf16> to vector<64x4xbf16>
    %c4 = arith.constant 4 : index
    %c0_31 = arith.constant 0 : index
    %c0_32 = arith.constant 0 : index
    %44 = vector.load %arg6[%c4, %c0_31, %c0_32] : memref<9x4x256xbf16, #tpu.memory_space<vmem>>, vector<1x4x256xbf16>
    %45 = vector.shape_cast %44 : vector<1x4x256xbf16> to vector<4x256xbf16>
    %cst_33 = arith.constant dense<0.000000e+00> : vector<64x256xf32>
    %46 = tpu.matmul %43, %45, %cst_33 {dimension_numbers = #tpu.dot_dimension_numbers<[1], [0], [0], [1], [0, 0, 1, 1], [], []>} : vector<64x4xbf16>, vector<4x256xbf16>, vector<64x256xf32> -> vector<64x256xf32>
    %47 = arith.addf %38, %46 : vector<64x256xf32>
    %c0_i32_34 = arith.constant 0 : i32
    %48 = arith.addi %1, %c0_i32_34 : i32
    %c0_35 = arith.constant 0 : index
    %49 = arith.index_cast %48 : i32 to index
    %c1_36 = arith.constant 1 : index
    %c0_37 = arith.constant 0 : index
    %50 = vector.load %arg4[%c0_35, %49, %c1_36, %c0_37] : memref<1x9x9x4xbf16, #tpu.memory_space<vmem>>, vector<1x8x8x4xbf16>
    %51 = vector.shape_cast %50 : vector<1x8x8x4xbf16> to vector<8x8x4xbf16>
    %52 = vector.shape_cast %51 : vector<8x8x4xbf16> to vector<64x4xbf16>
    %c5 = arith.constant 5 : index
    %c0_38 = arith.constant 0 : index
    %c0_39 = arith.constant 0 : index
    %53 = vector.load %arg6[%c5, %c0_38, %c0_39] : memref<9x4x256xbf16, #tpu.memory_space<vmem>>, vector<1x4x256xbf16>
    %54 = vector.shape_cast %53 : vector<1x4x256xbf16> to vector<4x256xbf16>
    %cst_40 = arith.constant dense<0.000000e+00> : vector<64x256xf32>
    %55 = tpu.matmul %52, %54, %cst_40 {dimension_numbers = #tpu.dot_dimension_numbers<[1], [0], [0], [1], [0, 0, 1, 1], [], []>} : vector<64x4xbf16>, vector<4x256xbf16>, vector<64x256xf32> -> vector<64x256xf32>
    %56 = arith.addf %47, %55 : vector<64x256xf32>
    %c1_i32 = arith.constant 1 : i32
    %57 = arith.addi %1, %c1_i32 : i32
    %c0_41 = arith.constant 0 : index
    %58 = arith.index_cast %57 : i32 to index
    %c0_42 = arith.constant 0 : index
    %c0_43 = arith.constant 0 : index
    %59 = vector.load %arg2[%c0_41, %58, %c0_42, %c0_43] : memref<1x9x9x4xbf16, #tpu.memory_space<vmem>>, vector<1x8x8x4xbf16>
    %60 = vector.shape_cast %59 : vector<1x8x8x4xbf16> to vector<8x8x4xbf16>
    %61 = vector.shape_cast %60 : vector<8x8x4xbf16> to vector<64x4xbf16>
    %c6 = arith.constant 6 : index
    %c0_44 = arith.constant 0 : index
    %c0_45 = arith.constant 0 : index
    %62 = vector.load %arg6[%c6, %c0_44, %c0_45] : memref<9x4x256xbf16, #tpu.memory_space<vmem>>, vector<1x4x256xbf16>
    %63 = vector.shape_cast %62 : vector<1x4x256xbf16> to vector<4x256xbf16>
    %cst_46 = arith.constant dense<0.000000e+00> : vector<64x256xf32>
    %64 = tpu.matmul %61, %63, %cst_46 {dimension_numbers = #tpu.dot_dimension_numbers<[1], [0], [0], [1], [0, 0, 1, 1], [], []>} : vector<64x4xbf16>, vector<4x256xbf16>, vector<64x256xf32> -> vector<64x256xf32>
    %65 = arith.addf %56, %64 : vector<64x256xf32>
    %c1_i32_47 = arith.constant 1 : i32
    %66 = arith.addi %1, %c1_i32_47 : i32
    %c0_48 = arith.constant 0 : index
    %67 = arith.index_cast %66 : i32 to index
    %c0_49 = arith.constant 0 : index
    %c0_50 = arith.constant 0 : index
    %68 = vector.load %arg3[%c0_48, %67, %c0_49, %c0_50] : memref<1x9x9x4xbf16, #tpu.memory_space<vmem>>, vector<1x8x8x4xbf16>
    %69 = vector.shape_cast %68 : vector<1x8x8x4xbf16> to vector<8x8x4xbf16>
    %70 = vector.shape_cast %69 : vector<8x8x4xbf16> to vector<64x4xbf16>
    %c7 = arith.constant 7 : index
    %c0_51 = arith.constant 0 : index
    %c0_52 = arith.constant 0 : index
    %71 = vector.load %arg6[%c7, %c0_51, %c0_52] : memref<9x4x256xbf16, #tpu.memory_space<vmem>>, vector<1x4x256xbf16>
    %72 = vector.shape_cast %71 : vector<1x4x256xbf16> to vector<4x256xbf16>
    %cst_53 = arith.constant dense<0.000000e+00> : vector<64x256xf32>
    %73 = tpu.matmul %70, %72, %cst_53 {dimension_numbers = #tpu.dot_dimension_numbers<[1], [0], [0], [1], [0, 0, 1, 1], [], []>} : vector<64x4xbf16>, vector<4x256xbf16>, vector<64x256xf32> -> vector<64x256xf32>
    %74 = arith.addf %65, %73 : vector<64x256xf32>
    %c1_i32_54 = arith.constant 1 : i32
    %75 = arith.addi %1, %c1_i32_54 : i32
    %c0_55 = arith.constant 0 : index
    %76 = arith.index_cast %75 : i32 to index
    %c1_56 = arith.constant 1 : index
    %c0_57 = arith.constant 0 : index
    %77 = vector.load %arg2[%c0_55, %76, %c1_56, %c0_57] : memref<1x9x9x4xbf16, #tpu.memory_space<vmem>>, vector<1x8x8x4xbf16>
    %78 = vector.shape_cast %77 : vector<1x8x8x4xbf16> to vector<8x8x4xbf16>
    %79 = vector.shape_cast %78 : vector<8x8x4xbf16> to vector<64x4xbf16>
    %c8 = arith.constant 8 : index
    %c0_58 = arith.constant 0 : index
    %c0_59 = arith.constant 0 : index
    %80 = vector.load %arg6[%c8, %c0_58, %c0_59] : memref<9x4x256xbf16, #tpu.memory_space<vmem>>, vector<1x4x256xbf16>
    %81 = vector.shape_cast %80 : vector<1x4x256xbf16> to vector<4x256xbf16>
    %cst_60 = arith.constant dense<0.000000e+00> : vector<64x256xf32>
    %82 = tpu.matmul %79, %81, %cst_60 {dimension_numbers = #tpu.dot_dimension_numbers<[1], [0], [0], [1], [0, 0, 1, 1], [], []>} : vector<64x4xbf16>, vector<4x256xbf16>, vector<64x256xf32> -> vector<64x256xf32>
    %83 = arith.addf %74, %82 : vector<64x256xf32>
    %84 = vector.extract_strided_slice %83 {offsets = [0, 0], sizes = [64, 128], strides = [1, 1]} : vector<64x256xf32> to vector<64x128xf32>
    %85 = vector.extract_strided_slice %83 {offsets = [0, 128], sizes = [64, 128], strides = [1, 1]} : vector<64x256xf32> to vector<64x128xf32>
    %86 = vector.extract_strided_slice %84 {offsets = [0, 0], sizes = [64, 32], strides = [1, 1]} : vector<64x128xf32> to vector<64x32xf32>
    %87 = arith.truncf %86 : vector<64x32xf32> to vector<64x32xbf16>
    %88 = vector.shape_cast %87 : vector<64x32xbf16> to vector<8x8x32xbf16>
    %c0_61 = arith.constant 0 : index
    %c0_62 = arith.constant 0 : index
    %c0_63 = arith.constant 0 : index
    %c0_64 = arith.constant 0 : index
    %89 = vector.load %arg7[%c0_61, %c0_62, %c0_63, %c0_64] : memref<1x8x8x32xbf16, #tpu.memory_space<vmem>>, vector<1x8x8x32xbf16>
    %90 = vector.shape_cast %89 : vector<1x8x8x32xbf16> to vector<8x8x32xbf16>
    %91 = vector.shape_cast %88 : vector<8x8x32xbf16> to vector<1x8x8x32xbf16>
    tpu.vector_store %arg7[%c0_61, %c0_62, %c0_63, %c0_64], %91 {strides = array<i32>} : memref<1x8x8x32xbf16, #tpu.memory_space<vmem>>, vector<1x8x8x32xbf16>,
    %92 = vector.extract_strided_slice %85 {offsets = [0, 0], sizes = [64, 32], strides = [1, 1]} : vector<64x128xf32> to vector<64x32xf32>
    %93 = arith.truncf %92 : vector<64x32xf32> to vector<64x32xbf16>
    %94 = vector.shape_cast %93 : vector<64x32xbf16> to vector<8x8x32xbf16>
    %c0_65 = arith.constant 0 : index
    %c0_66 = arith.constant 0 : index
    %c0_67 = arith.constant 0 : index
    %c0_68 = arith.constant 0 : index
    %95 = vector.load %arg8[%c0_65, %c0_66, %c0_67, %c0_68] : memref<1x8x8x32xbf16, #tpu.memory_space<vmem>>, vector<1x8x8x32xbf16>
    %96 = vector.shape_cast %95 : vector<1x8x8x32xbf16> to vector<8x8x32xbf16>
    %97 = vector.shape_cast %94 : vector<8x8x32xbf16> to vector<1x8x8x32xbf16>
    tpu.vector_store %arg8[%c0_65, %c0_66, %c0_67, %c0_68], %97 {strides = array<i32>} : memref<1x8x8x32xbf16, #tpu.memory_space<vmem>>, vector<1x8x8x32xbf16>,
    %cst_69 = arith.constant dense<0.000000e+00> : vector<128xf32>
    %98 = vector.multi_reduction <add>, %84, %cst_69 [0] : vector<64x128xf32> to vector<128xf32>
    %99 = vector.shape_cast %98 : vector<128xf32> to vector<1x128xf32>
    %100 = arith.mulf %84, %84 : vector<64x128xf32>
    %cst_70 = arith.constant dense<0.000000e+00> : vector<128xf32>
    %101 = vector.multi_reduction <add>, %100, %cst_70 [0] : vector<64x128xf32> to vector<128xf32>
    %102 = vector.shape_cast %101 : vector<128xf32> to vector<1x128xf32>
    %cst_71 = arith.constant dense<0.000000e+00> : vector<128xf32>
    %103 = vector.multi_reduction <add>, %85, %cst_71 [0] : vector<64x128xf32> to vector<128xf32>
    %104 = vector.shape_cast %103 : vector<128xf32> to vector<1x128xf32>
    %105 = arith.mulf %85, %85 : vector<64x128xf32>
    %cst_72 = arith.constant dense<0.000000e+00> : vector<128xf32>
    %106 = vector.multi_reduction <add>, %105, %cst_72 [0] : vector<64x128xf32> to vector<128xf32>
    %107 = vector.shape_cast %106 : vector<128xf32> to vector<1x128xf32>
    %108 = tpu.concatenate %99, %102, %104, %107 in 0 : vector<1x128xf32>, vector<1x128xf32>, vector<1x128xf32>, vector<1x128xf32> -> vector<4x128xf32>
    %c0_73 = arith.constant 0 : index
    %c0_74 = arith.constant 0 : index
    %c0_75 = arith.constant 0 : index
    %c0_76 = arith.constant 0 : index
    %109 = vector.load %arg9[%c0_73, %c0_74, %c0_75, %c0_76] : memref<1x1x4x128xf32, #tpu.memory_space<vmem>>, vector<1x1x4x128xf32>
    %110 = vector.shape_cast %109 : vector<1x1x4x128xf32> to vector<4x128xf32>
    %111 = vector.shape_cast %108 : vector<4x128xf32> to vector<1x1x4x128xf32>
    tpu.vector_store %arg9[%c0_73, %c0_74, %c0_75, %c0_76], %111 {strides = array<i32>} : memref<1x1x4x128xf32, #tpu.memory_space<vmem>>, vector<1x1x4x128xf32>,
    return
  }
  func.func @transform_0(%arg0: i32, %arg1: i32) -> (i32, i32, i32, i32) {
    %c0_i32 = arith.constant 0 : i32
    %c0_i32_0 = arith.constant 0 : i32
    %c0_i32_1 = arith.constant 0 : i32
    %c0_i32_2 = arith.constant 0 : i32
    return %arg0, %c0_i32, %c0_i32_0, %c0_i32_1 : i32, i32, i32, i32
  }
  func.func @transform_1(%arg0: i32, %arg1: i32) -> (i32, i32, i32, i32) {
    %c0_i32 = arith.constant 0 : i32
    %c0_i32_0 = arith.constant 0 : i32
    %c0_i32_1 = arith.constant 0 : i32
    %c0_i32_2 = arith.constant 0 : i32
    return %arg0, %c0_i32, %c0_i32_0, %c0_i32_1 : i32, i32, i32, i32
  }
  func.func @transform_2(%arg0: i32, %arg1: i32) -> (i32, i32, i32, i32) {
    %c0_i32 = arith.constant 0 : i32
    %c0_i32_0 = arith.constant 0 : i32
    %c0_i32_1 = arith.constant 0 : i32
    %c0_i32_2 = arith.constant 0 : i32
    return %arg0, %c0_i32, %c0_i32_0, %c0_i32_1 : i32, i32, i32, i32
  }
  func.func @transform_3(%arg0: i32, %arg1: i32) -> (i32, i32, i32, i32) {
    %c0_i32 = arith.constant 0 : i32
    %c0_i32_0 = arith.constant 0 : i32
    %c0_i32_1 = arith.constant 0 : i32
    %c0_i32_2 = arith.constant 0 : i32
    return %arg0, %c0_i32, %c0_i32_0, %c0_i32_1 : i32, i32, i32, i32
  }
  func.func @transform_4(%arg0: i32, %arg1: i32) -> (i32, i32, i32) {
    %c0_i32 = arith.constant 0 : i32
    %c0_i32_0 = arith.constant 0 : i32
    %c0_i32_1 = arith.constant 0 : i32
    %c0_i32_2 = arith.constant 0 : i32
    return %c0_i32, %c0_i32_0, %c0_i32_1 : i32, i32, i32
  }
  func.func @transform_5(%arg0: i32, %arg1: i32) -> (i32, i32, i32, i32) {
    %c0_i32 = arith.constant 0 : i32
    %c0_i32_0 = arith.constant 0 : i32
    %c0_i32_1 = arith.constant 0 : i32
    return %arg0, %arg1, %c0_i32, %c0_i32_0 : i32, i32, i32, i32
  }
  func.func @transform_6(%arg0: i32, %arg1: i32) -> (i32, i32, i32, i32) {
    %c0_i32 = arith.constant 0 : i32
    %c0_i32_0 = arith.constant 0 : i32
    %c0_i32_1 = arith.constant 0 : i32
    return %arg0, %arg1, %c0_i32, %c0_i32_0 : i32, i32, i32, i32
  }
  func.func @transform_7(%arg0: i32, %arg1: i32) -> (i32, i32, i32, i32) {
    %c0_i32 = arith.constant 0 : i32
    %c0_i32_0 = arith.constant 0 : i32
    %c0_i32_1 = arith.constant 0 : i32
    return %arg0, %arg1, %c0_i32, %c0_i32_0 : i32, i32, i32, i32
  }
}

module attributes {stable_mosaic.version = 11 : i64} {
  func.func @_stage2_kernel(%arg0: i32, %arg1: i32, %arg2: memref<1x10x10x32xbf16, #tpu.memory_space<vmem>>, %arg3: memref<2x32xf32, #tpu.memory_space<vmem>>, %arg4: memref<9x32x128xbf16, #tpu.memory_space<vmem>>, %arg5: memref<1x8x8x32xbf16, #tpu.memory_space<vmem>>, %arg6: memref<1x1x2x128xf32, #tpu.memory_space<vmem>>) attributes {dimension_semantics = [#tpu.dimension_semantics<parallel>, #tpu.dimension_semantics<parallel>], iteration_bounds = array<i64: 2, 1>, scalar_prefetch = 0 : i64, scratch_operands = 0 : i64, tpu.core_type = #tpu.core_type<tc>, window_params = [{transform_indices = @transform_0, window_bounds = array<i64: 1, 10, 10, 32>}, {pipeline_mode = #tpu.pipeline_mode<synchronous>, transform_indices = @transform_1, window_bounds = array<i64: 2, 32>}, {pipeline_mode = #tpu.pipeline_mode<synchronous>, transform_indices = @transform_2, window_bounds = array<i64: 9, 32, 128>}, {transform_indices = @transform_3, window_bounds = array<i64: 1, 8, 8, 32>}, {transform_indices = @transform_4, window_bounds = array<i64: 1, 1, 2, 128>}]} {
    %c8_i32 = arith.constant 8 : i32
    %0 = arith.muli %arg1, %c8_i32 : i32
    %1 = tpu.assume_multiple %0, 8 : i32
    %c0 = arith.constant 0 : index
    %c0_0 = arith.constant 0 : index
    %2 = vector.load %arg3[%c0, %c0_0] : memref<2x32xf32, #tpu.memory_space<vmem>>, vector<1x32xf32>
    %c1 = arith.constant 1 : index
    %c0_1 = arith.constant 0 : index
    %3 = vector.load %arg3[%c1, %c0_1] : memref<2x32xf32, #tpu.memory_space<vmem>>, vector<1x32xf32>
    %cst = arith.constant 0.000000e+00 : f32
    %4 = vector.broadcast %cst : f32 to vector<64x128xf32>
    %c0_i32 = arith.constant 0 : i32
    %5 = arith.addi %1, %c0_i32 : i32
    %c0_2 = arith.constant 0 : index
    %6 = arith.index_cast %5 : i32 to index
    %c0_3 = arith.constant 0 : index
    %c0_4 = arith.constant 0 : index
    %7 = vector.load %arg2[%c0_2, %6, %c0_3, %c0_4] : memref<1x10x10x32xbf16, #tpu.memory_space<vmem>>, vector<1x8x8x32xbf16>
    %8 = vector.shape_cast %7 : vector<1x8x8x32xbf16> to vector<8x8x32xbf16>
    %9 = vector.shape_cast %8 : vector<8x8x32xbf16> to vector<64x32xbf16>
    %10 = arith.extf %9 : vector<64x32xbf16> to vector<64x32xf32>
    %11 = vector.broadcast %2 : vector<1x32xf32> to vector<64x32xf32>
    %12 = arith.mulf %10, %11 : vector<64x32xf32>
    %13 = vector.broadcast %3 : vector<1x32xf32> to vector<64x32xf32>
    %14 = arith.addf %12, %13 : vector<64x32xf32>
    %cst_5 = arith.constant 0.000000e+00 : f32
    %15 = vector.broadcast %cst_5 : f32 to vector<64x32xf32>
    %16 = arith.maximumf %14, %15 : vector<64x32xf32>
    %17 = arith.truncf %16 : vector<64x32xf32> to vector<64x32xbf16>
    %c0_6 = arith.constant 0 : index
    %c0_7 = arith.constant 0 : index
    %c0_8 = arith.constant 0 : index
    %18 = vector.load %arg4[%c0_6, %c0_7, %c0_8] : memref<9x32x128xbf16, #tpu.memory_space<vmem>>, vector<1x32x128xbf16>
    %19 = vector.shape_cast %18 : vector<1x32x128xbf16> to vector<32x128xbf16>
    %cst_9 = arith.constant dense<0.000000e+00> : vector<64x128xf32>
    %20 = tpu.matmul %17, %19, %cst_9 {dimension_numbers = #tpu.dot_dimension_numbers<[1], [0], [0], [1], [0, 0, 1, 1], [], []>} : vector<64x32xbf16>, vector<32x128xbf16>, vector<64x128xf32> -> vector<64x128xf32>
    %21 = arith.addf %4, %20 : vector<64x128xf32>
    %c0_i32_10 = arith.constant 0 : i32
    %22 = arith.addi %1, %c0_i32_10 : i32
    %c0_11 = arith.constant 0 : index
    %23 = arith.index_cast %22 : i32 to index
    %c1_12 = arith.constant 1 : index
    %c0_13 = arith.constant 0 : index
    %24 = vector.load %arg2[%c0_11, %23, %c1_12, %c0_13] : memref<1x10x10x32xbf16, #tpu.memory_space<vmem>>, vector<1x8x8x32xbf16>
    %25 = vector.shape_cast %24 : vector<1x8x8x32xbf16> to vector<8x8x32xbf16>
    %26 = vector.shape_cast %25 : vector<8x8x32xbf16> to vector<64x32xbf16>
    %27 = arith.extf %26 : vector<64x32xbf16> to vector<64x32xf32>
    %28 = vector.broadcast %2 : vector<1x32xf32> to vector<64x32xf32>
    %29 = arith.mulf %27, %28 : vector<64x32xf32>
    %30 = vector.broadcast %3 : vector<1x32xf32> to vector<64x32xf32>
    %31 = arith.addf %29, %30 : vector<64x32xf32>
    %cst_14 = arith.constant 0.000000e+00 : f32
    %32 = vector.broadcast %cst_14 : f32 to vector<64x32xf32>
    %33 = arith.maximumf %31, %32 : vector<64x32xf32>
    %34 = arith.truncf %33 : vector<64x32xf32> to vector<64x32xbf16>
    %c1_15 = arith.constant 1 : index
    %c0_16 = arith.constant 0 : index
    %c0_17 = arith.constant 0 : index
    %35 = vector.load %arg4[%c1_15, %c0_16, %c0_17] : memref<9x32x128xbf16, #tpu.memory_space<vmem>>, vector<1x32x128xbf16>
    %36 = vector.shape_cast %35 : vector<1x32x128xbf16> to vector<32x128xbf16>
    %cst_18 = arith.constant dense<0.000000e+00> : vector<64x128xf32>
    %37 = tpu.matmul %34, %36, %cst_18 {dimension_numbers = #tpu.dot_dimension_numbers<[1], [0], [0], [1], [0, 0, 1, 1], [], []>} : vector<64x32xbf16>, vector<32x128xbf16>, vector<64x128xf32> -> vector<64x128xf32>
    %38 = arith.addf %21, %37 : vector<64x128xf32>
    %c0_i32_19 = arith.constant 0 : i32
    %39 = arith.addi %1, %c0_i32_19 : i32
    %c0_20 = arith.constant 0 : index
    %40 = arith.index_cast %39 : i32 to index
    %c2 = arith.constant 2 : index
    %c0_21 = arith.constant 0 : index
    %41 = vector.load %arg2[%c0_20, %40, %c2, %c0_21] : memref<1x10x10x32xbf16, #tpu.memory_space<vmem>>, vector<1x8x8x32xbf16>
    %42 = vector.shape_cast %41 : vector<1x8x8x32xbf16> to vector<8x8x32xbf16>
    %43 = vector.shape_cast %42 : vector<8x8x32xbf16> to vector<64x32xbf16>
    %44 = arith.extf %43 : vector<64x32xbf16> to vector<64x32xf32>
    %45 = vector.broadcast %2 : vector<1x32xf32> to vector<64x32xf32>
    %46 = arith.mulf %44, %45 : vector<64x32xf32>
    %47 = vector.broadcast %3 : vector<1x32xf32> to vector<64x32xf32>
    %48 = arith.addf %46, %47 : vector<64x32xf32>
    %cst_22 = arith.constant 0.000000e+00 : f32
    %49 = vector.broadcast %cst_22 : f32 to vector<64x32xf32>
    %50 = arith.maximumf %48, %49 : vector<64x32xf32>
    %51 = arith.truncf %50 : vector<64x32xf32> to vector<64x32xbf16>
    %c2_23 = arith.constant 2 : index
    %c0_24 = arith.constant 0 : index
    %c0_25 = arith.constant 0 : index
    %52 = vector.load %arg4[%c2_23, %c0_24, %c0_25] : memref<9x32x128xbf16, #tpu.memory_space<vmem>>, vector<1x32x128xbf16>
    %53 = vector.shape_cast %52 : vector<1x32x128xbf16> to vector<32x128xbf16>
    %cst_26 = arith.constant dense<0.000000e+00> : vector<64x128xf32>
    %54 = tpu.matmul %51, %53, %cst_26 {dimension_numbers = #tpu.dot_dimension_numbers<[1], [0], [0], [1], [0, 0, 1, 1], [], []>} : vector<64x32xbf16>, vector<32x128xbf16>, vector<64x128xf32> -> vector<64x128xf32>
    %55 = arith.addf %38, %54 : vector<64x128xf32>
    %c1_i32 = arith.constant 1 : i32
    %56 = arith.addi %1, %c1_i32 : i32
    %c0_27 = arith.constant 0 : index
    %57 = arith.index_cast %56 : i32 to index
    %c0_28 = arith.constant 0 : index
    %c0_29 = arith.constant 0 : index
    %58 = vector.load %arg2[%c0_27, %57, %c0_28, %c0_29] : memref<1x10x10x32xbf16, #tpu.memory_space<vmem>>, vector<1x8x8x32xbf16>
    %59 = vector.shape_cast %58 : vector<1x8x8x32xbf16> to vector<8x8x32xbf16>
    %60 = vector.shape_cast %59 : vector<8x8x32xbf16> to vector<64x32xbf16>
    %61 = arith.extf %60 : vector<64x32xbf16> to vector<64x32xf32>
    %62 = vector.broadcast %2 : vector<1x32xf32> to vector<64x32xf32>
    %63 = arith.mulf %61, %62 : vector<64x32xf32>
    %64 = vector.broadcast %3 : vector<1x32xf32> to vector<64x32xf32>
    %65 = arith.addf %63, %64 : vector<64x32xf32>
    %cst_30 = arith.constant 0.000000e+00 : f32
    %66 = vector.broadcast %cst_30 : f32 to vector<64x32xf32>
    %67 = arith.maximumf %65, %66 : vector<64x32xf32>
    %68 = arith.truncf %67 : vector<64x32xf32> to vector<64x32xbf16>
    %c3 = arith.constant 3 : index
    %c0_31 = arith.constant 0 : index
    %c0_32 = arith.constant 0 : index
    %69 = vector.load %arg4[%c3, %c0_31, %c0_32] : memref<9x32x128xbf16, #tpu.memory_space<vmem>>, vector<1x32x128xbf16>
    %70 = vector.shape_cast %69 : vector<1x32x128xbf16> to vector<32x128xbf16>
    %cst_33 = arith.constant dense<0.000000e+00> : vector<64x128xf32>
    %71 = tpu.matmul %68, %70, %cst_33 {dimension_numbers = #tpu.dot_dimension_numbers<[1], [0], [0], [1], [0, 0, 1, 1], [], []>} : vector<64x32xbf16>, vector<32x128xbf16>, vector<64x128xf32> -> vector<64x128xf32>
    %72 = arith.addf %55, %71 : vector<64x128xf32>
    %c1_i32_34 = arith.constant 1 : i32
    %73 = arith.addi %1, %c1_i32_34 : i32
    %c0_35 = arith.constant 0 : index
    %74 = arith.index_cast %73 : i32 to index
    %c1_36 = arith.constant 1 : index
    %c0_37 = arith.constant 0 : index
    %75 = vector.load %arg2[%c0_35, %74, %c1_36, %c0_37] : memref<1x10x10x32xbf16, #tpu.memory_space<vmem>>, vector<1x8x8x32xbf16>
    %76 = vector.shape_cast %75 : vector<1x8x8x32xbf16> to vector<8x8x32xbf16>
    %77 = vector.shape_cast %76 : vector<8x8x32xbf16> to vector<64x32xbf16>
    %78 = arith.extf %77 : vector<64x32xbf16> to vector<64x32xf32>
    %79 = vector.broadcast %2 : vector<1x32xf32> to vector<64x32xf32>
    %80 = arith.mulf %78, %79 : vector<64x32xf32>
    %81 = vector.broadcast %3 : vector<1x32xf32> to vector<64x32xf32>
    %82 = arith.addf %80, %81 : vector<64x32xf32>
    %cst_38 = arith.constant 0.000000e+00 : f32
    %83 = vector.broadcast %cst_38 : f32 to vector<64x32xf32>
    %84 = arith.maximumf %82, %83 : vector<64x32xf32>
    %85 = arith.truncf %84 : vector<64x32xf32> to vector<64x32xbf16>
    %c4 = arith.constant 4 : index
    %c0_39 = arith.constant 0 : index
    %c0_40 = arith.constant 0 : index
    %86 = vector.load %arg4[%c4, %c0_39, %c0_40] : memref<9x32x128xbf16, #tpu.memory_space<vmem>>, vector<1x32x128xbf16>
    %87 = vector.shape_cast %86 : vector<1x32x128xbf16> to vector<32x128xbf16>
    %cst_41 = arith.constant dense<0.000000e+00> : vector<64x128xf32>
    %88 = tpu.matmul %85, %87, %cst_41 {dimension_numbers = #tpu.dot_dimension_numbers<[1], [0], [0], [1], [0, 0, 1, 1], [], []>} : vector<64x32xbf16>, vector<32x128xbf16>, vector<64x128xf32> -> vector<64x128xf32>
    %89 = arith.addf %72, %88 : vector<64x128xf32>
    %c1_i32_42 = arith.constant 1 : i32
    %90 = arith.addi %1, %c1_i32_42 : i32
    %c0_43 = arith.constant 0 : index
    %91 = arith.index_cast %90 : i32 to index
    %c2_44 = arith.constant 2 : index
    %c0_45 = arith.constant 0 : index
    %92 = vector.load %arg2[%c0_43, %91, %c2_44, %c0_45] : memref<1x10x10x32xbf16, #tpu.memory_space<vmem>>, vector<1x8x8x32xbf16>
    %93 = vector.shape_cast %92 : vector<1x8x8x32xbf16> to vector<8x8x32xbf16>
    %94 = vector.shape_cast %93 : vector<8x8x32xbf16> to vector<64x32xbf16>
    %95 = arith.extf %94 : vector<64x32xbf16> to vector<64x32xf32>
    %96 = vector.broadcast %2 : vector<1x32xf32> to vector<64x32xf32>
    %97 = arith.mulf %95, %96 : vector<64x32xf32>
    %98 = vector.broadcast %3 : vector<1x32xf32> to vector<64x32xf32>
    %99 = arith.addf %97, %98 : vector<64x32xf32>
    %cst_46 = arith.constant 0.000000e+00 : f32
    %100 = vector.broadcast %cst_46 : f32 to vector<64x32xf32>
    %101 = arith.maximumf %99, %100 : vector<64x32xf32>
    %102 = arith.truncf %101 : vector<64x32xf32> to vector<64x32xbf16>
    %c5 = arith.constant 5 : index
    %c0_47 = arith.constant 0 : index
    %c0_48 = arith.constant 0 : index
    %103 = vector.load %arg4[%c5, %c0_47, %c0_48] : memref<9x32x128xbf16, #tpu.memory_space<vmem>>, vector<1x32x128xbf16>
    %104 = vector.shape_cast %103 : vector<1x32x128xbf16> to vector<32x128xbf16>
    %cst_49 = arith.constant dense<0.000000e+00> : vector<64x128xf32>
    %105 = tpu.matmul %102, %104, %cst_49 {dimension_numbers = #tpu.dot_dimension_numbers<[1], [0], [0], [1], [0, 0, 1, 1], [], []>} : vector<64x32xbf16>, vector<32x128xbf16>, vector<64x128xf32> -> vector<64x128xf32>
    %106 = arith.addf %89, %105 : vector<64x128xf32>
    %c2_i32 = arith.constant 2 : i32
    %107 = arith.addi %1, %c2_i32 : i32
    %c0_50 = arith.constant 0 : index
    %108 = arith.index_cast %107 : i32 to index
    %c0_51 = arith.constant 0 : index
    %c0_52 = arith.constant 0 : index
    %109 = vector.load %arg2[%c0_50, %108, %c0_51, %c0_52] : memref<1x10x10x32xbf16, #tpu.memory_space<vmem>>, vector<1x8x8x32xbf16>
    %110 = vector.shape_cast %109 : vector<1x8x8x32xbf16> to vector<8x8x32xbf16>
    %111 = vector.shape_cast %110 : vector<8x8x32xbf16> to vector<64x32xbf16>
    %112 = arith.extf %111 : vector<64x32xbf16> to vector<64x32xf32>
    %113 = vector.broadcast %2 : vector<1x32xf32> to vector<64x32xf32>
    %114 = arith.mulf %112, %113 : vector<64x32xf32>
    %115 = vector.broadcast %3 : vector<1x32xf32> to vector<64x32xf32>
    %116 = arith.addf %114, %115 : vector<64x32xf32>
    %cst_53 = arith.constant 0.000000e+00 : f32
    %117 = vector.broadcast %cst_53 : f32 to vector<64x32xf32>
    %118 = arith.maximumf %116, %117 : vector<64x32xf32>
    %119 = arith.truncf %118 : vector<64x32xf32> to vector<64x32xbf16>
    %c6 = arith.constant 6 : index
    %c0_54 = arith.constant 0 : index
    %c0_55 = arith.constant 0 : index
    %120 = vector.load %arg4[%c6, %c0_54, %c0_55] : memref<9x32x128xbf16, #tpu.memory_space<vmem>>, vector<1x32x128xbf16>
    %121 = vector.shape_cast %120 : vector<1x32x128xbf16> to vector<32x128xbf16>
    %cst_56 = arith.constant dense<0.000000e+00> : vector<64x128xf32>
    %122 = tpu.matmul %119, %121, %cst_56 {dimension_numbers = #tpu.dot_dimension_numbers<[1], [0], [0], [1], [0, 0, 1, 1], [], []>} : vector<64x32xbf16>, vector<32x128xbf16>, vector<64x128xf32> -> vector<64x128xf32>
    %123 = arith.addf %106, %122 : vector<64x128xf32>
    %c2_i32_57 = arith.constant 2 : i32
    %124 = arith.addi %1, %c2_i32_57 : i32
    %c0_58 = arith.constant 0 : index
    %125 = arith.index_cast %124 : i32 to index
    %c1_59 = arith.constant 1 : index
    %c0_60 = arith.constant 0 : index
    %126 = vector.load %arg2[%c0_58, %125, %c1_59, %c0_60] : memref<1x10x10x32xbf16, #tpu.memory_space<vmem>>, vector<1x8x8x32xbf16>
    %127 = vector.shape_cast %126 : vector<1x8x8x32xbf16> to vector<8x8x32xbf16>
    %128 = vector.shape_cast %127 : vector<8x8x32xbf16> to vector<64x32xbf16>
    %129 = arith.extf %128 : vector<64x32xbf16> to vector<64x32xf32>
    %130 = vector.broadcast %2 : vector<1x32xf32> to vector<64x32xf32>
    %131 = arith.mulf %129, %130 : vector<64x32xf32>
    %132 = vector.broadcast %3 : vector<1x32xf32> to vector<64x32xf32>
    %133 = arith.addf %131, %132 : vector<64x32xf32>
    %cst_61 = arith.constant 0.000000e+00 : f32
    %134 = vector.broadcast %cst_61 : f32 to vector<64x32xf32>
    %135 = arith.maximumf %133, %134 : vector<64x32xf32>
    %136 = arith.truncf %135 : vector<64x32xf32> to vector<64x32xbf16>
    %c7 = arith.constant 7 : index
    %c0_62 = arith.constant 0 : index
    %c0_63 = arith.constant 0 : index
    %137 = vector.load %arg4[%c7, %c0_62, %c0_63] : memref<9x32x128xbf16, #tpu.memory_space<vmem>>, vector<1x32x128xbf16>
    %138 = vector.shape_cast %137 : vector<1x32x128xbf16> to vector<32x128xbf16>
    %cst_64 = arith.constant dense<0.000000e+00> : vector<64x128xf32>
    %139 = tpu.matmul %136, %138, %cst_64 {dimension_numbers = #tpu.dot_dimension_numbers<[1], [0], [0], [1], [0, 0, 1, 1], [], []>} : vector<64x32xbf16>, vector<32x128xbf16>, vector<64x128xf32> -> vector<64x128xf32>
    %140 = arith.addf %123, %139 : vector<64x128xf32>
    %c2_i32_65 = arith.constant 2 : i32
    %141 = arith.addi %1, %c2_i32_65 : i32
    %c0_66 = arith.constant 0 : index
    %142 = arith.index_cast %141 : i32 to index
    %c2_67 = arith.constant 2 : index
    %c0_68 = arith.constant 0 : index
    %143 = vector.load %arg2[%c0_66, %142, %c2_67, %c0_68] : memref<1x10x10x32xbf16, #tpu.memory_space<vmem>>, vector<1x8x8x32xbf16>
    %144 = vector.shape_cast %143 : vector<1x8x8x32xbf16> to vector<8x8x32xbf16>
    %145 = vector.shape_cast %144 : vector<8x8x32xbf16> to vector<64x32xbf16>
    %146 = arith.extf %145 : vector<64x32xbf16> to vector<64x32xf32>
    %147 = vector.broadcast %2 : vector<1x32xf32> to vector<64x32xf32>
    %148 = arith.mulf %146, %147 : vector<64x32xf32>
    %149 = vector.broadcast %3 : vector<1x32xf32> to vector<64x32xf32>
    %150 = arith.addf %148, %149 : vector<64x32xf32>
    %cst_69 = arith.constant 0.000000e+00 : f32
    %151 = vector.broadcast %cst_69 : f32 to vector<64x32xf32>
    %152 = arith.maximumf %150, %151 : vector<64x32xf32>
    %153 = arith.truncf %152 : vector<64x32xf32> to vector<64x32xbf16>
    %c8 = arith.constant 8 : index
    %c0_70 = arith.constant 0 : index
    %c0_71 = arith.constant 0 : index
    %154 = vector.load %arg4[%c8, %c0_70, %c0_71] : memref<9x32x128xbf16, #tpu.memory_space<vmem>>, vector<1x32x128xbf16>
    %155 = vector.shape_cast %154 : vector<1x32x128xbf16> to vector<32x128xbf16>
    %cst_72 = arith.constant dense<0.000000e+00> : vector<64x128xf32>
    %156 = tpu.matmul %153, %155, %cst_72 {dimension_numbers = #tpu.dot_dimension_numbers<[1], [0], [0], [1], [0, 0, 1, 1], [], []>} : vector<64x32xbf16>, vector<32x128xbf16>, vector<64x128xf32> -> vector<64x128xf32>
    %157 = arith.addf %140, %156 : vector<64x128xf32>
    %158 = vector.extract_strided_slice %157 {offsets = [0, 0], sizes = [64, 32], strides = [1, 1]} : vector<64x128xf32> to vector<64x32xf32>
    %159 = arith.truncf %158 : vector<64x32xf32> to vector<64x32xbf16>
    %160 = vector.shape_cast %159 : vector<64x32xbf16> to vector<8x8x32xbf16>
    %c0_73 = arith.constant 0 : index
    %c0_74 = arith.constant 0 : index
    %c0_75 = arith.constant 0 : index
    %c0_76 = arith.constant 0 : index
    %161 = vector.load %arg5[%c0_73, %c0_74, %c0_75, %c0_76] : memref<1x8x8x32xbf16, #tpu.memory_space<vmem>>, vector<1x8x8x32xbf16>
    %162 = vector.shape_cast %161 : vector<1x8x8x32xbf16> to vector<8x8x32xbf16>
    %163 = vector.shape_cast %160 : vector<8x8x32xbf16> to vector<1x8x8x32xbf16>
    tpu.vector_store %arg5[%c0_73, %c0_74, %c0_75, %c0_76], %163 {strides = array<i32>} : memref<1x8x8x32xbf16, #tpu.memory_space<vmem>>, vector<1x8x8x32xbf16>,
    %cst_77 = arith.constant dense<0.000000e+00> : vector<128xf32>
    %164 = vector.multi_reduction <add>, %157, %cst_77 [0] : vector<64x128xf32> to vector<128xf32>
    %165 = vector.shape_cast %164 : vector<128xf32> to vector<1x128xf32>
    %166 = arith.mulf %157, %157 : vector<64x128xf32>
    %cst_78 = arith.constant dense<0.000000e+00> : vector<128xf32>
    %167 = vector.multi_reduction <add>, %166, %cst_78 [0] : vector<64x128xf32> to vector<128xf32>
    %168 = vector.shape_cast %167 : vector<128xf32> to vector<1x128xf32>
    %169 = tpu.concatenate %165, %168 in 0 : vector<1x128xf32>, vector<1x128xf32> -> vector<2x128xf32>
    %c0_79 = arith.constant 0 : index
    %c0_80 = arith.constant 0 : index
    %c0_81 = arith.constant 0 : index
    %c0_82 = arith.constant 0 : index
    %170 = vector.load %arg6[%c0_79, %c0_80, %c0_81, %c0_82] : memref<1x1x2x128xf32, #tpu.memory_space<vmem>>, vector<1x1x2x128xf32>
    %171 = vector.shape_cast %170 : vector<1x1x2x128xf32> to vector<2x128xf32>
    %172 = vector.shape_cast %169 : vector<2x128xf32> to vector<1x1x2x128xf32>
    tpu.vector_store %arg6[%c0_79, %c0_80, %c0_81, %c0_82], %172 {strides = array<i32>} : memref<1x1x2x128xf32, #tpu.memory_space<vmem>>, vector<1x1x2x128xf32>,
    return
  }
  func.func @transform_0(%arg0: i32, %arg1: i32) -> (i32, i32, i32, i32) {
    %c0_i32 = arith.constant 0 : i32
    %c0_i32_0 = arith.constant 0 : i32
    %c0_i32_1 = arith.constant 0 : i32
    %c0_i32_2 = arith.constant 0 : i32
    return %arg0, %c0_i32, %c0_i32_0, %c0_i32_1 : i32, i32, i32, i32
  }
  func.func @transform_1(%arg0: i32, %arg1: i32) -> (i32, i32) {
    %c0_i32 = arith.constant 0 : i32
    %c0_i32_0 = arith.constant 0 : i32
    %c0_i32_1 = arith.constant 0 : i32
    return %c0_i32, %c0_i32_0 : i32, i32
  }
  func.func @transform_2(%arg0: i32, %arg1: i32) -> (i32, i32, i32) {
    %c0_i32 = arith.constant 0 : i32
    %c0_i32_0 = arith.constant 0 : i32
    %c0_i32_1 = arith.constant 0 : i32
    %c0_i32_2 = arith.constant 0 : i32
    return %c0_i32, %c0_i32_0, %c0_i32_1 : i32, i32, i32
  }
  func.func @transform_3(%arg0: i32, %arg1: i32) -> (i32, i32, i32, i32) {
    %c0_i32 = arith.constant 0 : i32
    %c0_i32_0 = arith.constant 0 : i32
    %c0_i32_1 = arith.constant 0 : i32
    return %arg0, %arg1, %c0_i32, %c0_i32_0 : i32, i32, i32, i32
  }
  func.func @transform_4(%arg0: i32, %arg1: i32) -> (i32, i32, i32, i32) {
    %c0_i32 = arith.constant 0 : i32
    %c0_i32_0 = arith.constant 0 : i32
    %c0_i32_1 = arith.constant 0 : i32
    return %arg0, %arg1, %c0_i32, %c0_i32_0 : i32, i32, i32, i32
  }
}

module attributes {stable_mosaic.version = 11 : i64} {
  func.func @_finalize_kernel(%arg0: i32, %arg1: memref<1x8x8x32xbf16, #tpu.memory_space<vmem>>, %arg2: memref<1x8x8x32xbf16, #tpu.memory_space<vmem>>, %arg3: memref<2x32xf32, #tpu.memory_space<vmem>>, %arg4: memref<2x32xf32, #tpu.memory_space<vmem>>, %arg5: memref<1x8x8x32xf32, #tpu.memory_space<vmem>>) attributes {dimension_semantics = [#tpu.dimension_semantics<parallel>], iteration_bounds = array<i64: 2>, scalar_prefetch = 0 : i64, scratch_operands = 0 : i64, tpu.core_type = #tpu.core_type<tc>, window_params = [{transform_indices = @transform_0, window_bounds = array<i64: 1, 8, 8, 32>}, {transform_indices = @transform_1, window_bounds = array<i64: 1, 8, 8, 32>}, {pipeline_mode = #tpu.pipeline_mode<synchronous>, transform_indices = @transform_2, window_bounds = array<i64: 2, 32>}, {pipeline_mode = #tpu.pipeline_mode<synchronous>, transform_indices = @transform_3, window_bounds = array<i64: 2, 32>}, {transform_indices = @transform_4, window_bounds = array<i64: 1, 8, 8, 32>}]} {
    %c0 = arith.constant 0 : index
    %c0_0 = arith.constant 0 : index
    %c0_1 = arith.constant 0 : index
    %c0_2 = arith.constant 0 : index
    %0 = vector.load %arg1[%c0, %c0_0, %c0_1, %c0_2] : memref<1x8x8x32xbf16, #tpu.memory_space<vmem>>, vector<1x8x8x32xbf16>
    %1 = vector.shape_cast %0 : vector<1x8x8x32xbf16> to vector<8x8x32xbf16>
    %2 = vector.shape_cast %1 : vector<8x8x32xbf16> to vector<64x32xbf16>
    %3 = arith.extf %2 : vector<64x32xbf16> to vector<64x32xf32>
    %c0_3 = arith.constant 0 : index
    %c0_4 = arith.constant 0 : index
    %c0_5 = arith.constant 0 : index
    %c0_6 = arith.constant 0 : index
    %4 = vector.load %arg2[%c0_3, %c0_4, %c0_5, %c0_6] : memref<1x8x8x32xbf16, #tpu.memory_space<vmem>>, vector<1x8x8x32xbf16>
    %5 = vector.shape_cast %4 : vector<1x8x8x32xbf16> to vector<8x8x32xbf16>
    %6 = vector.shape_cast %5 : vector<8x8x32xbf16> to vector<64x32xbf16>
    %7 = arith.extf %6 : vector<64x32xbf16> to vector<64x32xf32>
    %c0_7 = arith.constant 0 : index
    %c0_8 = arith.constant 0 : index
    %8 = vector.load %arg3[%c0_7, %c0_8] : memref<2x32xf32, #tpu.memory_space<vmem>>, vector<1x32xf32>
    %9 = vector.broadcast %8 : vector<1x32xf32> to vector<64x32xf32>
    %10 = arith.mulf %3, %9 : vector<64x32xf32>
    %c1 = arith.constant 1 : index
    %c0_9 = arith.constant 0 : index
    %11 = vector.load %arg3[%c1, %c0_9] : memref<2x32xf32, #tpu.memory_space<vmem>>, vector<1x32xf32>
    %12 = vector.broadcast %11 : vector<1x32xf32> to vector<64x32xf32>
    %13 = arith.addf %10, %12 : vector<64x32xf32>
    %c0_10 = arith.constant 0 : index
    %c0_11 = arith.constant 0 : index
    %14 = vector.load %arg4[%c0_10, %c0_11] : memref<2x32xf32, #tpu.memory_space<vmem>>, vector<1x32xf32>
    %15 = vector.broadcast %14 : vector<1x32xf32> to vector<64x32xf32>
    %16 = arith.mulf %7, %15 : vector<64x32xf32>
    %c1_12 = arith.constant 1 : index
    %c0_13 = arith.constant 0 : index
    %17 = vector.load %arg4[%c1_12, %c0_13] : memref<2x32xf32, #tpu.memory_space<vmem>>, vector<1x32xf32>
    %18 = vector.broadcast %17 : vector<1x32xf32> to vector<64x32xf32>
    %19 = arith.addf %16, %18 : vector<64x32xf32>
    %20 = arith.addf %13, %19 : vector<64x32xf32>
    %cst = arith.constant 0.000000e+00 : f32
    %21 = vector.broadcast %cst : f32 to vector<64x32xf32>
    %22 = arith.maximumf %20, %21 : vector<64x32xf32>
    %23 = vector.shape_cast %22 : vector<64x32xf32> to vector<8x8x32xf32>
    %c0_14 = arith.constant 0 : index
    %c0_15 = arith.constant 0 : index
    %c0_16 = arith.constant 0 : index
    %c0_17 = arith.constant 0 : index
    %24 = vector.load %arg5[%c0_14, %c0_15, %c0_16, %c0_17] : memref<1x8x8x32xf32, #tpu.memory_space<vmem>>, vector<1x8x8x32xf32>
    %25 = vector.shape_cast %24 : vector<1x8x8x32xf32> to vector<8x8x32xf32>
    %26 = vector.shape_cast %23 : vector<8x8x32xf32> to vector<1x8x8x32xf32>
    tpu.vector_store %arg5[%c0_14, %c0_15, %c0_16, %c0_17], %26 {strides = array<i32>} : memref<1x8x8x32xf32, #tpu.memory_space<vmem>>, vector<1x8x8x32xf32>,
    return
  }
  func.func @transform_0(%arg0: i32) -> (i32, i32, i32, i32) {
    %c0_i32 = arith.constant 0 : i32
    %c0_i32_0 = arith.constant 0 : i32
    %c0_i32_1 = arith.constant 0 : i32
    %c0_i32_2 = arith.constant 0 : i32
    return %arg0, %c0_i32, %c0_i32_0, %c0_i32_1 : i32, i32, i32, i32
  }
  func.func @transform_1(%arg0: i32) -> (i32, i32, i32, i32) {
    %c0_i32 = arith.constant 0 : i32
    %c0_i32_0 = arith.constant 0 : i32
    %c0_i32_1 = arith.constant 0 : i32
    %c0_i32_2 = arith.constant 0 : i32
    return %arg0, %c0_i32, %c0_i32_0, %c0_i32_1 : i32, i32, i32, i32
  }
  func.func @transform_2(%arg0: i32) -> (i32, i32) {
    %c0_i32 = arith.constant 0 : i32
    %c0_i32_0 = arith.constant 0 : i32
    %c0_i32_1 = arith.constant 0 : i32
    return %c0_i32, %c0_i32_0 : i32, i32
  }
  func.func @transform_3(%arg0: i32) -> (i32, i32) {
    %c0_i32 = arith.constant 0 : i32
    %c0_i32_0 = arith.constant 0 : i32
    %c0_i32_1 = arith.constant 0 : i32
    return %c0_i32, %c0_i32_0 : i32, i32
  }
  func.func @transform_4(%arg0: i32) -> (i32, i32, i32, i32) {
    %c0_i32 = arith.constant 0 : i32
    %c0_i32_0 = arith.constant 0 : i32
    %c0_i32_1 = arith.constant 0 : i32
    %c0_i32_2 = arith.constant 0 : i32
    return %arg0, %c0_i32, %c0_i32_0, %c0_i32_1 : i32, i32, i32, i32
  }
}

</mosaic_0001>

<bundles_post_ra>
// kernel: block_forward.5
= control target key start
LH: loop header
LB: loop body
LE: loop exit
PB: predicated region body
PF: predicated region fallthrough
CT: control target
= control target key end

     0   :  { %9 = vsyncpa [#allocation3], 0  ;;  %s769_s0 = inlined_call_operand.vmem [shape: bf16[2,8,8,32], index: 0, kind: input, shape index: {}]   ;;  %s770_s1 = inlined_call_operand.vmem [shape: bf16[2,8,8,32], index: 1, kind: input, shape index: {}]   ;;  %s771_s2 = inlined_call_operand.vmem [shape: f32[2,32], index: 2, kind: input, shape index: {}]   ;;  %s772_s3 = inlined_call_operand.vmem [shape: f32[2,32], index: 3, kind: input, shape index: {}]   ;;  %s773_s4 = inlined_call_operand.hbm [shape: f32[2,8,8,32], index: 4, kind: output, shape index: {}]  }
   0x1   :  { %11 = vsyncpa [#allocation3 + $0x1], 0  ;;  %s594_s15 = smov 0   ;;  %s596_s16 = smov 0  }
   0x2   :  { %s598_s17 = smov 0   ;;  %s600_s18 = smov 0  }
   0x3 LB: > { %s615_s19 = sadd.s32 4294967295, %s565_s18   ;;  %s403_s20 = sadd.s32 4294967294, %s565_s18   ;;  %s565_s18 = sphi %s600_s18, %s779_s18   ;;  %s561_s17 = sphi %s598_s17, %s778_s17   ;;  %s557_s16 = sphi %s596_s16, %s777_s16   ;;  %s553_s15 = sphi %s594_s15, %s776_s15  }
   0x4   : > { %s619_s21 = sadd.s32 1, %s565_s18   ;;  %s118_s22 = sadd.s32 1, %s561_s17 }
   0x5   : > { %s115_s23 = ssub.s32 %s565_s18, %s619_s21  ;;  %p128_p0 = scmp.ne.s32.totalorder %s561_s17, %s557_s16 }
   0x6   : > { %p116_p1 = scmp.eq.s32.totalorder %s115_s23, 0  ;;  %p129_p2 = scmp.eq.s32.totalorder %s615_s19, 1 }
   0x7   : > { %p134_p3 = scmp.ne.s32.totalorder %s557_s16, %s553_s15  ;;  %p135_p4 = scmp.eq.s32.totalorder %s403_s20, 1 }
   0x8   : > { %s630_s24 = scalar_select %p116_p1, %s561_s17, %s118_s22  }
   0x9   : > { %p632_p5 = por %p129_p2, %p128_p0  ;;  %p636_p6 = por %p135_p4, %p134_p3 }
   0xa   : > { %p406_p7 = scmp.ge.s32.totalorder %s565_s18, 1  ;;  %p175_p8 = scmp.lt.s32.totalorder %s565_s18, 3 }
   0xc   : > { %p176_p9 = pnand %p406_p7, %p175_p8 }
   0xd   : > { %p206_p10 = scmp.lt.s32.totalorder (!%p176_p9), %s615_s19, 1  ;;  %s203_s23 = sand.u32 (!%p176_p9), 1, %s557_s16  }
   0xe   : > { %179 = sbr.rel (%p176_p9) target bundleno = 49 (0x31), region = 36  ;;  %s419_s29 = sshll.u32 (!%p176_p9), %s615_s19, 6 }
   0xf   : > { %s523_s13 = scalar_lea.hbm (!%p176_p9), %s773_s4, 128 }
  0x13   : > { %s207_s27 = scalar_select %p206_p10, %s615_s19, 1  ;;  %v657_v0 = vld [vmem:[%s771_s2] ss:$0 sm:$0xff]  ;;  %vm304_vm0 = vcmask 261120   ;;  %v670_v7 = vld [vmem:[%s771_s2 + $0x1] ss:$0 sm:$0xff] }
  0x14   : > { %v662_v1 = vld [vmem:[%s772_s3] ss:$0 sm:$0xff]  ;;  %v675_v8 = vld [vmem:[%s772_s3 + $0x1] ss:$0 sm:$0xff] }
  0x15   : > { %s417_s28 = sshll.u32 %s207_s27, 5  ;;  %s407_s27 = sshll.u32 %s203_s23, 6 }
  0x16   : > { %s647_s5 = scalar_lea.vmem %s769_s0, %s417_s28  ;;  %s652_s8 = scalar_lea.vmem %s770_s1, %s417_s28 }
  0x17   : > { %v421_v2 = vld [vmem:[%s647_s5] sm:$0xff]   ;;  %v452_v4 = vld [vmem:[%s647_s5 + $0x8] sm:$0xff]   ;;  %v453_v24 = vld [vmem:[%s647_s5 + $0x10] sm:$0xff]   ;;  %s705_s28 = scalar_lea.vmem [#allocation2], %s407_s27 }
  0x18   : > { %v437_v3 = vld [vmem:[%s652_s8] sm:$0xff]   ;;  %v422_v5 = vunpack.c.l.bf16 %v421_v2  ;;  %v423_v9 = vunpack.c.h.bf16 %v421_v2  ;;  %v455_v11 = vld [vmem:[%s652_s8 + $0x8] sm:$0xff]   ;;  %v426_v12 = vunpack.c.l.bf16 %v452_v4  ;;  %v427_v14 = vunpack.c.h.bf16 %v452_v4  ;;  %v456_v25 = vld [vmem:[%s652_s8 + $0x10] sm:$0xff]   ;;  %s326_s6 = sshll.u32 %s705_s28, 4  ;;  %s327_s6 = int_to_ptr.vmem [resolvable:$true] %s326_s6 }
  0x19   : > { %v438_v6 = vunpack.c.l.bf16 %v437_v3  ;;  %v439_v10 = vunpack.c.h.bf16 %v437_v3  ;;  %v442_v13 = vunpack.c.l.bf16 %v455_v11  ;;  %v443_v15 = vunpack.c.h.bf16 %v455_v11  ;;  %v454_v42 = vld [vmem:[%s647_s5 + $0x18] sm:$0xff]   ;;  %s325_s5 = scalar_lea.hbm %s773_s4, %s419_s29 }
  0x1a   : > { %v250_v16 = vmul.f32 %v657_v0, %v422_v5  ;;  %v251_v18 = vmul.f32 %v657_v0, %v423_v9  ;;  %v252_v20 = vmul.f32 %v657_v0, %v426_v12  ;;  %v253_v22 = vmul.f32 %v657_v0, %v427_v14  ;;  %v457_v43 = vld [vmem:[%s652_s8 + $0x18] sm:$0xff]   ;;  %s328_s7 = sshll.u32 %s325_s5, 4  ;;  %s314_s8 = scalar_lea.sflag [#allocation3], %s203_s23  ;;  %s329_s7 = int_to_ptr.hbm [resolvable:$true] %s328_s7 }
  0x1b   : > { %v270_v17 = vmul.f32 %v662_v1, %v438_v6  ;;  %v271_v19 = vmul.f32 %v662_v1, %v439_v10  ;;  %v272_v21 = vmul.f32 %v662_v1, %v442_v13  ;;  %v273_v23 = vmul.f32 %v662_v1, %v443_v15  ;;  %s517_s9 = sshra.s32 %s329_s7, 4  ;;  %s518_s9 = int_to_ptr.hbm [resolvable:$true] %s517_s9 }
  0x1c   : > { %v260_v26 = vadd.f32 %v670_v7, %v250_v16  ;;  %v261_v28 = vadd.f32 %v670_v7, %v251_v18  ;;  %v262_v30 = vadd.f32 %v670_v7, %v252_v20  ;;  %v263_v32 = vadd.f32 %v670_v7, %v253_v22  ;;  %s519_s10 = scalar_lea.hbm %s518_s9, 64  ;;  %p524_p0 = scmp.lt.s32.totalorder %s518_s9, %s773_s4 }
  0x1d   : > { %v280_v27 = vadd.f32 %v675_v8, %v270_v17  ;;  %v281_v29 = vadd.f32 %v675_v8, %v271_v19  ;;  %v282_v31 = vadd.f32 %v675_v8, %v272_v21  ;;  %v283_v33 = vadd.f32 %v675_v8, %v273_v23  ;;  %p520_p11 = scmp.ne.s32.totalorder %s518_s9, %s519_s10  ;;  %p525_p1 = scmp.lt.s32.totalorder %s523_s13, %s519_s10 }
  0x1e   : > { %v430_v36 = vunpack.c.l.bf16 %v453_v24  ;;  %v446_v37 = vunpack.c.l.bf16 %v456_v25  ;;  %v431_v40 = vunpack.c.h.bf16 %v453_v24  ;;  %v447_v41 = vunpack.c.h.bf16 %v456_v25 }
  0x1f   : > { %v288_v34 = vadd.f32 %v280_v27, %v260_v26  ;;  %v289_v35 = vadd.f32 %v281_v29, %v261_v28  ;;  %v290_v38 = vadd.f32 %v282_v31, %v262_v30  ;;  %v291_v39 = vadd.f32 %v283_v33, %v263_v32  ;;  %p521_p12 = pnand %p520_p11, %p632_p5  ;;  %p526_p2 = por %p525_p1, %p524_p0 }
  0x20   : > { %v254_v46 = vmul.f32 %v657_v0, %v430_v36  ;;  %v274_v47 = vmul.f32 %v662_v1, %v446_v37  ;;  %v255_v50 = vmul.f32 %v657_v0, %v431_v40  ;;  %v275_v51 = vmul.f32 %v662_v1, %v447_v41 }
  0x21   : > { %v296_v44 = vmax.f32 %v288_v34, 0.0  ;;  %v297_v45 = vmax.f32 %v289_v35, 0.0  ;;  %v298_v48 = vmax.f32 %v290_v38, 0.0  ;;  %v299_v49 = vmax.f32 %v291_v39, 0.0  ;;  %p522_p13 = pneg %p521_p12 }
  0x22   : > { %v264_v52 = vadd.f32 %v670_v7, %v254_v46  ;;  %v284_v53 = vadd.f32 %v675_v8, %v274_v47  ;;  %v434_v54 = vunpack.c.l.bf16 %v454_v42  ;;  %v450_v55 = vunpack.c.l.bf16 %v457_v43 }
  0x23   : > { %305 = vst.msk [vmem:[%s705_s28] sm:$0xff] %vm304_vm0, %v296_v44  ;;  %v265_v56 = vadd.f32 %v670_v7, %v255_v50  ;;  %v285_v57 = vadd.f32 %v675_v8, %v275_v51  ;;  %v435_v58 = vunpack.c.h.bf16 %v454_v42  ;;  %v451_v59 = vunpack.c.h.bf16 %v457_v43  ;;  %p527_p3 = pnand %p526_p2, %p522_p13 }
  0x24   : > { %306 = vst.msk [vmem:[%s705_s28 + $0x8] sm:$0xff] %vm304_vm0, %v297_v45  ;;  %v292_v60 = vadd.f32 %v284_v53, %v264_v52  ;;  %v256_v61 = vmul.f32 %v657_v0, %v434_v54  ;;  %v276_v62 = vmul.f32 %v662_v1, %v450_v55 }
  0x25   : > { %307 = vst.msk [vmem:[%s705_s28 + $0x10] sm:$0xff] %vm304_vm0, %v298_v48  ;;  %v293_v63 = vadd.f32 %v285_v57, %v265_v56  ;;  %v257_v2 = vmul.f32 %v657_v0, %v435_v58  ;;  %v277_v3 = vmul.f32 %v662_v1, %v451_v59 }
  0x26   : > { %308 = vst.msk [vmem:[%s705_s28 + $0x18] sm:$0xff] %vm304_vm0, %v299_v49  ;;  %v300_v4 = vmax.f32 %v292_v60, 0.0  ;;  %v266_v5 = vadd.f32 %v670_v7, %v256_v61  ;;  %v286_v6 = vadd.f32 %v675_v8, %v276_v62 }
  0x27   : > { %v301_v9 = vmax.f32 %v293_v63, 0.0  ;;  %v267_v10 = vadd.f32 %v670_v7, %v257_v2  ;;  %v287_v0 = vadd.f32 %v675_v8, %v277_v3 }
  0x28   : > { %309 = vst.msk [vmem:[%s705_s28 + $0x20] sm:$0xff] %vm304_vm0, %v300_v4  ;;  %v294_v1 = vadd.f32 %v286_v6, %v266_v5 }
  0x29   : > { %310 = vst.msk [vmem:[%s705_s28 + $0x28] sm:$0xff] %vm304_vm0, %v301_v9  ;;  %v295_v11 = vadd.f32 %v287_v0, %v267_v10 }
  0x2a   : > { %v302_v12 = vmax.f32 %v294_v1, 0.0 }
  0x2b   : > { %v303_v13 = vmax.f32 %v295_v11, 0.0 }
  0x2c   : > { %311 = vst.msk [vmem:[%s705_s28 + $0x30] sm:$0xff] %vm304_vm0, %v302_v12 }
  0x2d   : > { %312 = vst.msk [vmem:[%s705_s28 + $0x38] sm:$0xff] %vm304_vm0, %v303_v13 }
  0x2e   : > { %530 = shalt.err (!%p527_p3)
}
  0x2f   : > { %s567_s22 = smov 128   ;;  %s568_s23 = smov 8  }
  0x30   : > { %458 = dma.vmem_to_hbm [thread:$0]  (%p632_p5), %s327_s6, 1024, %s329_s7, %s314_s8, %s567_s22, %s567_s22, %s568_s23  }
  0x31 PF: > { %p464_p4 = scmp.ge.s32.totalorder %s565_s18, 2  ;;  %s343_s27 = sand.u32 1, %s553_s15  }
  0x32   : > { %s344_s28 = scalar_lea.sflag [#allocation3], %s343_s27 }
  0x33   : > { %p461_p7 = pnand %p464_p4, %p636_p6 }
  0x35   : > { %p462_p8 = pneg %p461_p7 }
  0x37   : > { %548 = dma.done.wait (%p462_p8), %s344_s28, 1024  }
  0x38   : > { %550 = vsyncadd (%p462_p8), %s344_s28, 4294966272  ;;  %p14_p9 = scmp.ge.s32.totalorder %s619_s21, 4   ;;  %s776_s15 = smov %s557_s16 }
  0x39   : > { %s777_s16 = smov %s561_s17  ;;  %s778_s17 = smov %s630_s24 }
  0x3a   : > { %s779_s18 = smov %s619_s21  ;;  %16 = sbr.rel (!%p14_p9) target bundleno = 3 (0x3), region = 74 }
  0x3f   :  { %350 = vsyncpa [#allocation3], 1 }
  0x40   :  { %352 = vsyncpa [#allocation3 + $0x1], 1 }

// kernel: block_forward.3
= control target key start
LH: loop header
LB: loop body
LE: loop exit
PB: predicated region body
PF: predicated region fallthrough
CT: control target
= control target key end

     0   :  { %s2517_s24 = smov 0   ;;  %s2519_s25 = smov 0   ;;  %s3096_s0 = inlined_call_operand.vmem [shape: bf16[2,9,9,4], index: 0, kind: input, shape index: {}]   ;;  %s3097_s1 = inlined_call_operand.vmem [shape: bf16[2,9,9,4], index: 1, kind: input, shape index: {}]   ;;  %s3098_s2 = inlined_call_operand.vmem [shape: bf16[2,9,9,4], index: 2, kind: input, shape index: {}]   ;;  %s3099_s3 = inlined_call_operand.vmem [shape: bf16[2,9,9,4], index: 3, kind: input, shape index: {}]   ;;  %s3100_s4 = inlined_call_operand.vmem [shape: bf16[9,4,256], index: 4, kind: input, shape index: {}]   ;;  %s3101_s5 = inlined_call_operand.vmem [shape: bf16[2,8,8,32], index: 5, kind: output, shape index: {0}]   ;;  %s3102_s6 = inlined_call_operand.vmem [shape: bf16[2,8,8,32], index: 6, kind: output, shape index: {1}]   ;;  %s3103_s7 = inlined_call_operand.vmem [shape: f32[2,1,4,128], index: 7, kind: output, shape index: {2}]  }
   0x1   :  { %s2521_s26 = smov 0  }
   0x2 LB: > { %s30_s27 = sadd.s32 1, %s2471_s25  ;;  %p2180_p0 = scmp.ge.s32.totalorder %s2475_s26, 1  ;;  %s2475_s26 = sphi %s2521_s26, %s18_s26   ;;  %s2471_s25 = sphi %s2519_s25, %s3107_s25   ;;  %s2467_s24 = sphi %s2517_s24, %s3106_s24  }
   0x3   : > { %p32_p1 = scmp.ge.s32.totalorder %s30_s27, 2  ;;  %p290_p2 = scmp.lt.s32.totalorder %s2475_s26, 3 }
   0x5   : > { %s3109_s27 = smov (%p32_p1, %s30_s27), 0  ;;  %p291_p3 = pnand %p2180_p0, %p290_p2 }
   0x6   : > { %p357_p4 = scmp.lt.s32.totalorder (!%p291_p3), %s2467_s24, 1 }
   0x7   : > { %294 = sbr.rel (%p291_p3) target bundleno = 461 (0x1cd), region = 40 }
   0xc   : > { %v2190_v0 = vld [vmem:[%s3100_s4 + $0x4] sm:$0xf]  ;;  %s3111_s24 = smov (!%p357_p4, %s2467_s24), 1  ;;  %vm467_vm0 = vcmask 1041408   ;;  %v417_v1 = vld [vmem:[%s3100_s4] sm:$0xf] }
   0xd   : > { %451 = vst [vmem:[#allocation1] ss:$4 sm:$0xff] %v2190_v0  ;;  %s2541_s30 = smul.u32 72, %s3111_s24  ;;  %vm454_vm1 = vcmask 31744   ;;  %v2239_v12 = vld [vmem:[%s3100_s4 + $0x8] sm:$0xf] }
   0xe   : > { %v2248_v23 = vld [vmem:[%s3100_s4 + $0xc] sm:$0xf]  ;;  %vm644_vm2 = vsmask.f32 3328  ;;  %vm645_vm3 = vsmask.f32 7440 }
   0xf   : > { %s2550_s12 = scalar_lea.vmem %s3097_s1, %s2541_s30  ;;  %s2562_s15 = scalar_lea.vmem %s3096_s0, %s2541_s30  ;;  %v2273_v47 = vld [vmem:[%s3100_s4 + $0x10] sm:$0xf]  ;;  %vm2595_vm4 = vmor %vm644_vm2, %vm645_vm3  ;;  %vm1853_vm5 = vcmask 257024   ;;  %vm1946_vm6 = vcmask 1040384   ;;  %vm1949_vm7 = vcmask 1042432  }
  0x10   : > { %v2201_v2 = vld [vmem:[%s2550_s12 + $0x20] sm:$0xf]  ;;  %v2408_v3 = vld [vmem:[%s2550_s12 + $0x24] sm:$0xf0]  ;;  %v2205_v24 = vld [vmem:[%s2550_s12 + $0x30] sm:$0xf]  ;;  %s2667_s10 = scalar_lea.vmem %s3098_s2, %s2541_s30  ;;  %s2673_s14 = scalar_lea.vmem %s3099_s3, %s2541_s30 }
  0x11   : > { %v2193_v4 = vld [vmem:[%s2550_s12] sm:$0xf]  ;;  %v2202_v9 = vor.u32 %v2408_v3, %v2201_v2  ;;  %v2406_v10 = vld [vmem:[%s2550_s12 + $0x4] sm:$0xf0]  ;;  %v2409_v25 = vld [vmem:[%s2550_s12 + $0x34] sm:$0xf0] }
  0x12   : > { %v2194_v11 = vor.u32 %v2406_v10, %v2193_v4  ;;  %v628_v13 = vld [vmem:[%s2562_s15] sm:$0xf]  ;;  %v630_v14 = vld [vmem:[%s2562_s15 + $0x8] sm:$0xf]  ;;  %v2197_v26 = vld [vmem:[%s2550_s12 + $0x10] sm:$0xf]  ;;  %v2206_v38 = vor.u32 %v2409_v25, %v2205_v24 }
  0x13   : > { %v648_v19 = vshrl.u32 %v628_v13, 16  ;;  %v651_v20 = vshll.u32 %v628_v13, 16  ;;  %v662_v21 = vshrl.u32 %v630_v14, 16  ;;  %v665_v22 = vshll.u32 %v630_v14, 16  ;;  %v2407_v27 = vld [vmem:[%s2550_s12 + $0x14] sm:$0xf0] }
  0x14   : > { %v452_v5 = vld.sshfl [vmem:[#allocation1] sm:$0xff pattern:$0x73625140]  ;;  %v453_v6 = vld.sshfl [vmem:[#allocation1 + $0x8] sm:$0xff pattern:$0x73625140]  ;;  %v2198_v39 = vor.u32 %v2407_v27, %v2197_v26 }
  0x15   : > { %v468_v7 = vsel %vm467_vm0, %v452_v5, 0  ;;  %v470_v8 = vsel %vm467_vm0, %v453_v6, 0  ;;  %551 = vst [vmem:[#allocation1] ss:$4 sm:$0xff] %v417_v1  ;;  %v629_v28 = vld [vmem:[%s2562_s15 + $0x4] sm:$0x1] }
  0x16   : > { %2426 = vmatpush.bf16.msra.mxu2 %v468_v7  ;;  %2427 = vmatpush.bf16.msra.mxu3 %v470_v8  ;;  %v631_v29 = vld [vmem:[%s2562_s15 + $0xc] sm:$0x1]  ;;  %v650_v30 = vrot.slane %v648_v19, 4  ;;  %v653_v31 = vrot.slane %v651_v20, 5  ;;  %v664_v32 = vrot.slane %v662_v21, 4  ;;  %v667_v33 = vrot.slane %v665_v22, 5 }
  0x17   : > { %479 = vmatpush.bf16.msra.mxu0 %v468_v7  ;;  %508 = vmatpush.bf16.msra.mxu1 %v470_v8  ;;  %v657_v40 = vshll.u32 %v629_v28, 16  ;;  %v671_v41 = vshll.u32 %v631_v29, 16  ;;  %v632_v44 = vld [vmem:[%s2562_s15 + $0x10] sm:$0xf]  ;;  %v634_v48 = vld [vmem:[%s2562_s15 + $0x18] sm:$0xf] }
  0x18   : > { %v654_v42 = vor.u32 %v653_v31, %v650_v30  ;;  %v668_v43 = vor.u32 %v667_v33, %v664_v32  ;;  %v676_v51 = vshrl.u32 %v632_v44, 16  ;;  %v679_v52 = vshll.u32 %v632_v44, 16  ;;  %v2217_v62 = vld [vmem:[%s2562_s15] sm:$0xf]  ;;  %v633_v63 = vld [vmem:[%s2562_s15 + $0x14] sm:$0x1] }
  0x19   : > { %2209 = vmatmul.msk.bf16.vlgmr.msra.gmra.mxu2 %vm454_vm1, %v2202_v9  ;;  %2213 = vmatmul.msk.bf16.vlgmr.msra.gmra.mxu3 %vm454_vm1, %v2202_v9  ;;  %v659_v45 = vrot.slane %v657_v40, 5  ;;  %v673_v46 = vrot.slane %v671_v41, 5  ;;  %v690_v58 = vshrl.u32 %v634_v48, 16  ;;  %v693_v59 = vshll.u32 %v634_v48, 16  ;;  %v635_v0 = vld [vmem:[%s2562_s15 + $0x1c] sm:$0x1] }
  0x1a   : > { %2207 = vmatmul.msk.bf16.vlgmr.msra.gmra.mxu0 %vm454_vm1, %v2194_v11  ;;  %2211 = vmatmul.msk.bf16.vlgmr.msra.gmra.mxu1 %vm454_vm1, %v2194_v11  ;;  %v655_v49 = vrot.slane %v654_v42, 4  ;;  %v669_v50 = vrot.slane %v668_v43, 4  ;;  %v2402_v1 = vld [vmem:[%s2562_s15 + $0x4] sm:$0xf0]  ;;  %v678_v2 = vrot.slane %v676_v51, 4  ;;  %v681_v3 = vrot.slane %v679_v52, 5 }
  0x1b   : > { %v692_v4 = vrot.slane %v690_v58, 4  ;;  %v695_v5 = vrot.slane %v693_v59, 5  ;;  %v685_v8 = vshll.u32 %v633_v63, 16  ;;  %v699_v9 = vshll.u32 %v635_v0, 16  ;;  %v636_v22 = vld [vmem:[%s2562_s15 + $0x20] sm:$0xf] }
  0x1c   : > { %v552_v15 = vld.sshfl [vmem:[#allocation1] sm:$0xff pattern:$0x73625140]  ;;  %v553_v16 = vld.sshfl [vmem:[#allocation1 + $0x8] sm:$0xff pattern:$0x73625140]  ;;  %v660_v60 = vsel %vm2595_vm4, %v655_v49, %v659_v45  ;;  %v674_v61 = vsel %vm2595_vm4, %v669_v50, %v673_v46  ;;  %v2218_v10 = vor.u32 %v2402_v1, %v2217_v62 }
  0x1d   : > { %v566_v17 = vsel %vm467_vm0, %v552_v15, 0  ;;  %v568_v18 = vsel %vm467_vm0, %v553_v16, 0  ;;  %774 = vst [vmem:[#allocation1] ss:$4 sm:$0xff] %v2239_v12  ;;  %v761_v6 = vunpack.c.l.b16 %v660_v60  ;;  %v762_v7 = vunpack.c.l.b16 %v674_v61  ;;  %v2221_v30 = vld [vmem:[%s2562_s15 + $0x10] sm:$0xf] }
  0x1e   : > { %577 = vmatpush.bf16.msrb.mxu2 %v566_v17  ;;  %606 = vmatpush.bf16.msrb.mxu3 %v568_v18  ;;  %v682_v15 = vor.u32 %v681_v3, %v678_v2  ;;  %v696_v16 = vor.u32 %v695_v5, %v692_v4  ;;  %v687_v19 = vrot.slane %v685_v8, 5  ;;  %v701_v21 = vrot.slane %v699_v9, 5  ;;  %v2403_v33 = vld [vmem:[%s2562_s15 + $0x14] sm:$0xf0]  ;;  %v640_v50 = vld [vmem:[%s2562_s15 + $0x30] sm:$0xf] }
  0x1f   : > { %v769_v17 = vpack.c.b16 %v762_v7, %v761_v6  ;;  %v704_v26 = vshrl.u32 %v636_v22, 16  ;;  %v707_v27 = vshll.u32 %v636_v22, 16  ;;  %v2222_v40 = vor.u32 %v2403_v33, %v2221_v30  ;;  %v642_v51 = vld [vmem:[%s2562_s15 + $0x38] sm:$0xf]  ;;  %v2225_v59 = vld [vmem:[%s2562_s15 + $0x20] sm:$0xf] }
  0x20   : > { %v683_v18 = vrot.slane %v682_v15, 4  ;;  %v697_v20 = vrot.slane %v696_v16, 4  ;;  %v749_v58 = vshll.u32 %v642_v51, 16  ;;  %v2404_v60 = vld [vmem:[%s2562_s15 + $0x24] sm:$0xf0]  ;;  %s2189_s28 = sshll.u32 %s3111_s24, 2 }
  0x21   : > { %v641_v3 = vld [vmem:[%s2562_s15 + $0x34] sm:$0x1]  ;;  %v643_v4 = vld [vmem:[%s2562_s15 + $0x3c] sm:$0x1]  ;;  %v2226_v5 = vor.u32 %v2404_v60, %v2225_v59  ;;  %v2251_v33 = vld [vmem:[%s2667_s10] sm:$0xf]  ;;  %s403_s9 = scalar_lea.vmem %s3103_s7, %s2189_s28 }
  0x22   : > { %v688_v24 = vsel %vm2595_vm4, %v683_v18, %v687_v19  ;;  %v702_v25 = vsel %vm2595_vm4, %v697_v20, %v701_v21  ;;  %v751_v2 = vrot.slane %v749_v58, 5  ;;  %v741_v8 = vshll.u32 %v641_v3, 16  ;;  %v2315_v18 = vld [vmem:[%s3100_s4 + $0x18] sm:$0xf]  ;;  %v2229_v19 = vld [vmem:[%s2562_s15 + $0x30] sm:$0xf] }
  0x23   : > { %v763_v31 = vunpack.c.l.b16 %v688_v24  ;;  %v764_v32 = vunpack.c.l.b16 %v702_v25  ;;  %v2405_v20 = vld [vmem:[%s2562_s15 + $0x34] sm:$0xf0] }
  0x24   : > { %v775_v34 = vld.sshfl [vmem:[#allocation1] sm:$0xff pattern:$0x73625140]  ;;  %v776_v35 = vld.sshfl [vmem:[#allocation1 + $0x8] sm:$0xff pattern:$0x73625140] }
  0x25   : > { %v789_v36 = vsel %vm467_vm0, %v775_v34, 0  ;;  %v791_v37 = vsel %vm467_vm0, %v776_v35, 0  ;;  %900 = vst [vmem:[#allocation1] ss:$4 sm:$0xff] %v2248_v23  ;;  %v638_v23 = vld [vmem:[%s2562_s15 + $0x28] sm:$0xf]  ;;  %v770_v41 = vpack.c.b16 %v764_v32, %v763_v31 }
  0x26   : > { %800 = vmatpush.bf16.msrb.mxu0 %v789_v36  ;;  %829 = vmatpush.bf16.msrb.mxu1 %v791_v37  ;;  %v718_v28 = vshrl.u32 %v638_v23, 16  ;;  %v721_v29 = vshll.u32 %v638_v23, 16  ;;  %v706_v34 = vrot.slane %v704_v26, 4  ;;  %v709_v35 = vrot.slane %v707_v27, 5 }
  0x27   : > { %v2230_v27 = vor.u32 %v2405_v20, %v2229_v19  ;;  %v1123_v19 = vld [vmem:[%s2667_s10 + $0x10] sm:$0xf] }
  0x28   : > { %v720_v36 = vrot.slane %v718_v28, 4  ;;  %v723_v37 = vrot.slane %v721_v29, 5  ;;  %v710_v42 = vor.u32 %v709_v35, %v706_v34  ;;  %v2410_v34 = vld [vmem:[%s2667_s10 + $0x4] sm:$0xf0]  ;;  %v2276_v35 = vld [vmem:[%s2673_s14] sm:$0xf] }
  0x29   : > { %2210 = vmatmul.msk.bf16.gmra.mxu2 %vm454_vm1, %v2206_v38  ;;  %2214 = vmatmul.msk.bf16.gmra.mxu3 %vm454_vm1, %v2206_v38  ;;  %v637_v38 = vld [vmem:[%s2562_s15 + $0x24] sm:$0x1] }
  0x2a   : > { %2208 = vmatmul.msk.bf16.gmra.mxu0 %vm454_vm1, %v2198_v39  ;;  %2212 = vmatmul.msk.bf16.gmra.mxu1 %vm454_vm1, %v2198_v39  ;;  %v639_v39 = vld [vmem:[%s2562_s15 + $0x2c] sm:$0x1]  ;;  %v713_v43 = vshll.u32 %v637_v38, 16  ;;  %v724_v44 = vor.u32 %v723_v37, %v720_v36  ;;  %v711_v46 = vrot.slane %v710_v42, 4  ;;  %v2414_v36 = vld [vmem:[%s2673_s14 + $0x4] sm:$0xf0]  ;;  %v2252_v37 = vor.u32 %v2410_v34, %v2251_v33 }
  0x2b   : > { %v727_v45 = vshll.u32 %v639_v39, 16  ;;  %v2277_v38 = vor.u32 %v2414_v36, %v2276_v35  ;;  %v2255_v39 = vld [vmem:[%s2667_s10 + $0x10] sm:$0xf]  ;;  %v2415_v42 = vld [vmem:[%s2673_s14 + $0x14] sm:$0xf0]  ;;  %v1167_v33 = vshll.u32 %v1123_v19, 16 }
  0x2c   : > { %v901_v54 = vld.sshfl [vmem:[#allocation1] sm:$0xff pattern:$0x73625140]  ;;  %v902_v55 = vld.sshfl [vmem:[#allocation1 + $0x8] sm:$0xff pattern:$0x73625140] }
  0x2d   : > { %v915_v56 = vsel %vm467_vm0, %v901_v54, 0  ;;  %v917_v57 = vsel %vm467_vm0, %v902_v55, 0  ;;  %1026 = vst [vmem:[#allocation1] ss:$4 sm:$0xff] %v2273_v47  ;;  %v715_v47 = vrot.slane %v713_v43, 5  ;;  %v725_v48 = vrot.slane %v724_v44, 4 }
  0x2e   : > { %926 = vmatpush.bf16.msra.mxu2 %v915_v56  ;;  %955 = vmatpush.bf16.msra.mxu3 %v917_v57  ;;  %v729_v49 = vrot.slane %v727_v45, 5  ;;  %v732_v55 = vshrl.u32 %v640_v50, 16  ;;  %v735_v56 = vshll.u32 %v640_v50, 16  ;;  %v746_v57 = vshrl.u32 %v642_v51, 16  ;;  %v2259_v45 = vld [vmem:[%s2667_s10 + $0x20] sm:$0xf] }
  0x2f   : > { %v716_v52 = vsel %vm2595_vm4, %v711_v46, %v715_v47  ;;  %v2412_v46 = vld [vmem:[%s2667_s10 + $0x24] sm:$0xf0]  ;;  %v2284_v47 = vld [vmem:[%s2673_s14 + $0x20] sm:$0xf] }
  0x30   : > { %v730_v54 = vsel %vm2595_vm4, %v725_v48, %v729_v49  ;;  %v765_v61 = vunpack.c.l.b16 %v716_v52  ;;  %v734_v63 = vrot.slane %v732_v55, 4  ;;  %v737_v0 = vrot.slane %v735_v56, 5  ;;  %v2416_v48 = vld [vmem:[%s2673_s14 + $0x24] sm:$0xf0] }
  0x31   : > { %v766_v62 = vunpack.c.l.b16 %v730_v54  ;;  %v748_v1 = vrot.slane %v746_v57, 4  ;;  %v2260_v49 = vor.u32 %v2412_v46, %v2259_v45  ;;  %v2285_v50 = vor.u32 %v2416_v48, %v2284_v47  ;;  %v1119_v54 = vld [vmem:[%s2667_s10] sm:$0xf]  ;;  %v1121_v55 = vld [vmem:[%s2667_s10 + $0x8] sm:$0xf] }
  0x32   : > { %v738_v7 = vor.u32 %v737_v0, %v734_v63  ;;  %v1136_v58 = vshrl.u32 %v1119_v54, 16  ;;  %v1139_v59 = vshll.u32 %v1119_v54, 16  ;;  %v1150_v60 = vshrl.u32 %v1121_v55, 16  ;;  %v2348_v0 = vld [vmem:[%s3100_s4 + $0x1c] sm:$0xf] }
  0x33   : > { %v771_v6 = vpack.c.b16 %v766_v62, %v765_v61  ;;  %v752_v9 = vor.u32 %v751_v2, %v748_v1  ;;  %v1153_v61 = vshll.u32 %v1121_v55, 16  ;;  %v2263_v1 = vld [vmem:[%s2667_s10 + $0x30] sm:$0xf]  ;;  %v1126_v45 = vld [vmem:[%s2667_s10 + $0x1c] sm:$0x1] }
  0x34   : > { %v1027_v11 = vld.sshfl [vmem:[#allocation1] sm:$0xff pattern:$0x73625140]  ;;  %v1028_v12 = vld.sshfl [vmem:[#allocation1 + $0x8] sm:$0xff pattern:$0x73625140] }
  0x35   : > { %v1041_v13 = vsel %vm467_vm0, %v1027_v11, 0  ;;  %v1043_v14 = vsel %vm467_vm0, %v1028_v12, 0  ;;  %v2298_v11 = vld [vmem:[%s3100_s4 + $0x14] sm:$0xf]  ;;  %v739_v12 = vrot.slane %v738_v7, 4  ;;  %v1138_v2 = vrot.slane %v1136_v58, 4 }
  0x36   : > { %1052 = vmatpush.bf16.msra.mxu0 %v1041_v13  ;;  %1081 = vmatpush.bf16.msra.mxu1 %v1043_v14  ;;  %v743_v13 = vrot.slane %v741_v8, 5  ;;  %v753_v14 = vrot.slane %v752_v9, 4  ;;  %1262 = vst [vmem:[#allocation1] ss:$4 sm:$0xff] %v2298_v11  ;;  %v1141_v3 = vrot.slane %v1139_v59, 5  ;;  %v1155_v7 = vrot.slane %v1153_v61, 5 }
  0x37   : > { %v2288_v8 = vld [vmem:[%s2673_s14 + $0x30] sm:$0xf]  ;;  %v2417_v9 = vld [vmem:[%s2673_s14 + $0x34] sm:$0xf0]  ;;  %v2318_v59 = vld [vmem:[%s2562_s15 + $0x8] sm:$0xf] }
  0x38   : > { %v744_v16 = vsel %vm2595_vm4, %v739_v12, %v743_v13 }
  0x39   : > { %2231 = vmatmul.msk.bf16.vlgmr.msrb.gmra.mxu2 %vm454_vm1, %v2218_v10  ;;  %2235 = vmatmul.msk.bf16.vlgmr.msrb.gmra.mxu3 %vm454_vm1, %v2218_v10  ;;  %v755_v10 = vshll.u32 %v643_v4, 16  ;;  %v767_v21 = vunpack.c.l.b16 %v744_v16  ;;  %v2413_v4 = vld [vmem:[%s2667_s10 + $0x34] sm:$0xf0]  ;;  %v2289_v16 = vor.u32 %v2417_v9, %v2288_v8 }
  0x3a   : > { %2240 = vmatmul.msk.bf16.vlgmr.msrb.gmra.mxu0 %vm454_vm1, %v769_v17  ;;  %2244 = vmatmul.msk.bf16.vlgmr.msrb.gmra.mxu1 %vm454_vm1, %v769_v17  ;;  %v2264_v13 = vor.u32 %v2413_v4, %v2263_v1 }
  0x3b   : > { %v757_v15 = vrot.slane %v755_v10, 5  ;;  %v1122_v10 = vld [vmem:[%s2667_s10 + $0xc] sm:$0x1] }
  0x3d   : > { %v758_v17 = vsel %vm2595_vm4, %v753_v14, %v757_v15  ;;  %v1263_v23 = vld.sshfl [vmem:[#allocation1] sm:$0xff pattern:$0x73625140]  ;;  %v1264_v24 = vld.sshfl [vmem:[#allocation1 + $0x8] sm:$0xff pattern:$0x73625140]  ;;  %v1142_v14 = vor.u32 %v1141_v3, %v1138_v2 }
  0x3e   : > { %v768_v22 = vunpack.c.l.b16 %v758_v17  ;;  %v1277_v25 = vsel %vm467_vm0, %v1263_v23, 0  ;;  %v1279_v26 = vsel %vm467_vm0, %v1264_v24, 0  ;;  %1390 = vst [vmem:[#allocation1] ss:$4 sm:$0xff] %v2315_v18  ;;  %v1159_v18 = vshll.u32 %v1122_v10, 16 }
  0x3f   : > { %1288 = vmatpush.bf16.msrb.mxu2 %v1277_v25  ;;  %1317 = vmatpush.bf16.msrb.mxu3 %v1279_v26  ;;  %v2389_v26 = vld [vmem:[%s3100_s4 + $0x20] sm:$0xf]  ;;  %v1187_v2 = vshll.u32 %v1126_v45, 16  ;;  %v2322_v45 = vld [vmem:[%s2562_s15 + $0x18] sm:$0xf] }
  0x40   : > { %v772_v28 = vpack.c.b16 %v768_v22, %v767_v21 }
  0x45   : > { %v1391_v29 = vld.sshfl [vmem:[#allocation1] sm:$0xff pattern:$0x73625140]  ;;  %v1392_v30 = vld.sshfl [vmem:[#allocation1 + $0x8] sm:$0xff pattern:$0x73625140] }
  0x46   : > { %v1405_v31 = vsel %vm467_vm0, %v1391_v29, 0  ;;  %v1407_v32 = vsel %vm467_vm0, %v1392_v30, 0  ;;  %1516 = vst [vmem:[#allocation1] ss:$4 sm:$0xff] %v2348_v0 }
  0x47   : > { %1416 = vmatpush.bf16.msrb.mxu0 %v1405_v31  ;;  %1445 = vmatpush.bf16.msrb.mxu1 %v1407_v32  ;;  %v1161_v31 = vrot.slane %v1159_v18, 5  ;;  %v1164_v32 = vshrl.u32 %v1123_v19, 16 }
  0x49   : > { %2232 = vmatmul.msk.bf16.gmra.mxu2 %vm454_vm1, %v2222_v40  ;;  %2236 = vmatmul.msk.bf16.gmra.mxu3 %vm454_vm1, %v2222_v40  ;;  %v2411_v40 = vld [vmem:[%s2667_s10 + $0x14] sm:$0xf0] }
  0x4a   : > { %2241 = vmatmul.msk.bf16.gmra.mxu0 %vm454_vm1, %v770_v41  ;;  %2245 = vmatmul.msk.bf16.gmra.mxu1 %vm454_vm1, %v770_v41  ;;  %v2280_v41 = vld [vmem:[%s2673_s14 + $0x10] sm:$0xf]  ;;  %v2256_v43 = vor.u32 %v2411_v40, %v2255_v39  ;;  %v1166_v40 = vrot.slane %v1164_v32, 4 }
  0x4b   : > { %v2281_v44 = vor.u32 %v2415_v42, %v2280_v41  ;;  %v1169_v41 = vrot.slane %v1167_v33, 5 }
  0x4d   : > { %v1517_v22 = vld.sshfl [vmem:[#allocation1] sm:$0xff pattern:$0x73625140]  ;;  %v1518_v23 = vld.sshfl [vmem:[#allocation1 + $0x8] sm:$0xff pattern:$0x73625140]  ;;  %v1170_v61 = vor.u32 %v1169_v41, %v1166_v40 }
  0x4e   : > { %v1531_v24 = vsel %vm467_vm0, %v1517_v22, 0  ;;  %v1533_v25 = vsel %vm467_vm0, %v1518_v23, 0  ;;  %1752 = vst [vmem:[#allocation1] ss:$4 sm:$0xff] %v2389_v26  ;;  %v1128_v41 = vld [vmem:[%s2667_s10 + $0x24] sm:$0x1] }
  0x4f   : > { %v1171_v9 = vrot.slane %v1170_v61, 4 }
  0x55   : > { %v1753_v48 = vld.sshfl [vmem:[#allocation1] sm:$0xff pattern:$0x73625140] }
  0x56   : > { %v1767_v55 = vsel %vm467_vm0, %v1753_v48, 0 }
  0x59   : > { %2233 = vmatmul.msk.bf16.gmra.mxu2 %vm454_vm1, %v2226_v5  ;;  %2237 = vmatmul.msk.bf16.gmra.mxu3 %vm454_vm1, %v2226_v5  ;;  %v1120_v5 = vld [vmem:[%s2667_s10 + $0x4] sm:$0x1] }
  0x5a   : > { %2242 = vmatmul.msk.bf16.gmra.mxu0 %vm454_vm1, %v771_v6  ;;  %2246 = vmatmul.msk.bf16.gmra.mxu1 %vm454_vm1, %v771_v6  ;;  %v1152_v6 = vrot.slane %v1150_v60, 4  ;;  %v1145_v15 = vshll.u32 %v1120_v5, 16  ;;  %v2418_v60 = vld [vmem:[%s2562_s15 + $0xc] sm:$0xf0] }
  0x5c   : > { %v1156_v17 = vor.u32 %v1155_v7, %v1152_v6  ;;  %v1147_v29 = vrot.slane %v1145_v15, 5  ;;  %v2319_v6 = vor.u32 %v2418_v60, %v2318_v59  ;;  %v1127_v15 = vld [vmem:[%s2667_s10 + $0x20] sm:$0xf] }
  0x5d   : > { %v1192_v23 = vshrl.u32 %v1127_v15, 16 }
  0x5e   : > { %v1157_v30 = vrot.slane %v1156_v17, 4 }
  0x60   : > { %v1162_v39 = vsel %vm2595_vm4, %v1157_v30, %v1161_v31 }
  0x61   : > { %v1250_v54 = vunpack.c.l.b16 %v1162_v39 }
  0x69   : > { %2234 = vmatmul.msk.bf16.gmra.mxu2 %vm454_vm1, %v2230_v27  ;;  %2238 = vmatmul.msk.bf16.gmra.mxu3 %vm454_vm1, %v2230_v27  ;;  %v1125_v27 = vld [vmem:[%s2667_s10 + $0x18] sm:$0xf] }
  0x6a   : > { %2243 = vmatmul.msk.bf16.gmra.mxu0 %vm454_vm1, %v772_v28  ;;  %2247 = vmatmul.msk.bf16.gmra.mxu1 %vm454_vm1, %v772_v28  ;;  %v1143_v28 = vrot.slane %v1142_v14, 4  ;;  %v1178_v34 = vshrl.u32 %v1125_v27, 16  ;;  %v1181_v35 = vshll.u32 %v1125_v27, 16  ;;  %v1189_v14 = vrot.slane %v1187_v2, 5 }
  0x6c   : > { %v1180_v46 = vrot.slane %v1178_v34, 4  ;;  %v1183_v47 = vrot.slane %v1181_v35, 5  ;;  %v1194_v35 = vrot.slane %v1192_v23, 4 }
  0x6e   : > { %v1184_v1 = vor.u32 %v1183_v47, %v1180_v46  ;;  %v2419_v46 = vld [vmem:[%s2562_s15 + $0x1c] sm:$0xf0] }
  0x6f   : > { %v2323_v59 = vor.u32 %v2419_v46, %v2322_v45 }
  0x79   : > { %2265 = vmatmul.msk.bf16.vlgmr.msra.gmra.mxu2 %vm454_vm1, %v2252_v37  ;;  %2269 = vmatmul.msk.bf16.vlgmr.msra.gmra.mxu3 %vm454_vm1, %v2252_v37 }
  0x7a   : > { %2290 = vmatmul.msk.bf16.vlgmr.msra.gmra.mxu0 %vm454_vm1, %v2277_v38  ;;  %2294 = vmatmul.msk.bf16.vlgmr.msra.gmra.mxu1 %vm454_vm1, %v2277_v38  ;;  %v1148_v38 = vsel %vm2595_vm4, %v1143_v28, %v1147_v29 }
  0x7b   : > { %1542 = vmatpush.bf16.msra.mxu2 %v1531_v24  ;;  %1571 = vmatpush.bf16.msra.mxu3 %v1533_v25  ;;  %v1195_v24 = vshll.u32 %v1127_v15, 16 }
  0x7c   : > { %1778 = vmatpush.bf16.msra.mxu0 %v1767_v55  ;;  %v1201_v55 = vshll.u32 %v1128_v41, 16 }
  0x89   : > { %2266 = vmatmul.msk.bf16.gmra.mxu2 %vm454_vm1, %v2256_v43  ;;  %2270 = vmatmul.msk.bf16.gmra.mxu3 %vm454_vm1, %v2256_v43 }
  0x8a   : > { %2291 = vmatmul.msk.bf16.gmra.mxu0 %vm454_vm1, %v2281_v44  ;;  %2295 = vmatmul.msk.bf16.gmra.mxu1 %vm454_vm1, %v2281_v44  ;;  %v1124_v44 = vld [vmem:[%s2667_s10 + $0x14] sm:$0x1] }
  0x8b   : > { %v1173_v0 = vshll.u32 %v1124_v44, 16  ;;  %v1130_v44 = vld [vmem:[%s2667_s10 + $0x2c] sm:$0x1] }
  0x8d   : > { %v1175_v10 = vrot.slane %v1173_v0, 5 }
  0x8f   : > { %v1176_v17 = vsel %vm2595_vm4, %v1171_v9, %v1175_v10 }
  0x90   : > { %v1251_v32 = vunpack.c.l.b16 %v1176_v17 }
  0x97   : > { %v2695_v51 = vpop.f32.mrf.mxu0  ;;  %v2697_v52 = vpop.f32.mrf.mxu1 }
  0x99   : > { %2267 = vmatmul.msk.bf16.gmra.mxu2 %vm454_vm1, %v2260_v49  ;;  %2271 = vmatmul.msk.bf16.gmra.mxu3 %vm454_vm1, %v2260_v49  ;;  %v1754_v49 = vld.sshfl [vmem:[#allocation1 + $0x8] sm:$0xff pattern:$0x73625140] }
  0x9a   : > { %2292 = vmatmul.msk.bf16.gmra.mxu0 %vm454_vm1, %v2285_v50  ;;  %2296 = vmatmul.msk.bf16.gmra.mxu1 %vm454_vm1, %v2285_v50  ;;  %v1249_v50 = vunpack.c.l.b16 %v1148_v38  ;;  %v1769_v58 = vsel %vm467_vm0, %v1754_v49, 0  ;;  %v1197_v38 = vrot.slane %v1195_v24, 5 }
  0x9b   : > { %1807 = vmatpush.bf16.msra.mxu1 %v1769_v58  ;;  %v1215_v58 = vshll.u32 %v1130_v44, 16 }
  0x9c   : > { %v2705_v56 = vpop.f32.mrf.mxu2  ;;  %v2707_v57 = vpop.f32.mrf.mxu3  ;;  %v1257_v5 = vpack.c.b16 %v1250_v54, %v1249_v50 }
  0x9f   : > { %v2709_v62 = vpop.f32.mrf.mxu0  ;;  %v2711_v63 = vpop.f32.mrf.mxu1 }
  0xa4   : > { %v2722_v11 = vpop.f32.mrf.mxu2  ;;  %v2724_v12 = vpop.f32.mrf.mxu3 }
  0xa7   : > { %v2727_v20 = vpop.f32.mrf.mxu0  ;;  %v2729_v21 = vpop.f32.mrf.mxu1 }
  0xa9   : > { %2268 = vmatmul.msk.bf16.gmra.mxu2 %vm454_vm1, %v2264_v13  ;;  %2272 = vmatmul.msk.bf16.gmra.mxu3 %vm454_vm1, %v2264_v13  ;;  %v1185_v13 = vrot.slane %v1184_v1, 4 }
  0xaa   : > { %2293 = vmatmul.msk.bf16.gmra.mxu0 %vm454_vm1, %v2289_v16  ;;  %2297 = vmatmul.msk.bf16.gmra.mxu1 %vm454_vm1, %v2289_v16  ;;  %v1129_v16 = vld [vmem:[%s2667_s10 + $0x28] sm:$0xf] }
  0xab   : > { %v1190_v18 = vsel %vm2595_vm4, %v1185_v13, %v1189_v14  ;;  %v1206_v25 = vshrl.u32 %v1129_v16, 16  ;;  %v1209_v26 = vshll.u32 %v1129_v16, 16 }
  0xac   : > { %v2741_v36 = vpop.f32.mrf.mxu2  ;;  %v2743_v37 = vpop.f32.mrf.mxu3  ;;  %v1252_v33 = vunpack.c.l.b16 %v1190_v18 }
  0xad   : > { %v1208_v39 = vrot.slane %v1206_v25, 4  ;;  %v1211_v40 = vrot.slane %v1209_v26, 5  ;;  %v2326_v26 = vld [vmem:[%s2562_s15 + $0x28] sm:$0xf] }
  0xae   : > { %v1258_v48 = vpack.c.b16 %v1252_v33, %v1251_v32  ;;  %v1132_v33 = vld [vmem:[%s2667_s10 + $0x34] sm:$0x1] }
  0xaf   : > { %v2749_v42 = vpop.f32.mrf.mxu0  ;;  %v2751_v43 = vpop.f32.mrf.mxu1  ;;  %v1212_v49 = vor.u32 %v1211_v40, %v1208_v39 }
  0xb4   : > { %v2759_v3 = vpop.f32.mrf.mxu2  ;;  %v2761_v4 = vpop.f32.mrf.mxu3 }
  0xb7   : > { %v802_v7 = vpop.f32.mrf.mxu0  ;;  %v831_v8 = vpop.f32.mrf.mxu1 }
  0xb9   : > { %2299 = vmatmul.msk.bf16.vlgmr.msrb.gmra.mxu2 %vm454_vm1, %v1257_v5  ;;  %2303 = vmatmul.msk.bf16.vlgmr.msrb.gmra.mxu3 %vm454_vm1, %v1257_v5  ;;  %v1203_v5 = vrot.slane %v1201_v55, 5 }
  0xba   : > { %2332 = vmatmul.msk.bf16.vlgmr.msrb.gmra.mxu0 %vm454_vm1, %v2319_v6  ;;  %2336 = vmatmul.msk.bf16.vlgmr.msrb.gmra.mxu1 %vm454_vm1, %v2319_v6  ;;  %v1217_v6 = vrot.slane %v1215_v58, 5 }
  0xbc   : > { %v579_v19 = vpop.f32.mrf.mxu2  ;;  %v608_v22 = vpop.f32.mrf.mxu3 }
  0xbd   : > { %v580_v27 = vadd.f32 %v579_v19, %v2695_v51  ;;  %v609_v28 = vadd.f32 %v608_v22, %v2697_v52  ;;  %v1198_v52 = vor.u32 %v1197_v38, %v1194_v35  ;;  %v1134_v35 = vld [vmem:[%s2667_s10 + $0x3c] sm:$0x1] }
  0xbf   : > { %v2775_v29 = vadd.f32 %v831_v8, %v609_v28  ;;  %v804_v30 = vpop.f32.mrf.mxu0  ;;  %v833_v31 = vpop.f32.mrf.mxu1  ;;  %v2777_v34 = vadd.f32 %v802_v7, %v580_v27  ;;  %v1199_v2 = vrot.slane %v1198_v52, 4  ;;  %v1133_v7 = vld [vmem:[%s2667_s10 + $0x38] sm:$0xf]  ;;  %v2420_v27 = vld [vmem:[%s2562_s15 + $0x2c] sm:$0xf0] }
  0xc0   : > { %v1234_v18 = vshrl.u32 %v1133_v7, 16  ;;  %v1237_v19 = vshll.u32 %v1133_v7, 16  ;;  %v2327_v45 = vor.u32 %v2420_v27, %v2326_v26 }
  0xc1   : > { %v1204_v14 = vsel %vm2595_vm4, %v1199_v2, %v1203_v5  ;;  %v2375_v2 = vld [vmem:[%s2562_s15 + $0x10] sm:$0xf] }
  0xc2   : > { %v1239_v32 = vrot.slane %v1237_v19, 5 }
  0xc4   : > { %v581_v47 = vpop.f32.mrf.mxu2  ;;  %v610_v51 = vpop.f32.mrf.mxu3 }
  0xc5   : > { %v582_v50 = vadd.f32 %v581_v47, %v2709_v62  ;;  %v611_v54 = vadd.f32 %v610_v51, %v2711_v63  ;;  %v1213_v62 = vrot.slane %v1212_v49, 4  ;;  %v1131_v63 = vld [vmem:[%s2667_s10 + $0x30] sm:$0xf]  ;;  %v1229_v47 = vshll.u32 %v1132_v33, 16 }
  0xc6   : > { %v1220_v16 = vshrl.u32 %v1131_v63, 16  ;;  %v1223_v17 = vshll.u32 %v1131_v63, 16 }
  0xc7   : > { %v2785_v60 = vadd.f32 %v833_v31, %v611_v54  ;;  %v807_v61 = vpop.f32.mrf.mxu0  ;;  %v836_v0 = vpop.f32.mrf.mxu1  ;;  %v2787_v1 = vadd.f32 %v804_v30, %v582_v50  ;;  %v1218_v15 = vsel %vm2595_vm4, %v1213_v62, %v1217_v6  ;;  %v1236_v31 = vrot.slane %v1234_v18, 4 }
  0xc8   : > { %v1222_v28 = vrot.slane %v1220_v16, 4  ;;  %v1225_v30 = vrot.slane %v1223_v17, 5  ;;  %v2330_v17 = vld [vmem:[%s2562_s15 + $0x38] sm:$0xf] }
  0xc9   : > { %2300 = vmatmul.msk.bf16.gmra.mxu2 %vm454_vm1, %v1258_v48  ;;  %2304 = vmatmul.msk.bf16.gmra.mxu3 %vm454_vm1, %v1258_v48  ;;  %v1240_v51 = vor.u32 %v1239_v32, %v1236_v31  ;;  %v1243_v48 = vshll.u32 %v1134_v35, 16 }
  0xca   : > { %2333 = vmatmul.msk.bf16.gmra.mxu0 %vm454_vm1, %v2323_v59  ;;  %2337 = vmatmul.msk.bf16.gmra.mxu1 %vm454_vm1, %v2323_v59  ;;  %v1226_v46 = vor.u32 %v1225_v30, %v1222_v28  ;;  %v2373_v59 = vld [vmem:[%s2562_s15 + $0x8] sm:$0xf]  ;;  %v2376_v28 = vld [vmem:[%s2562_s15 + $0x14] sm:$0x1] }
  0xcb   : > { %v1241_v55 = vrot.slane %v1240_v51, 4  ;;  %v1245_v58 = vrot.slane %v1243_v48, 5  ;;  %v1626_v7 = vshrl.u32 %v2373_v59, 16 }
  0xcc   : > { %v584_v8 = vpop.f32.mrf.mxu2  ;;  %v613_v9 = vpop.f32.mrf.mxu3 }
  0xcd   : > { %v585_v10 = vadd.f32 %v584_v8, %v2727_v20  ;;  %v614_v13 = vadd.f32 %v613_v9, %v2729_v21  ;;  %v1253_v20 = vunpack.c.l.b16 %v1204_v14  ;;  %v1254_v21 = vunpack.c.l.b16 %v1218_v15 }
  0xce   : > { %v1246_v63 = vsel %vm2595_vm4, %v1241_v55, %v1245_v58  ;;  %v1629_v8 = vshll.u32 %v2373_v59, 16  ;;  %v1640_v14 = vshrl.u32 %v2375_v2, 16  ;;  %v1643_v15 = vshll.u32 %v2375_v2, 16 }
  0xcf   : > { %v2801_v22 = vadd.f32 %v836_v0, %v614_v13  ;;  %v809_v23 = vpop.f32.mrf.mxu0  ;;  %v838_v24 = vpop.f32.mrf.mxu1  ;;  %v2803_v25 = vadd.f32 %v807_v61, %v585_v10  ;;  %v1259_v44 = vpack.c.b16 %v1254_v21, %v1253_v20  ;;  %v1256_v16 = vunpack.c.l.b16 %v1246_v63 }
  0xd0   : > { %v1628_v18 = vrot.slane %v1626_v7, 4  ;;  %v1631_v19 = vrot.slane %v1629_v8, 5  ;;  %v1642_v20 = vrot.slane %v1640_v14, 4  ;;  %v1645_v21 = vrot.slane %v1643_v15, 5  ;;  %v2351_v8 = vld [vmem:[%s2550_s12 + $0x8] sm:$0xf] }
  0xd2   : > { %v1632_v35 = vor.u32 %v1631_v19, %v1628_v18 }
  0xd4   : > { %v586_v38 = vpop.f32.mrf.mxu2  ;;  %v615_v39 = vpop.f32.mrf.mxu3 }
  0xd5   : > { %v587_v40 = vadd.f32 %v586_v38, %v2749_v42  ;;  %v616_v41 = vadd.f32 %v615_v39, %v2751_v43  ;;  %v1227_v42 = vrot.slane %v1226_v46, 4  ;;  %v1231_v43 = vrot.slane %v1229_v47, 5 }
  0xd6   : > { %v1633_v47 = vrot.slane %v1632_v35, 4 }
  0xd7   : > { %v2811_v52 = vadd.f32 %v838_v24, %v616_v41  ;;  %v812_v49 = vpop.f32.mrf.mxu0  ;;  %v841_v50 = vpop.f32.mrf.mxu1  ;;  %v2813_v54 = vadd.f32 %v809_v23, %v587_v40  ;;  %v1232_v6 = vsel %vm2595_vm4, %v1227_v42, %v1231_v43  ;;  %v2421_v23 = vld [vmem:[%s2562_s15 + $0x3c] sm:$0xf0]  ;;  %v2374_v24 = vld [vmem:[%s2562_s15 + $0xc] sm:$0x1] }
  0xd8   : > { %v2331_v33 = vor.u32 %v2421_v23, %v2330_v17  ;;  %v1635_v38 = vshll.u32 %v2374_v24, 16  ;;  %v2380_v17 = vld [vmem:[%s2562_s15 + $0x24] sm:$0x1] }
  0xd9   : > { %2301 = vmatmul.msk.bf16.gmra.mxu2 %vm454_vm1, %v1259_v44  ;;  %2305 = vmatmul.msk.bf16.gmra.mxu3 %vm454_vm1, %v1259_v44  ;;  %v1646_v44 = vor.u32 %v1645_v21, %v1642_v20 }
  0xda   : > { %2334 = vmatmul.msk.bf16.gmra.mxu0 %vm454_vm1, %v2327_v45  ;;  %2338 = vmatmul.msk.bf16.gmra.mxu1 %vm454_vm1, %v2327_v45  ;;  %v1649_v45 = vshll.u32 %v2376_v28, 16  ;;  %v1637_v51 = vrot.slane %v1635_v38, 5  ;;  %v1677_v28 = vshll.u32 %v2380_v17, 16 }
  0xdb   : > { %v1647_v48 = vrot.slane %v1646_v44, 4  ;;  %v2383_v44 = vld [vmem:[%s2562_s15 + $0x30] sm:$0xf] }
  0xdc   : > { %v589_v61 = vpop.f32.mrf.mxu2  ;;  %v618_v0 = vpop.f32.mrf.mxu3 }
  0xdd   : > { %v590_v5 = vadd.f32 %v589_v61, %v2705_v56  ;;  %v619_v62 = vadd.f32 %v618_v0, %v2707_v57  ;;  %v1255_v57 = vunpack.c.l.b16 %v1232_v6  ;;  %v1638_v6 = vsel %vm2595_vm4, %v1633_v47, %v1637_v51 }
  0xdf   : > { %v2827_v9 = vadd.f32 %v841_v50, %v619_v62  ;;  %v814_v10 = vpop.f32.mrf.mxu0  ;;  %v843_v13 = vpop.f32.mrf.mxu1  ;;  %v2829_v56 = vadd.f32 %v812_v49, %v590_v5  ;;  %v1260_v32 = vpack.c.b16 %v1256_v16, %v1255_v57  ;;  %v1651_v49 = vrot.slane %v1649_v45, 5 }
  0xe0   : > { %v1739_v57 = vunpack.c.l.b16 %v1638_v6 }
  0xe1   : > { %v1652_v63 = vsel %vm2595_vm4, %v1647_v48, %v1651_v49 }
  0xe2   : > { %v1740_v16 = vunpack.c.l.b16 %v1652_v63 }
  0xe4   : > { %v591_v26 = vpop.f32.mrf.mxu2  ;;  %v620_v27 = vpop.f32.mrf.mxu3 }
  0xe5   : > { %v592_v30 = vadd.f32 %v591_v26, %v2722_v11  ;;  %v621_v31 = vadd.f32 %v620_v27, %v2724_v12  ;;  %v2377_v11 = vld [vmem:[%s2562_s15 + $0x18] sm:$0xf]  ;;  %v2379_v12 = vld [vmem:[%s2562_s15 + $0x20] sm:$0xf] }
  0xe6   : > { %v1654_v43 = vshrl.u32 %v2377_v11, 16  ;;  %v1657_v55 = vshll.u32 %v2377_v11, 16  ;;  %v1668_v61 = vshrl.u32 %v2379_v12, 16  ;;  %v1671_v0 = vshll.u32 %v2379_v12, 16 }
  0xe7   : > { %v2837_v39 = vadd.f32 %v843_v13, %v621_v31  ;;  %v817_v40 = vpop.f32.mrf.mxu0  ;;  %v846_v41 = vpop.f32.mrf.mxu1  ;;  %v2839_v46 = vadd.f32 %v814_v10, %v592_v30  ;;  %v2422_v13 = vld [vmem:[%s2550_s12 + $0xc] sm:$0xf0]  ;;  %v1747_v30 = vpack.c.b16 %v1740_v16, %v1739_v57 }
  0xe8   : > { %v1656_v10 = vrot.slane %v1654_v43, 4  ;;  %v1670_v14 = vrot.slane %v1668_v61, 4  ;;  %v1673_v15 = vrot.slane %v1671_v0, 5  ;;  %v2352_v23 = vor.u32 %v2422_v13, %v2351_v8 }
  0xe9   : > { %2302 = vmatmul.msk.bf16.gmra.mxu2 %vm454_vm1, %v1260_v32  ;;  %2306 = vmatmul.msk.bf16.gmra.mxu3 %vm454_vm1, %v1260_v32  ;;  %v1699_v43 = vshll.u32 %v2383_v44, 16 }
  0xea   : > { %2335 = vmatmul.msk.bf16.gmra.mxu0 %vm454_vm1, %v2331_v33  ;;  %2339 = vmatmul.msk.bf16.gmra.mxu1 %vm454_vm1, %v2331_v33  ;;  %v1674_v27 = vor.u32 %v1673_v15, %v1670_v14 }
  0xeb   : > { %v1701_v8 = vrot.slane %v1699_v43, 5 }
  0xec   : > { %v594_v50 = vpop.f32.mrf.mxu2  ;;  %v623_v42 = vpop.f32.mrf.mxu3 }
  0xed   : > { %v595_v58 = vadd.f32 %v594_v50, %v2741_v36  ;;  %v624_v59 = vadd.f32 %v623_v42, %v2743_v37  ;;  %v1659_v36 = vrot.slane %v1657_v55, 5  ;;  %v2378_v37 = vld [vmem:[%s2562_s15 + $0x1c] sm:$0x1]  ;;  %v1696_v42 = vshrl.u32 %v2383_v44, 16 }
  0xee   : > { %v1663_v20 = vshll.u32 %v2378_v37, 16 }
  0xef   : > { %v2849_v2 = vadd.f32 %v846_v41, %v624_v59  ;;  %v819_v5 = vpop.f32.mrf.mxu0  ;;  %v848_v62 = vpop.f32.mrf.mxu1  ;;  %v2855_v7 = vadd.f32 %v817_v40, %v595_v58  ;;  %v1660_v24 = vor.u32 %v1659_v36, %v1656_v10  ;;  %v1679_v41 = vrot.slane %v1677_v28, 5  ;;  %v2382_v10 = vld [vmem:[%s2562_s15 + $0x2c] sm:$0x1]  ;;  %v2384_v36 = vld [vmem:[%s2562_s15 + $0x34] sm:$0x1] }
  0xf0   : > { %v1665_v40 = vrot.slane %v1663_v20, 5  ;;  %v1698_v63 = vrot.slane %v1696_v42, 4 }
  0xf1   : > { %v1661_v38 = vrot.slane %v1660_v24, 4 }
  0xf3   : > { %v1666_v51 = vsel %vm2595_vm4, %v1661_v38, %v1665_v40  ;;  %v2387_v38 = vld [vmem:[%s2562_s15 + $0x40] sm:$0xf] }
  0xf4   : > { %v596_v18 = vpop.f32.mrf.mxu2  ;;  %v625_v19 = vpop.f32.mrf.mxu3 }
  0xf5   : > { %v597_v21 = vadd.f32 %v596_v18, %v2759_v3  ;;  %v626_v26 = vadd.f32 %v625_v19, %v2761_v4  ;;  %v1675_v3 = vrot.slane %v1674_v27, 4  ;;  %v2381_v4 = vld [vmem:[%s2562_s15 + $0x28] sm:$0xf]  ;;  %v1691_v18 = vshll.u32 %v2382_v10, 16 }
  0xf6   : > { %v1682_v49 = vshrl.u32 %v2381_v4, 16  ;;  %v1685_v50 = vshll.u32 %v2381_v4, 16  ;;  %v1702_v19 = vor.u32 %v1701_v8, %v1698_v63 }
  0xf7   : > { %v2863_v31 = vadd.f32 %v848_v62, %v626_v26  ;;  %v1054_v32 = vpop.f32.mrf.mxu0  ;;  %v1083_v33 = vpop.f32.mrf.mxu1  ;;  %v2865_v35 = vadd.f32 %v819_v5, %v597_v21  ;;  %v1680_v48 = vsel %vm2595_vm4, %v1675_v3, %v1679_v41  ;;  %v2423_v5 = vld [vmem:[%s2550_s12 + $0x1c] sm:$0xf0] }
  0xf8   : > { %v1742_v0 = vunpack.c.l.b16 %v1680_v48  ;;  %v1684_v62 = vrot.slane %v1682_v49, 4  ;;  %v1687_v6 = vrot.slane %v1685_v50, 5  ;;  %v1703_v27 = vrot.slane %v1702_v19, 4 }
  0xf9   : > { %2365 = vmatmul.msk.bf16.vlgmr.msra.gmra.mxu2 %vm454_vm1, %v2352_v23  ;;  %2369 = vmatmul.msk.bf16.vlgmr.msra.gmra.mxu3 %vm454_vm1, %v2352_v23  ;;  %v1705_v23 = vshll.u32 %v2384_v36, 16  ;;  %v1727_v48 = vshll.u32 %v2387_v38, 16 }
  0xfa   : > { %2390 = vmatmul.msk.bf16.vlgmr.msra.gmra.mxu0 %vm454_vm1, %v1747_v30  ;;  %2394 = vmatmul.msk.bf16.vlgmr.msra.gmra.mxu1 %vm454_vm1, %v1747_v30  ;;  %v1688_v17 = vor.u32 %v1687_v6, %v1684_v62  ;;  %v2385_v30 = vld [vmem:[%s2562_s15 + $0x38] sm:$0xf]  ;;  %v2388_v62 = vld [vmem:[%s2562_s15 + $0x44] sm:$0x1] }
  0xfb   : > { %v1707_v28 = vrot.slane %v1705_v23, 5  ;;  %v1710_v44 = vshrl.u32 %v2385_v30, 16 }
  0xfc   : > { %v928_v45 = vpop.f32.mrf.mxu2  ;;  %v957_v11 = vpop.f32.mrf.mxu3 }
  0xfd   : > { %v977_v12 = vadd.f32 %v928_v45, %v2777_v34  ;;  %v978_v47 = vadd.f32 %v957_v11, %v2775_v29  ;;  %v2355_v34 = vld [vmem:[%s2550_s12 + $0x18] sm:$0xf]  ;;  %v1741_v29 = vunpack.c.l.b16 %v1666_v51  ;;  %v1708_v4 = vsel %vm2595_vm4, %v1703_v27, %v1707_v28 }
  0xfe   : > { %v2356_v57 = vor.u32 %v2423_v5, %v2355_v34  ;;  %v1713_v45 = vshll.u32 %v2385_v30, 16  ;;  %v1724_v51 = vshrl.u32 %v2387_v38, 16  ;;  %v1744_v42 = vunpack.c.l.b16 %v1708_v4  ;;  %v2363_v38 = vld [vmem:[%s2550_s12 + $0x38] sm:$0xf] }
  0xff   : > { %v2879_v55 = vadd.f32 %v1083_v33, %v978_v47  ;;  %v1056_v58 = vpop.f32.mrf.mxu0  ;;  %v1085_v59 = vpop.f32.mrf.mxu1  ;;  %v2881_v61 = vadd.f32 %v1054_v32, %v977_v12  ;;  %v1748_v16 = vpack.c.b16 %v1742_v0, %v1741_v29  ;;  %v1712_v43 = vrot.slane %v1710_v44, 4 }
 0x100   : > { %v1726_v34 = vrot.slane %v1724_v51, 4  ;;  %v1729_v29 = vrot.slane %v1727_v48, 5 }
 0x104   : > { %v930_v13 = vpop.f32.mrf.mxu2  ;;  %v959_v37 = vpop.f32.mrf.mxu3 }
 0x105   : > { %v979_v14 = vadd.f32 %v930_v13, %v2787_v1  ;;  %v980_v15 = vadd.f32 %v959_v37, %v2785_v60  ;;  %v1689_v60 = vrot.slane %v1688_v17, 4  ;;  %v1693_v1 = vrot.slane %v1691_v18, 5 }
 0x107   : > { %v2889_v24 = vadd.f32 %v1085_v59, %v980_v15  ;;  %v1059_v20 = vpop.f32.mrf.mxu0  ;;  %v1088_v21 = vpop.f32.mrf.mxu1  ;;  %v2891_v26 = vadd.f32 %v1056_v58, %v979_v14  ;;  %v1694_v41 = vsel %vm2595_vm4, %v1689_v60, %v1693_v1  ;;  %v1715_v58 = vrot.slane %v1713_v45, 5  ;;  %v2386_v59 = vld [vmem:[%s2562_s15 + $0x3c] sm:$0x1] }
 0x108   : > { %v1743_v50 = vunpack.c.l.b16 %v1694_v41  ;;  %v1719_v13 = vshll.u32 %v2386_v59, 16 }
 0x109   : > { %2366 = vmatmul.msk.bf16.gmra.mxu2 %vm454_vm1, %v2356_v57  ;;  %2370 = vmatmul.msk.bf16.gmra.mxu3 %vm454_vm1, %v2356_v57  ;;  %v1716_v36 = vor.u32 %v1715_v58, %v1712_v43  ;;  %v1730_v57 = vor.u32 %v1729_v29, %v1726_v34 }
 0x10a   : > { %2391 = vmatmul.msk.bf16.gmra.mxu0 %vm454_vm1, %v1748_v16  ;;  %2395 = vmatmul.msk.bf16.gmra.mxu1 %vm454_vm1, %v1748_v16  ;;  %v1749_v10 = vpack.c.b16 %v1744_v42, %v1743_v50  ;;  %v1733_v16 = vshll.u32 %v2388_v62, 16 }
 0x10b   : > { %v1731_v18 = vrot.slane %v1730_v57, 4 }
 0x10c   : > { %v933_v32 = vpop.f32.mrf.mxu2  ;;  %v962_v33 = vpop.f32.mrf.mxu3  ;;  %v1735_v19 = vrot.slane %v1733_v16, 5 }
 0x10d   : > { %v981_v40 = vadd.f32 %v933_v32, %v2803_v25  ;;  %v982_v3 = vadd.f32 %v962_v33, %v2801_v22  ;;  %v2359_v25 = vld [vmem:[%s2550_s12 + $0x28] sm:$0xf]  ;;  %v2424_v22 = vld [vmem:[%s2550_s12 + $0x2c] sm:$0xf0] }
 0x10e   : > { %v2360_v8 = vor.u32 %v2424_v22, %v2359_v25  ;;  %v1736_v32 = vsel %vm2595_vm4, %v1731_v18, %v1735_v19 }
 0x10f   : > { %v2905_v11 = vadd.f32 %v1088_v21, %v982_v3  ;;  %v1061_v12 = vpop.f32.mrf.mxu0  ;;  %v1090_v47 = vpop.f32.mrf.mxu1  ;;  %v2907_v49 = vadd.f32 %v1059_v20, %v981_v40  ;;  %v2425_v40 = vld [vmem:[%s2550_s12 + $0x3c] sm:$0xf0]  ;;  %v1746_v41 = vunpack.c.l.b16 %v1736_v32  ;;  %s2400_s12 = sshll.u32 %s3111_s24, 5 }
 0x110   : > { %v2364_v45 = vor.u32 %v2425_v40, %v2363_v38  ;;  %s3009_s20 = scalar_lea.vmem %s3101_s5, %s2400_s12  ;;  %s3014_s23 = scalar_lea.vmem %s3102_s6, %s2400_s12 }
 0x114   : > { %v935_v0 = vpop.f32.mrf.mxu2  ;;  %v964_v5 = vpop.f32.mrf.mxu3 }
 0x115   : > { %v983_v6 = vadd.f32 %v935_v0, %v2813_v54  ;;  %v984_v63 = vadd.f32 %v964_v5, %v2811_v52  ;;  %v1717_v52 = vrot.slane %v1716_v36, 4  ;;  %v1721_v54 = vrot.slane %v1719_v13, 5 }
 0x117   : > { %v2915_v37 = vadd.f32 %v1090_v47, %v984_v63  ;;  %v1064_v14 = vpop.f32.mrf.mxu0  ;;  %v1093_v15 = vpop.f32.mrf.mxu1  ;;  %v2917_v17 = vadd.f32 %v1061_v12, %v983_v6  ;;  %v1722_v30 = vsel %vm2595_vm4, %v1717_v52, %v1721_v54 }
 0x118   : > { %v1745_v3 = vunpack.c.l.b16 %v1722_v30 }
 0x119   : > { %2367 = vmatmul.msk.bf16.gmra.mxu2 %vm454_vm1, %v2360_v8  ;;  %2371 = vmatmul.msk.bf16.gmra.mxu3 %vm454_vm1, %v2360_v8 }
 0x11a   : > { %2392 = vmatmul.msk.bf16.gmra.mxu0 %vm454_vm1, %v1749_v10  ;;  %2396 = vmatmul.msk.bf16.gmra.mxu1 %vm454_vm1, %v1749_v10  ;;  %v1750_v12 = vpack.c.b16 %v1746_v41, %v1745_v3 }
 0x11c   : > { %v938_v23 = vpop.f32.mrf.mxu2  ;;  %v967_v20 = vpop.f32.mrf.mxu3 }
 0x11d   : > { %v985_v21 = vadd.f32 %v938_v23, %v2829_v56  ;;  %v986_v60 = vadd.f32 %v967_v20, %v2827_v9 }
 0x11f   : > { %v2925_v1 = vadd.f32 %v1093_v15, %v986_v60  ;;  %v1066_v27 = vpop.f32.mrf.mxu0  ;;  %v1095_v28 = vpop.f32.mrf.mxu1  ;;  %v2931_v33 = vadd.f32 %v1064_v14, %v985_v21 }
 0x124   : > { %v940_v4 = vpop.f32.mrf.mxu2  ;;  %v969_v56 = vpop.f32.mrf.mxu3 }
 0x125   : > { %v987_v9 = vadd.f32 %v940_v4, %v2839_v46  ;;  %v988_v44 = vadd.f32 %v969_v56, %v2837_v39 }
 0x127   : > { %v2937_v47 = vadd.f32 %v1095_v28, %v988_v44  ;;  %v1069_v51 = vpop.f32.mrf.mxu0  ;;  %v1098_v48 = vpop.f32.mrf.mxu1  ;;  %v2939_v53 = vadd.f32 %v1066_v27, %v987_v9 }
 0x129   : > { %2368 = vmatmul.msk.bf16.gmra.mxu2 %vm454_vm1, %v2364_v45  ;;  %2372 = vmatmul.msk.bf16.gmra.mxu3 %vm454_vm1, %v2364_v45 }
 0x12a   : > { %2393 = vmatmul.msk.bf16.gmra.mxu0 %vm454_vm1, %v1750_v12  ;;  %2397 = vmatmul.msk.bf16.gmra.mxu1 %vm454_vm1, %v1750_v12 }
 0x12c   : > { %v943_v25 = vpop.f32.mrf.mxu2  ;;  %v972_v46 = vpop.f32.mrf.mxu3 }
 0x12d   : > { %v989_v39 = vadd.f32 %v943_v25, %v2855_v7  ;;  %v990_v22 = vadd.f32 %v972_v46, %v2849_v2 }
 0x12f   : > { %v2947_v50 = vadd.f32 %v1098_v48, %v990_v22  ;;  %v1071_v42 = vpop.f32.mrf.mxu0  ;;  %v1100_v43 = vpop.f32.mrf.mxu1  ;;  %v2949_v58 = vadd.f32 %v1069_v51, %v989_v39 }
 0x134   : > { %v945_v59 = vpop.f32.mrf.mxu2  ;;  %v974_v34 = vpop.f32.mrf.mxu3 }
 0x135   : > { %v991_v29 = vadd.f32 %v945_v59, %v2865_v35  ;;  %v992_v0 = vadd.f32 %v974_v34, %v2863_v31 }
 0x137   : > { %v2953_v5 = vadd.f32 %v1100_v43, %v992_v0  ;;  %v1418_v62 = vpop.f32.mrf.mxu0  ;;  %v1447_v6 = vpop.f32.mrf.mxu1  ;;  %v2955_v63 = vadd.f32 %v1071_v42, %v991_v29 }
 0x13c   : > { %v1290_v7 = vpop.f32.mrf.mxu2  ;;  %v1319_v2 = vpop.f32.mrf.mxu3 }
 0x13d   : > { %v1339_v9 = vadd.f32 %v1290_v7, %v2881_v61  ;;  %v1340_v44 = vadd.f32 %v1319_v2, %v2879_v55 }
 0x13f   : > { %v1420_v8 = vpop.f32.mrf.mxu0  ;;  %v1449_v10 = vpop.f32.mrf.mxu1  ;;  %v1468_v51 = vadd.f32 %v1447_v6, %v1340_v44  ;;  %v1467_v48 = vadd.f32 %v1418_v62, %v1339_v9 }
 0x144   : > { %v1292_v36 = vpop.f32.mrf.mxu2  ;;  %v1321_v13 = vpop.f32.mrf.mxu3 }
 0x145   : > { %v1341_v42 = vadd.f32 %v1292_v36, %v2891_v26  ;;  %v1342_v43 = vadd.f32 %v1321_v13, %v2889_v24 }
 0x147   : > { %v2957_v14 = vpop.f32.mrf.mxu0  ;;  %v2959_v15 = vpop.f32.mrf.mxu1  ;;  %v1470_v24 = vadd.f32 %v1449_v10, %v1342_v43  ;;  %v1469_v26 = vadd.f32 %v1420_v8, %v1341_v42 }
 0x14c   : > { %v1295_v57 = vpop.f32.mrf.mxu2  ;;  %v1324_v35 = vpop.f32.mrf.mxu3 }
 0x14d   : > { %v1343_v36 = vadd.f32 %v1295_v57, %v2907_v49  ;;  %v1344_v13 = vadd.f32 %v1324_v35, %v2905_v11 }
 0x14f   : > { %v2961_v16 = vpop.f32.mrf.mxu0  ;;  %v2963_v31 = vpop.f32.mrf.mxu1  ;;  %v1472_v42 = vadd.f32 %v2959_v15, %v1344_v13  ;;  %v1471_v11 = vadd.f32 %v2957_v14, %v1343_v36 }
 0x154   : > { %v2965_v52 = vpop.f32.mrf.mxu2  ;;  %v2967_v54 = vpop.f32.mrf.mxu3 }
 0x155   : > { %v1346_v15 = vadd.f32 %v2967_v54, %v2915_v37 }
 0x157   : > { %v2969_v18 = vpop.f32.mrf.mxu0  ;;  %v2971_v19 = vpop.f32.mrf.mxu1  ;;  %v1474_v36 = vadd.f32 %v2963_v31, %v1346_v15 }
 0x15c   : > { %v2973_v23 = vpop.f32.mrf.mxu2  ;;  %v2975_v20 = vpop.f32.mrf.mxu3 }
 0x15d   : > { %v1348_v31 = vadd.f32 %v2975_v20, %v2925_v1 }
 0x15f   : > { %v2977_v21 = vpop.f32.mrf.mxu0  ;;  %v2979_v60 = vpop.f32.mrf.mxu1 }
 0x164   : > { %v2981_v27 = vpop.f32.mrf.mxu2  ;;  %v2983_v28 = vpop.f32.mrf.mxu3 }
 0x167   : > { %v2985_v30 = vpop.f32.mrf.mxu0  ;;  %v2987_v32 = vpop.f32.mrf.mxu1 }
 0x16c   : > { %v2989_v38 = vpop.f32.mrf.mxu2  ;;  %v2991_v40 = vpop.f32.mrf.mxu3 }
 0x16f   : > { %v2993_v3 = vpop.f32.mrf.mxu0  ;;  %v2995_v41 = vpop.f32.mrf.mxu1 }
 0x174   : > { %v2997_v4 = vpop.f32.mrf.mxu2  ;;  %v2999_v56 = vpop.f32.mrf.mxu3 }
 0x177   : > { %v1780_v45 = vpop.f32.mrf.mxu0  ;;  %v1809_v12 = vpop.f32.mrf.mxu1 }
 0x17c   : > { %v1544_v25 = vpop.f32.mrf.mxu2  ;;  %v1573_v46 = vpop.f32.mrf.mxu3 }
 0x17d   : > { %v1593_v39 = vadd.f32 %v1544_v25, %v1467_v48  ;;  %v1594_v22 = vadd.f32 %v1573_v46, %v1468_v51 }
 0x17f   : > { %v1829_v59 = vadd.f32 %v1780_v45, %v1593_v39  ;;  %v1830_v34 = vadd.f32 %v1809_v12, %v1594_v22  ;;  %v1782_v29 = vpop.f32.mrf.mxu0  ;;  %v1811_v0 = vpop.f32.mrf.mxu1 }
 0x181   : > { %v1845_v55 = vpack.c.bf16 %v1829_v59, %v1829_v59  ;;  %v1862_v61 = vpack.c.bf16 %v1830_v34, %v1830_v34  ;;  %v1891_v10 = vmul.f32 %v1829_v59, %v1829_v59  ;;  %v1925_v46 = vmul.f32 %v1830_v34, %v1830_v34 }
 0x183   : > { %1854 = vst.msk [vmem:[%s3009_s20] sm:$0xf] %vm1853_vm5, %v1845_v55 }
 0x184   : > { %1870 = vst.msk [vmem:[%s3014_s23] sm:$0xf] %vm1853_vm5, %v1862_v61  ;;  %v1546_v62 = vpop.f32.mrf.mxu2  ;;  %v1575_v6 = vpop.f32.mrf.mxu3 }
 0x185   : > { %v1595_v7 = vadd.f32 %v1546_v62, %v1469_v26  ;;  %v1596_v2 = vadd.f32 %v1575_v6, %v1470_v24 }
 0x187   : > { %v1831_v9 = vadd.f32 %v1782_v29, %v1595_v7  ;;  %v1832_v44 = vadd.f32 %v1811_v0, %v1596_v2  ;;  %v1785_v45 = vpop.f32.mrf.mxu0  ;;  %v1814_v12 = vpop.f32.mrf.mxu1  ;;  %v1345_v0 = vadd.f32 %v2965_v52, %v2917_v17 }
 0x189   : > { %v1846_v51 = vpack.c.bf16 %v1831_v9, %v1831_v9  ;;  %v1878_v48 = vadd.f32 %v1831_v9, %v1829_v59  ;;  %v1892_v8 = vmul.f32 %v1831_v9, %v1831_v9  ;;  %v1863_v25 = vpack.c.bf16 %v1832_v44, %v1832_v44 }
 0x18a   : > { %v1912_v39 = vadd.f32 %v1832_v44, %v1830_v34  ;;  %v1926_v22 = vmul.f32 %v1832_v44, %v1832_v44  ;;  %v1473_v17 = vadd.f32 %v2961_v16, %v1345_v0 }
 0x18b   : > { %1855 = vst.msk [vmem:[%s3009_s20 + $0x4] sm:$0xf] %vm1853_vm5, %v1846_v51  ;;  %v1899_v49 = vadd.f32 %v1892_v8, %v1891_v10 }
 0x18c   : > { %1871 = vst.msk [vmem:[%s3014_s23 + $0x4] sm:$0xf] %vm1853_vm5, %v1863_v25  ;;  %v1933_v57 = vadd.f32 %v1926_v22, %v1925_v46  ;;  %v1549_v35 = vpop.f32.mrf.mxu2  ;;  %v1578_v43 = vpop.f32.mrf.mxu3 }
 0x18d   : > { %v1597_v29 = vadd.f32 %v1549_v35, %v1471_v11  ;;  %v1598_v59 = vadd.f32 %v1578_v43, %v1472_v42  ;;  %v1476_v42 = vadd.f32 %v2971_v19, %v1348_v31  ;;  %v1349_v35 = vadd.f32 %v2981_v27, %v2939_v53 }
 0x18e   : > { %v1350_v19 = vadd.f32 %v2983_v28, %v2937_v47 }
 0x18f   : > { %v1833_v34 = vadd.f32 %v1785_v45, %v1597_v29  ;;  %v1834_v55 = vadd.f32 %v1814_v12, %v1598_v59  ;;  %v1787_v61 = vpop.f32.mrf.mxu0  ;;  %v1816_v24 = vpop.f32.mrf.mxu1  ;;  %v1347_v45 = vadd.f32 %v2973_v23, %v2931_v33  ;;  %v1477_v53 = vadd.f32 %v2977_v21, %v1349_v35 }
 0x191   : > { %v1847_v14 = vpack.c.bf16 %v1833_v34, %v1833_v34  ;;  %v1879_v26 = vadd.f32 %v1878_v48, %v1833_v34  ;;  %v1893_v62 = vmul.f32 %v1833_v34, %v1833_v34  ;;  %v1864_v6 = vpack.c.bf16 %v1834_v55, %v1834_v55 }
 0x192   : > { %v1913_v7 = vadd.f32 %v1912_v39, %v1834_v55  ;;  %v1927_v2 = vmul.f32 %v1834_v55, %v1834_v55  ;;  %v1475_v33 = vadd.f32 %v2969_v18, %v1347_v45 }
 0x193   : > { %1856 = vst.msk [vmem:[%s3009_s20 + $0x8] sm:$0xf] %vm1853_vm5, %v1847_v14  ;;  %v1900_v13 = vadd.f32 %v1899_v49, %v1893_v62  ;;  %v1478_v14 = vadd.f32 %v2979_v60, %v1350_v19  ;;  %v1352_v60 = vadd.f32 %v2991_v40, %v2947_v50 }
 0x194   : > { %1872 = vst.msk [vmem:[%s3014_s23 + $0x8] sm:$0xf] %vm1853_vm5, %v1864_v6  ;;  %v1934_v37 = vadd.f32 %v1933_v57, %v1927_v2  ;;  %v1551_v52 = vpop.f32.mrf.mxu2  ;;  %v1580_v54 = vpop.f32.mrf.mxu3 }
 0x195   : > { %v1599_v9 = vadd.f32 %v1551_v52, %v1473_v17  ;;  %v1600_v44 = vadd.f32 %v1580_v54, %v1474_v36 }
 0x197   : > { %v1835_v12 = vadd.f32 %v1787_v61, %v1599_v9  ;;  %v1836_v10 = vadd.f32 %v1816_v24, %v1600_v44  ;;  %v1790_v51 = vpop.f32.mrf.mxu0  ;;  %v1819_v48 = vpop.f32.mrf.mxu1  ;;  %v1480_v9 = vadd.f32 %v2987_v32, %v1352_v60  ;;  %v1354_v32 = vadd.f32 %v2999_v56, %v2953_v5 }
 0x199   : > { %v1848_v16 = vpack.c.bf16 %v1835_v12, %v1835_v12  ;;  %v1880_v8 = vadd.f32 %v1879_v26, %v1835_v12  ;;  %v1894_v25 = vmul.f32 %v1835_v12, %v1835_v12  ;;  %v1865_v46 = vpack.c.bf16 %v1836_v10, %v1836_v10 }
 0x19a   : > { %v1914_v39 = vadd.f32 %v1913_v7, %v1836_v10  ;;  %v1928_v22 = vmul.f32 %v1836_v10, %v1836_v10  ;;  %v1351_v7 = vadd.f32 %v2989_v38, %v2949_v58 }
 0x19b   : > { %1857 = vst.msk [vmem:[%s3009_s20 + $0xc] sm:$0xf] %vm1853_vm5, %v1848_v16  ;;  %v1901_v49 = vadd.f32 %v1900_v13, %v1894_v25 }
 0x19c   : > { %1873 = vst.msk [vmem:[%s3014_s23 + $0xc] sm:$0xf] %vm1853_vm5, %v1865_v46  ;;  %v1935_v1 = vadd.f32 %v1934_v37, %v1928_v22  ;;  %v1554_v23 = vpop.f32.mrf.mxu2  ;;  %v1583_v20 = vpop.f32.mrf.mxu3  ;;  %v1479_v58 = vadd.f32 %v2985_v30, %v1351_v7 }
 0x19d   : > { %v1601_v11 = vadd.f32 %v1554_v23, %v1475_v33  ;;  %v1602_v57 = vadd.f32 %v1583_v20, %v1476_v42  ;;  %v1482_v42 = vadd.f32 %v2995_v41, %v1354_v32 }
 0x19f   : > { %v1837_v43 = vadd.f32 %v1790_v51, %v1601_v11  ;;  %v1838_v29 = vadd.f32 %v1819_v48, %v1602_v57  ;;  %v1792_v34 = vpop.f32.mrf.mxu0  ;;  %v1821_v55 = vpop.f32.mrf.mxu1  ;;  %v1353_v51 = vadd.f32 %v2997_v4, %v2955_v63 }
 0x1a1   : > { %v1849_v59 = vpack.c.bf16 %v1837_v43, %v1837_v43  ;;  %v1881_v0 = vadd.f32 %v1880_v8, %v1837_v43  ;;  %v1895_v18 = vmul.f32 %v1837_v43, %v1837_v43  ;;  %v1866_v15 = vpack.c.bf16 %v1838_v29, %v1838_v29 }
 0x1a2   : > { %v1915_v61 = vadd.f32 %v1914_v39, %v1838_v29  ;;  %v1929_v24 = vmul.f32 %v1838_v29, %v1838_v29  ;;  %v1481_v33 = vadd.f32 %v2993_v3, %v1353_v51 }
 0x1a3   : > { %1858 = vst.msk [vmem:[%s3009_s20 + $0x10] sm:$0xf] %vm1853_vm5, %v1849_v59  ;;  %v1902_v26 = vadd.f32 %v1901_v49, %v1895_v18 }
 0x1a4   : > { %1874 = vst.msk [vmem:[%s3014_s23 + $0x10] sm:$0xf] %vm1853_vm5, %v1866_v15  ;;  %v1936_v47 = vadd.f32 %v1935_v1, %v1929_v24  ;;  %v1556_v27 = vpop.f32.mrf.mxu2  ;;  %v1585_v28 = vpop.f32.mrf.mxu3 }
 0x1a5   : > { %v1603_v62 = vadd.f32 %v1556_v27, %v1477_v53  ;;  %v1604_v6 = vadd.f32 %v1585_v28, %v1478_v14 }
 0x1a7   : > { %v1839_v2 = vadd.f32 %v1792_v34, %v1603_v62  ;;  %v1840_v36 = vadd.f32 %v1821_v55, %v1604_v6  ;;  %v1795_v45 = vpop.f32.mrf.mxu0  ;;  %v1824_v38 = vpop.f32.mrf.mxu1 }
 0x1a9   : > { %v1850_v13 = vpack.c.bf16 %v1839_v2, %v1839_v2  ;;  %v1882_v17 = vadd.f32 %v1881_v0, %v1839_v2  ;;  %v1896_v21 = vmul.f32 %v1839_v2, %v1839_v2  ;;  %v1867_v37 = vpack.c.bf16 %v1840_v36, %v1840_v36 }
 0x1aa   : > { %v1916_v52 = vadd.f32 %v1915_v61, %v1840_v36  ;;  %v1930_v54 = vmul.f32 %v1840_v36, %v1840_v36 }
 0x1ab   : > { %1859 = vst.msk [vmem:[%s3009_s20 + $0x14] sm:$0xf] %vm1853_vm5, %v1850_v13  ;;  %v1903_v44 = vadd.f32 %v1902_v26, %v1896_v21 }
 0x1ac   : > { %1875 = vst.msk [vmem:[%s3014_s23 + $0x14] sm:$0xf] %vm1853_vm5, %v1867_v37  ;;  %v1937_v50 = vadd.f32 %v1936_v47, %v1930_v54  ;;  %v1559_v40 = vpop.f32.mrf.mxu2  ;;  %v1588_v31 = vpop.f32.mrf.mxu3 }
 0x1ad   : > { %v1605_v12 = vadd.f32 %v1559_v40, %v1479_v58  ;;  %v1606_v10 = vadd.f32 %v1588_v31, %v1480_v9 }
 0x1af   : > { %v1841_v48 = vadd.f32 %v1795_v45, %v1605_v12  ;;  %v1842_v16 = vadd.f32 %v1824_v38, %v1606_v10  ;;  %v1797_v23 = vpop.f32.mrf.mxu0  ;;  %v1826_v20 = vpop.f32.mrf.mxu1 }
 0x1b1   : > { %v1851_v8 = vpack.c.bf16 %v1841_v48, %v1841_v48  ;;  %v1883_v30 = vadd.f32 %v1882_v17, %v1841_v48  ;;  %v1897_v25 = vmul.f32 %v1841_v48, %v1841_v48  ;;  %v1868_v46 = vpack.c.bf16 %v1842_v16, %v1842_v16 }
 0x1b2   : > { %v1917_v39 = vadd.f32 %v1916_v52, %v1842_v16  ;;  %v1931_v22 = vmul.f32 %v1842_v16, %v1842_v16 }
 0x1b3   : > { %1860 = vst.msk [vmem:[%s3009_s20 + $0x18] sm:$0xf] %vm1853_vm5, %v1851_v8  ;;  %v1904_v49 = vadd.f32 %v1903_v44, %v1897_v25 }
 0x1b4   : > { %1876 = vst.msk [vmem:[%s3014_s23 + $0x18] sm:$0xf] %vm1853_vm5, %v1868_v46  ;;  %v1938_v63 = vadd.f32 %v1937_v50, %v1931_v22  ;;  %v1561_v5 = vpop.f32.mrf.mxu2  ;;  %v1590_v4 = vpop.f32.mrf.mxu3 }
 0x1b5   : > { %v1607_v56 = vadd.f32 %v1561_v5, %v1481_v33  ;;  %v1608_v1 = vadd.f32 %v1590_v4, %v1482_v42 }
 0x1b7   : > { %v1843_v11 = vadd.f32 %v1797_v23, %v1607_v56  ;;  %v1844_v57 = vadd.f32 %v1826_v20, %v1608_v1 }
 0x1b9   : > { %v1852_v35 = vpack.c.bf16 %v1843_v11, %v1843_v11  ;;  %v1884_v41 = vadd.f32 %v1883_v30, %v1843_v11  ;;  %v1898_v19 = vmul.f32 %v1843_v11, %v1843_v11  ;;  %v1869_v43 = vpack.c.bf16 %v1844_v57, %v1844_v57 }
 0x1ba   : > { %v1918_v29 = vadd.f32 %v1917_v39, %v1844_v57  ;;  %v1932_v59 = vmul.f32 %v1844_v57, %v1844_v57 }
 0x1bb   : > { %1861 = vst.msk [vmem:[%s3009_s20 + $0x1c] sm:$0xf] %vm1853_vm5, %v1852_v35  ;;  %v1885_v3 = vrot.slane %v1884_v41, 4  ;;  %v1905_v0 = vadd.f32 %v1904_v49, %v1898_v19 }
 0x1bc   : > { %1877 = vst.msk [vmem:[%s3014_s23 + $0x1c] sm:$0xf] %vm1853_vm5, %v1869_v43  ;;  %v1919_v18 = vrot.slane %v1918_v29, 4  ;;  %v1939_v15 = vadd.f32 %v1938_v63, %v1932_v59 }
 0x1bd   : > { %v1886_v34 = vadd.f32 %v1885_v3, %v1884_v41  ;;  %v1906_v55 = vrot.slane %v1905_v0, 4 }
 0x1be   : > { %v1920_v61 = vadd.f32 %v1919_v18, %v1918_v29  ;;  %v1940_v24 = vrot.slane %v1939_v15, 4 }
 0x1bf   : > { %v1887_v14 = vrot.slane %v1886_v34, 2  ;;  %v1907_v26 = vadd.f32 %v1906_v55, %v1905_v0 }
 0x1c0   : > { %v1921_v53 = vrot.slane %v1920_v61, 2  ;;  %v1941_v47 = vadd.f32 %v1940_v24, %v1939_v15 }
 0x1c1   : > { %v1888_v27 = vadd.f32 %v1887_v14, %v1886_v34  ;;  %v1908_v28 = vrot.slane %v1907_v26, 2 }
 0x1c2   : > { %v1922_v62 = vadd.f32 %v1921_v53, %v1920_v61  ;;  %v1942_v6 = vrot.slane %v1941_v47, 2 }
 0x1c3   : > { %v1889_v7 = vrot.slane %v1888_v27, 1  ;;  %v1909_v60 = vadd.f32 %v1908_v28, %v1907_v26 }
 0x1c4   : > { %v1923_v2 = vrot.slane %v1922_v62, 1  ;;  %v1943_v36 = vadd.f32 %v1942_v6, %v1941_v47 }
 0x1c5   : > { %v1910_v13 = vrot.slane %v1909_v60, 1  ;;  %v1890_v21 = vadd.f32 %v1889_v7, %v1888_v27 }
 0x1c6   : > { %v1944_v17 = vrot.slane %v1943_v36, 1  ;;  %v1924_v52 = vadd.f32 %v1923_v2, %v1922_v62 }
 0x1c7   : > { %v1911_v37 = vadd.f32 %v1910_v13, %v1909_v60 }
 0x1c8   : > { %v1945_v9 = vadd.f32 %v1944_v17, %v1943_v36 }
 0x1c9   : > { %v1947_v54 = vsel %vm1946_vm6, %v1890_v21, %v1911_v37 }
 0x1ca   : > { %v1948_v44 = vsel %vm467_vm0, %v1947_v54, %v1924_v52 }
 0x1cb   : > { %v1950_v45 = vsel %vm1949_vm7, %v1948_v44, %v1945_v9 }
 0x1cc   : > { %1951 = vst [vmem:[%s403_s9] sm:$0xf] %v1950_v45 }
 0x1cd PF: > { %s18_s26 = sadd.s32 1, %s2475_s26   ;;  %s3106_s24 = smov %s2471_s25 }
 0x1ce   : > { %p15_p5 = scmp.ge.s32.totalorder %s18_s26, 4   ;;  %s3107_s25 = smov %s3109_s27 }
 0x1d0   :  { %17 = sbr.rel (!%p15_p5) target bundleno = 2 (0x2), region = 117 }

// kernel: block_forward.4
= control target key start
LH: loop header
LB: loop body
LE: loop exit
PB: predicated region body
PF: predicated region fallthrough
CT: control target
= control target key end

     0   :  { %s2309_s15 = smov 0   ;;  %s2311_s16 = smov 0   ;;  %s2986_s0 = inlined_call_operand.vmem [shape: bf16[2,10,10,32], index: 0, kind: input, shape index: {}]   ;;  %s2987_s1 = inlined_call_operand.vmem [shape: f32[2,32], index: 1, kind: input, shape index: {}]   ;;  %s2988_s2 = inlined_call_operand.vmem [shape: bf16[9,32,128], index: 2, kind: input, shape index: {}]   ;;  %s2989_s3 = inlined_call_operand.vmem [shape: bf16[2,8,8,32], index: 3, kind: output, shape index: {0}]   ;;  %s2990_s4 = inlined_call_operand.vmem [shape: f32[2,1,2,128], index: 4, kind: output, shape index: {1}]  }
   0x1   :  { %s2313_s17 = smov 0  }
   0x2 LB: > { %s27_s18 = sadd.s32 1, %s2278_s16  ;;  %p1971_p0 = scmp.ge.s32.totalorder %s2282_s17, 1  ;;  %s2282_s17 = sphi %s2313_s17, %s15_s17   ;;  %s2278_s16 = sphi %s2311_s16, %s2996_s16   ;;  %s2274_s15 = sphi %s2309_s15, %s2995_s15  }
   0x3   : > { %p29_p1 = scmp.ge.s32.totalorder %s27_s18, 2  ;;  %p181_p2 = scmp.lt.s32.totalorder %s2282_s17, 3 }
   0x5   : > { %s2998_s18 = smov (%p29_p1, %s27_s18), 0  ;;  %p182_p3 = pnand %p1971_p0, %p181_p2 }
   0x6   : > { %p218_p4 = scmp.lt.s32.totalorder (!%p182_p3), %s2274_s15, 1 }
   0x7   : > { %185 = sbr.rel (%p182_p3) target bundleno = 341 (0x155), region = 32 }
   0xc   : > { %v2210_v0 = vld [vmem:[%s2988_s2 + $0x18] sm:$0xff]  ;;  %v2209_v1 = vld [vmem:[%s2988_s2 + $0x10] sm:$0xff]  ;;  %s3000_s15 = smov (!%p218_p4, %s2274_s15), 1  ;;  %vm305_vm0 = vsmask.f32 3328  ;;  %v2212_v2 = vld [vmem:[%s2988_s2 + $0x28] sm:$0xff] }
   0xd   : > { %2225 = vmatpush.bf16.msra.mxu1 %v2210_v0  ;;  %2226 = vmatpush.bf16.msra.mxu2 %v2210_v0  ;;  %s2231_s23 = smul.u32 80, %s3000_s15  ;;  %vm306_vm1 = vsmask.f32 7440  ;;  %v2395_v40 = vld [vmem:[%s2987_s1] ss:$0 sm:$0xff]  ;;  %v2214_v45 = vld [vmem:[%s2988_s2 + $0x38] sm:$0xff] }
   0xe   : > { %2227 = vmatpush.bf16.msra.mxu3 %v2210_v0  ;;  %500 = vmatpush.bf16.msra.mxu0 %v2210_v0  ;;  %vm2384_vm2 = vmor %vm305_vm0, %vm306_vm1  ;;  %v2411_v51 = vld [vmem:[%s2987_s1 + $0x1] ss:$0 sm:$0xff]  ;;  %vm481_vm3 = vcmask 261120   ;;  %v2208_v60 = vld [vmem:[%s2988_s2 + $0x8] sm:$0xff]  ;;  %vm600_vm4 = vcmask 1042432   ;;  %vm601_vm5 = vcmask 1046532  }
   0xf   : > { %s2339_s26 = scalar_lea.vmem %s2986_s0, %s2231_s23  ;;  %v2211_v61 = vld [vmem:[%s2988_s2 + $0x20] sm:$0xff]  ;;  %v2213_v62 = vld [vmem:[%s2988_s2 + $0x30] sm:$0xff]  ;;  %vm2486_vm6 = vmor %vm600_vm4, %vm601_vm5  ;;  %vm1789_vm7 = vcmask 257024   ;;  %s1975_s28 = sshll.u32 %s3000_s15, 1  ;;  %vm1832_vm8 = vcmask 1040384  }
  0x10   : > { %v2345_v3 = vld [vmem:[%s2339_s26 + $0x10] sm:$0xf]  ;;  %v2348_v4 = vld [vmem:[%s2339_s26 + $0x18] sm:$0xf]  ;;  %v2351_v5 = vld [vmem:[%s2339_s26 + $0x14] sm:$0x1]  ;;  %s239_s5 = scalar_lea.vmem %s2990_s4, %s1975_s28 }
  0x11   : > { %2228 = vmatpush.bf16.msra.mxu1 %v2209_v1  ;;  %2229 = vmatpush.bf16.msra.mxu2 %v2209_v1  ;;  %v2354_v6 = vld [vmem:[%s2339_s26 + $0x1c] sm:$0x1]  ;;  %v337_v7 = vshrl.u32 %v2345_v3, 16  ;;  %v340_v8 = vshll.u32 %v2345_v3, 16  ;;  %v346_v9 = vshll.u32 %v2351_v5, 16  ;;  %v351_v10 = vshrl.u32 %v2348_v4, 16 }
  0x12   : > { %2230 = vmatpush.bf16.msra.mxu3 %v2209_v1  ;;  %501 = vmatpush.bf16.msra.mxu0 %v2209_v1  ;;  %v354_v11 = vshll.u32 %v2348_v4, 16  ;;  %v360_v12 = vshll.u32 %v2354_v6, 16  ;;  %v2363_v13 = vld [vmem:[%s2339_s26 + $0x20] sm:$0xf]  ;;  %v2366_v14 = vld [vmem:[%s2339_s26 + $0x28] sm:$0xf] }
  0x13   : > { %v339_v15 = vrot.slane %v337_v7, 4  ;;  %v342_v16 = vrot.slane %v340_v8, 5  ;;  %v348_v17 = vrot.slane %v346_v9, 5  ;;  %v353_v18 = vrot.slane %v351_v10, 4  ;;  %v2369_v19 = vld [vmem:[%s2339_s26 + $0x24] sm:$0x1] }
  0x14   : > { %v356_v20 = vrot.slane %v354_v11, 5  ;;  %v362_v21 = vrot.slane %v360_v12, 5  ;;  %v2372_v22 = vld [vmem:[%s2339_s26 + $0x2c] sm:$0x1]  ;;  %v365_v23 = vshrl.u32 %v2363_v13, 16  ;;  %v368_v24 = vshll.u32 %v2363_v13, 16 }
  0x15   : > { %714 = vmatpush.bf16.msrb.mxu2 %v2212_v2  ;;  %v343_v25 = vor.u32 %v342_v16, %v339_v15  ;;  %v374_v26 = vshll.u32 %v2369_v19, 16  ;;  %v379_v27 = vshrl.u32 %v2366_v14, 16  ;;  %v382_v28 = vshll.u32 %v2366_v14, 16  ;;  %v2380_v29 = vld [vmem:[%s2339_s26 + $0x30] sm:$0xf]  ;;  %v2216_v8 = vld [vmem:[%s2988_s2 + $0x48] sm:$0xff]  ;;  %553 = vmatpush.bf16.msrb.mxu1 %v2208_v60 }
  0x16   : > { %v357_v31 = vor.u32 %v356_v20, %v353_v18  ;;  %v367_v32 = vrot.slane %v365_v23, 4  ;;  %v370_v33 = vrot.slane %v368_v24, 5  ;;  %v388_v34 = vshll.u32 %v2372_v22, 16  ;;  %v2390_v39 = vld [vmem:[%s2339_s26 + $0x34] sm:$0x1]  ;;  %828 = vmatpush.bf16.msrb.mxu3 %v2214_v45  ;;  %v2207_v16 = vld [vmem:[%s2988_s2] sm:$0xff]  ;;  %1066 = vmatpush.bf16.msrb.mxu0 %v2216_v8 }
  0x17   : > { %v344_v35 = vrot.slane %v343_v25, 4  ;;  %v376_v36 = vrot.slane %v374_v26, 5  ;;  %v381_v37 = vrot.slane %v379_v27, 4  ;;  %v384_v38 = vrot.slane %v382_v28, 5  ;;  %v2404_v48 = vld [vmem:[%s2339_s26 + $0x38] sm:$0xf] }
  0x18   : > { %v358_v41 = vrot.slane %v357_v31, 4  ;;  %v371_v42 = vor.u32 %v370_v33, %v367_v32  ;;  %v390_v43 = vrot.slane %v388_v34, 5  ;;  %v393_v44 = vshrl.u32 %v2380_v29, 16  ;;  %v2428_v1 = vld [vmem:[%s2339_s26 + $0x3c] sm:$0x1]  ;;  %v2215_v23 = vld [vmem:[%s2988_s2 + $0x40] sm:$0xff] }
  0x19   : > { %v349_v46 = vsel %vm2384_vm2, %v344_v35, %v348_v17  ;;  %v385_v47 = vor.u32 %v384_v38, %v381_v37  ;;  %v396_v49 = vshll.u32 %v2380_v29, 16  ;;  %v402_v50 = vshll.u32 %v2390_v39, 16  ;;  %v2439_v15 = vld [vmem:[%s2339_s26] sm:$0xf]  ;;  %715 = vmatpush.bf16.msrb.mxu2 %v2211_v61  ;;  %v2453_v33 = vld [vmem:[%s2339_s26 + $0x4] sm:$0x1]  ;;  %554 = vmatpush.bf16.msrb.mxu1 %v2207_v16 }
  0x1a   : > { %v363_v52 = vsel %vm2384_vm2, %v358_v41, %v362_v21  ;;  %v430_v53 = vunpack.c.l.bf16 %v349_v46  ;;  %v372_v54 = vrot.slane %v371_v42, 4  ;;  %v395_v55 = vrot.slane %v393_v44, 4  ;;  %829 = vmatpush.bf16.msrb.mxu3 %v2213_v62  ;;  %v248_v41 = vld [vmem:[%s2339_s26 + $0x8] sm:$0xf]  ;;  %1067 = vmatpush.bf16.msrb.mxu0 %v2215_v23 }
  0x1b   : > { %v431_v56 = vunpack.c.l.bf16 %v363_v52  ;;  %v386_v57 = vrot.slane %v385_v47, 4  ;;  %v398_v58 = vrot.slane %v396_v49, 5  ;;  %v404_v59 = vrot.slane %v402_v50, 5  ;;  %v298_v49 = vld [vmem:[%s2339_s26 + $0xc] sm:$0x1] }
  0x1c   : > { %v438_v63 = vmul.f32 %v2395_v40, %v430_v53  ;;  %v377_v0 = vsel %vm2384_vm2, %v372_v54, %v376_v36  ;;  %v407_v2 = vshrl.u32 %v2404_v48, 16  ;;  %v410_v7 = vshll.u32 %v2404_v48, 16  ;;  %v2220_v61 = vld [vmem:[%s2988_s2 + $0x68] sm:$0xff] }
  0x1d   : > { %v439_v9 = vmul.f32 %v2395_v40, %v431_v56  ;;  %v391_v10 = vsel %vm2384_vm2, %v386_v57, %v390_v43  ;;  %v432_v11 = vunpack.c.l.bf16 %v377_v0  ;;  %v399_v12 = vor.u32 %v398_v58, %v395_v55 }
  0x1e   : > { %v446_v17 = vadd.f32 %v2411_v51, %v438_v63  ;;  %v433_v18 = vunpack.c.l.bf16 %v391_v10  ;;  %v409_v20 = vrot.slane %v407_v2, 4  ;;  %v412_v21 = vrot.slane %v410_v7, 5 }
  0x1f   : > { %v447_v24 = vadd.f32 %v2411_v51, %v439_v9  ;;  %v440_v25 = vmul.f32 %v2395_v40, %v432_v11  ;;  %v400_v26 = vrot.slane %v399_v12, 4  ;;  %v416_v27 = vshll.u32 %v2428_v1, 16  ;;  %v576_v11 = vld [vmem:[%s2339_s26] sm:$0xe] }
  0x20   : > { %v454_v28 = vmax.f32 %v446_v17, 0.0  ;;  %v441_v31 = vmul.f32 %v2395_v40, %v433_v18  ;;  %v413_v32 = vor.u32 %v412_v21, %v409_v20  ;;  %v309_v34 = vshrl.u32 %v2439_v15, 16  ;;  %v2218_v20 = vld [vmem:[%s2988_s2 + $0x58] sm:$0xff] }
  0x21   : > { %v455_v35 = vmax.f32 %v447_v24, 0.0  ;;  %v448_v36 = vadd.f32 %v2411_v51, %v440_v25  ;;  %v405_v37 = vsel %vm2384_vm2, %v400_v26, %v404_v59  ;;  %v418_v38 = vrot.slane %v416_v27, 5  ;;  %v577_v26 = vld [vmem:[%s2339_s26 + $0x8] sm:$0xe] }
  0x22   : > { %v449_v42 = vadd.f32 %v2411_v51, %v441_v31  ;;  %v414_v43 = vrot.slane %v413_v32, 4  ;;  %v434_v44 = vunpack.c.l.bf16 %v405_v37  ;;  %v311_v45 = vrot.slane %v309_v34, 4 }
  0x23   : > { %v461_v46 = vpack.c.bf16 %v455_v35, %v454_v28  ;;  %v456_v47 = vmax.f32 %v448_v36, 0.0  ;;  %v312_v50 = vshll.u32 %v2439_v15, 16  ;;  %v318_v52 = vshll.u32 %v2453_v33, 16 }
  0x24   : > { %v457_v53 = vmax.f32 %v449_v42, 0.0  ;;  %v419_v54 = vsel %vm2384_vm2, %v414_v43, %v418_v38  ;;  %v442_v55 = vmul.f32 %v2395_v40, %v434_v44  ;;  %v323_v56 = vshrl.u32 %v248_v41, 16  ;;  %v2222_v42 = vld [vmem:[%s2988_s2 + $0x78] sm:$0xff] }
  0x25   : > { %1989 = vmatmul.msk.bf16.vlgmr.msra.gmra.mxu1 %vm481_vm3, %v461_v46  ;;  %v435_v57 = vunpack.c.l.bf16 %v419_v54  ;;  %v314_v58 = vrot.slane %v312_v50, 5  ;;  %v320_v59 = vrot.slane %v318_v52, 5  ;;  %v326_v60 = vshll.u32 %v248_v41, 16 }
  0x26   : > { %v462_v62 = vpack.c.bf16 %v457_v53, %v456_v47  ;;  %v450_v63 = vadd.f32 %v2411_v51, %v442_v55  ;;  %v325_v0 = vrot.slane %v323_v56, 4  ;;  %v332_v2 = vshll.u32 %v298_v49, 16  ;;  %1232 = vmatpush.bf16.msra.mxu1 %v2218_v20  ;;  %v2029_v47 = vld [vmem:[%s2339_s26 + $0x10] sm:$0xf] }
  0x27   : > { %v443_v7 = vmul.f32 %v2395_v40, %v435_v57  ;;  %v315_v8 = vor.u32 %v314_v58, %v311_v45  ;;  %v328_v9 = vrot.slane %v326_v60, 5  ;;  %v605_v10 = vrot.slane %v2453_v33, 5 }
  0x28   : > { %1990 = vmatmul.msk.bf16.vlgmr.msra.gmra.mxu2 %vm481_vm3, %v462_v62  ;;  %v458_v12 = vmax.f32 %v450_v63, 0.0  ;;  %v334_v16 = vrot.slane %v332_v2, 5  ;;  %v609_v17 = vrot.slane %v298_v49, 5  ;;  %v255_v18 = vunpack.c.l.bf16 %v2439_v15  ;;  %v2052_v49 = vld [vmem:[%s2339_s26 + $0x8] sm:$0xf] }
  0x29   : > { %v451_v21 = vadd.f32 %v2411_v51, %v443_v7  ;;  %v316_v23 = vrot.slane %v315_v8, 4  ;;  %v329_v24 = vor.u32 %v328_v9, %v325_v0  ;;  %v256_v25 = vunpack.c.l.bf16 %v248_v41  ;;  %1346 = vmatpush.bf16.msra.mxu2 %v2220_v61  ;;  %v2028_v41 = vld [vmem:[%s2339_s26 + $0x8] sm:$0xf]  ;;  %v2513_v8 = vld [vmem:[%s2339_s26 + $0xc] sm:$0x1] }
  0x2a   : > { %v264_v27 = vmul.f32 %v2395_v40, %v255_v18  ;;  %v2004_v28 = vrot.slane %v576_v11, 9  ;;  %v2005_v38 = vrot.slane %v577_v26, 9  ;;  %v757_v58 = vunpack.c.l.bf16 %v2028_v41  ;;  %v2054_v9 = vld [vmem:[%s2339_s26 + $0x10] sm:$0xf] }
  0x2b   : > { %v459_v15 = vmax.f32 %v451_v21, 0.0  ;;  %v321_v31 = vsel %vm2384_vm2, %v316_v23, %v320_v59  ;;  %v330_v32 = vrot.slane %v329_v24, 4  ;;  %v265_v33 = vmul.f32 %v2395_v40, %v256_v25  ;;  %v2522_v25 = vld [vmem:[%s2339_s26 + $0x14] sm:$0x1] }
  0x2c   : > { %v428_v35 = vunpack.c.l.bf16 %v321_v31  ;;  %v273_v36 = vadd.f32 %v2411_v51, %v264_v27  ;;  %v606_v37 = vsel %vm2486_vm6, %v2004_v28, %v605_v10  ;;  %v610_v54 = vsel %vm2486_vm6, %v2005_v38, %v609_v17 }
  0x2d   : > { %v463_v43 = vpack.c.bf16 %v459_v15, %v458_v12  ;;  %v335_v44 = vsel %vm2384_vm2, %v330_v32, %v334_v16  ;;  %v274_v45 = vadd.f32 %v2411_v51, %v265_v33  ;;  %v643_v46 = vunpack.c.l.bf16 %v606_v37  ;;  %v2224_v33 = vld [vmem:[%s2988_s2 + $0x88] sm:$0xff] }
  0x2e   : > { %v429_v50 = vunpack.c.l.bf16 %v335_v44  ;;  %v436_v52 = vmul.f32 %v2395_v40, %v428_v35  ;;  %v281_v53 = vmax.f32 %v273_v36, 0.0  ;;  %v644_v56 = vunpack.c.l.bf16 %v610_v54 }
  0x2f   : > { %1991 = vmatmul.msk.bf16.vlgmr.msra.gmra.mxu3 %vm481_vm3, %v463_v43  ;;  %v282_v55 = vmax.f32 %v274_v45, 0.0  ;;  %v651_v57 = vmul.f32 %v2395_v40, %v643_v46  ;;  %v758_v61 = vunpack.c.l.bf16 %v2029_v47  ;;  %v876_v62 = vshrl.u32 %v2052_v49, 16  ;;  %v578_v45 = vld [vmem:[%s2339_s26 + $0x10] sm:$0xe]  ;;  %v579_v46 = vld [vmem:[%s2339_s26 + $0x18] sm:$0xe] }
  0x30   : > { %v437_v59 = vmul.f32 %v2395_v40, %v429_v50  ;;  %v444_v60 = vadd.f32 %v2411_v51, %v436_v52  ;;  %1584 = vmatpush.bf16.msra.mxu3 %v2222_v42  ;;  %v652_v0 = vmul.f32 %v2395_v40, %v644_v56  ;;  %v765_v7 = vmul.f32 %v2395_v40, %v757_v58 }
  0x31   : > { %v289_v63 = vpack.c.bf16 %v282_v55, %v281_v53  ;;  %v659_v2 = vadd.f32 %v2411_v51, %v651_v57  ;;  %v766_v12 = vmul.f32 %v2395_v40, %v758_v61  ;;  %v878_v16 = vrot.slane %v876_v62, 4  ;;  %v2030_v57 = vld [vmem:[%s2339_s26 + $0x18] sm:$0xf] }
  0x32   : > { %v445_v10 = vadd.f32 %v2411_v51, %v437_v59  ;;  %v452_v11 = vmax.f32 %v444_v60, 0.0  ;;  %v660_v17 = vadd.f32 %v2411_v51, %v652_v0  ;;  %v773_v20 = vadd.f32 %v2411_v51, %v765_v7 }
  0x33   : > { %v667_v18 = vmax.f32 %v659_v2, 0.0  ;;  %v879_v21 = vshll.u32 %v2052_v49, 16  ;;  %v774_v24 = vadd.f32 %v2411_v51, %v766_v12  ;;  %v885_v26 = vshll.u32 %v2513_v8, 16 }
  0x34   : > { %v453_v23 = vmax.f32 %v445_v10, 0.0  ;;  %v890_v27 = vshrl.u32 %v2054_v9, 16  ;;  %v668_v28 = vmax.f32 %v660_v17, 0.0  ;;  %v781_v15 = vmax.f32 %v773_v20, 0.0  ;;  %v2056_v17 = vld [vmem:[%s2339_s26 + $0x18] sm:$0xf] }
  0x35   : > { %2000 = vmatmul.msk.bf16.vlgmr.msrb.gmra.mxu1 %vm481_vm3, %v289_v63  ;;  %v881_v31 = vrot.slane %v879_v21, 5  ;;  %v893_v32 = vshll.u32 %v2054_v9, 16  ;;  %v782_v36 = vmax.f32 %v774_v24, 0.0  ;;  %v887_v37 = vrot.slane %v885_v26, 5  ;;  %v2031_v9 = vld [vmem:[%s2339_s26 + $0x20] sm:$0xf] }
  0x36   : > { %v460_v35 = vpack.c.bf16 %v453_v23, %v452_v11  ;;  %v892_v38 = vrot.slane %v890_v27, 4  ;;  %v675_v41 = vpack.c.bf16 %v668_v28, %v667_v18  ;;  %v899_v44 = vshll.u32 %v2522_v25, 16  ;;  %v2219_v28 = vld [vmem:[%s2988_s2 + $0x60] sm:$0xff] }
  0x37   : > { %v882_v42 = vor.u32 %v881_v31, %v878_v16  ;;  %v895_v43 = vrot.slane %v893_v32, 5  ;;  %v789_v47 = vpack.c.bf16 %v782_v36, %v781_v15  ;;  %v1123_v49 = vrot.slane %v2513_v8, 5  ;;  %1347 = vmatpush.bf16.msra.mxu2 %v2219_v28 }
  0x38   : > { %1988 = vmatmul.msk.bf16.vlgmr.msra.gmra.mxu0 %vm481_vm3, %v460_v35  ;;  %v1127_v50 = vrot.slane %v2522_v25, 5  ;;  %v257_v52 = vunpack.c.l.bf16 %v2345_v3  ;;  %2024 = vmatmul.msk.bf16.vlgmr.msrb.gmra.mxu2 %vm481_vm3, %v675_v41  ;;  %v901_v55 = vrot.slane %v899_v44, 5  ;;  %v258_v56 = vunpack.c.l.bf16 %v2348_v4  ;;  %v2569_v41 = vld [vmem:[%s2339_s26 + $0x1c] sm:$0x1] }
  0x39   : > { %v883_v53 = vrot.slane %v882_v42, 4  ;;  %v896_v54 = vor.u32 %v895_v43, %v892_v38  ;;  %1750 = vmatpush.bf16.msra.mxu0 %v2224_v33  ;;  %v2006_v59 = vrot.slane %v578_v45, 9  ;;  %v613_v60 = vrot.slane %v2351_v5, 5  ;;  %v2058_v42 = vld [vmem:[%s2339_s26 + $0x20] sm:$0xf] }
  0x3a   : > { %v266_v58 = vmul.f32 %v2395_v40, %v257_v52  ;;  %v2007_v61 = vrot.slane %v579_v46, 9  ;;  %v267_v63 = vmul.f32 %v2395_v40, %v258_v56  ;;  %v617_v0 = vrot.slane %v2354_v6, 5  ;;  %v2575_v46 = vld [vmem:[%s2339_s26 + $0x24] sm:$0x1] }
  0x3b   : > { %v888_v3 = vsel %vm2384_vm2, %v883_v53, %v887_v37  ;;  %v897_v62 = vrot.slane %v896_v54, 4  ;;  %v614_v4 = vsel %vm2486_vm6, %v2006_v59, %v613_v60  ;;  %v759_v10 = vunpack.c.l.bf16 %v2030_v57 }
  0x3c   : > { %v995_v2 = vunpack.c.l.bf16 %v888_v3  ;;  %v275_v7 = vadd.f32 %v2411_v51, %v266_v58  ;;  %v276_v11 = vadd.f32 %v2411_v51, %v267_v63  ;;  %v618_v12 = vsel %vm2486_vm6, %v2007_v61, %v617_v0  ;;  %v580_v63 = vld [vmem:[%s2339_s26 + $0x20] sm:$0xe] }
  0x3d   : > { %v902_v5 = vsel %vm2384_vm2, %v897_v62, %v901_v55  ;;  %v645_v16 = vunpack.c.l.bf16 %v614_v4  ;;  %v646_v21 = vunpack.c.l.bf16 %v618_v12  ;;  %v760_v26 = vunpack.c.l.bf16 %v2031_v9  ;;  %v581_v9 = vld [vmem:[%s2339_s26 + $0x28] sm:$0xe] }
  0x3e   : > { %v996_v18 = vunpack.c.l.bf16 %v902_v5  ;;  %v1003_v6 = vmul.f32 %v2395_v40, %v995_v2  ;;  %v283_v20 = vmax.f32 %v275_v7, 0.0  ;;  %v284_v23 = vmax.f32 %v276_v11, 0.0 }
  0x3f   : > { %2048 = vmatmul.msk.bf16.vlgmr.msrb.gmra.mxu3 %vm481_vm3, %v789_v47  ;;  %v653_v24 = vmul.f32 %v2395_v40, %v645_v16  ;;  %v767_v27 = vmul.f32 %v2395_v40, %v759_v10  ;;  %v654_v32 = vmul.f32 %v2395_v40, %v646_v21  ;;  %v904_v33 = vshrl.u32 %v2056_v17, 16  ;;  %v2032_v16 = vld [vmem:[%s2339_s26 + $0x28] sm:$0xf]  ;;  %v2221_v21 = vld [vmem:[%s2988_s2 + $0x70] sm:$0xff] }
  0x40   : > { %v1004_v15 = vmul.f32 %v2395_v40, %v996_v18  ;;  %v1011_v31 = vadd.f32 %v2411_v51, %v1003_v6  ;;  %v290_v35 = vpack.c.bf16 %v284_v23, %v283_v20  ;;  %v768_v37 = vmul.f32 %v2395_v40, %v760_v26  ;;  %v2217_v23 = vld [vmem:[%s2988_s2 + $0x50] sm:$0xff]  ;;  %1585 = vmatpush.bf16.msra.mxu3 %v2221_v21 }
  0x41   : > { %v661_v36 = vadd.f32 %v2411_v51, %v653_v24  ;;  %v775_v38 = vadd.f32 %v2411_v51, %v767_v27  ;;  %v662_v45 = vadd.f32 %v2411_v51, %v654_v32  ;;  %v906_v47 = vrot.slane %v904_v33, 4  ;;  %v2223_v24 = vld [vmem:[%s2988_s2 + $0x80] sm:$0xff]  ;;  %1233 = vmatpush.bf16.msra.mxu1 %v2217_v23 }
  0x42   : > { %v1012_v43 = vadd.f32 %v2411_v51, %v1004_v15  ;;  %v1019_v44 = vmax.f32 %v1011_v31, 0.0  ;;  %v776_v53 = vadd.f32 %v2411_v51, %v768_v37  ;;  %v907_v55 = vshll.u32 %v2056_v17, 16  ;;  %v2033_v31 = vld [vmem:[%s2339_s26 + $0x30] sm:$0xf]  ;;  %1751 = vmatpush.bf16.msra.mxu0 %v2223_v24 }
  0x43   : > { %v669_v52 = vmax.f32 %v661_v36, 0.0  ;;  %v783_v54 = vmax.f32 %v775_v38, 0.0  ;;  %v670_v57 = vmax.f32 %v662_v45, 0.0  ;;  %v913_v58 = vshll.u32 %v2569_v41, 16 }
  0x44   : > { %v1020_v56 = vmax.f32 %v1012_v43, 0.0  ;;  %v918_v59 = vshrl.u32 %v2058_v42, 16  ;;  %v784_v60 = vmax.f32 %v776_v53, 0.0  ;;  %v909_v61 = vrot.slane %v907_v55, 5  ;;  %v2060_v53 = vld [vmem:[%s2339_s26 + $0x28] sm:$0xf] }
  0x45   : > { %2001 = vmatmul.msk.bf16.gmra.mxu1 %vm481_vm3, %v290_v35  ;;  %v921_v3 = vshll.u32 %v2058_v42, 16  ;;  %v927_v62 = vshll.u32 %v2575_v46, 16  ;;  %v676_v2 = vpack.c.bf16 %v670_v57, %v669_v52  ;;  %v915_v7 = vrot.slane %v913_v58, 5 }
  0x46   : > { %v1027_v0 = vpack.c.bf16 %v1020_v56, %v1019_v44  ;;  %v920_v4 = vrot.slane %v918_v59, 4  ;;  %v790_v10 = vpack.c.bf16 %v784_v60, %v783_v54  ;;  %v910_v5 = vor.u32 %v909_v61, %v906_v47 }
  0x47   : > { %v923_v11 = vrot.slane %v921_v3, 5  ;;  %v929_v12 = vrot.slane %v927_v62, 5  ;;  %v259_v17 = vunpack.c.l.bf16 %v2363_v13  ;;  %v260_v18 = vunpack.c.l.bf16 %v2366_v14 }
  0x48   : > { %2080 = vmatmul.msk.bf16.vlgmr.msrb.gmra.mxu0 %vm481_vm3, %v1027_v0  ;;  %v2008_v6 = vrot.slane %v580_v63, 9  ;;  %v621_v20 = vrot.slane %v2369_v19, 5  ;;  %2025 = vmatmul.msk.bf16.gmra.mxu2 %vm481_vm3, %v676_v2  ;;  %v911_v13 = vrot.slane %v910_v5, 4  ;;  %v2009_v14 = vrot.slane %v581_v9, 9  ;;  %v2624_v0 = vld [vmem:[%s2339_s26 + $0x2c] sm:$0x1] }
  0x49   : > { %v924_v26 = vor.u32 %v923_v11, %v920_v4  ;;  %v625_v27 = vrot.slane %v2372_v22, 5  ;;  %v268_v19 = vmul.f32 %v2395_v40, %v259_v17  ;;  %v269_v28 = vmul.f32 %v2395_v40, %v260_v18  ;;  %v2062_v2 = vld [vmem:[%s2339_s26 + $0x30] sm:$0xf]  ;;  %v2630_v11 = vld [vmem:[%s2339_s26 + $0x34] sm:$0x1] }
  0x4a   : > { %v622_v15 = vsel %vm2486_vm6, %v2008_v6, %v621_v20  ;;  %v761_v32 = vunpack.c.l.bf16 %v2032_v16  ;;  %v916_v33 = vsel %vm2384_vm2, %v911_v13, %v915_v7  ;;  %v762_v47 = vunpack.c.l.bf16 %v2033_v31 }
  0x4b   : > { %v925_v35 = vrot.slane %v924_v26, 4  ;;  %v626_v36 = vsel %vm2486_vm6, %v2009_v14, %v625_v27  ;;  %v647_v22 = vunpack.c.l.bf16 %v622_v15  ;;  %v997_v37 = vunpack.c.l.bf16 %v916_v33  ;;  %v582_v27 = vld [vmem:[%s2339_s26 + $0x30] sm:$0xe] }
  0x4c   : > { %v277_v38 = vadd.f32 %v2411_v51, %v268_v19  ;;  %v278_v42 = vadd.f32 %v2411_v51, %v269_v28  ;;  %v648_v43 = vunpack.c.l.bf16 %v626_v36  ;;  %v769_v52 = vmul.f32 %v2395_v40, %v761_v32  ;;  %v583_v32 = vld [vmem:[%s2339_s26 + $0x38] sm:$0xe] }
  0x4d   : > { %v930_v44 = vsel %vm2384_vm2, %v925_v35, %v929_v12  ;;  %v655_v45 = vmul.f32 %v2395_v40, %v647_v22  ;;  %v1005_v55 = vmul.f32 %v2395_v40, %v997_v37  ;;  %v770_v60 = vmul.f32 %v2395_v40, %v762_v47  ;;  %v2034_v37 = vld [vmem:[%s2339_s26 + $0x38] sm:$0xf] }
  0x4e   : > { %v998_v54 = vunpack.c.l.bf16 %v930_v44  ;;  %v285_v56 = vmax.f32 %v277_v38, 0.0  ;;  %v286_v57 = vmax.f32 %v278_v42, 0.0  ;;  %v656_v58 = vmul.f32 %v2395_v40, %v648_v43 }
  0x4f   : > { %2049 = vmatmul.msk.bf16.gmra.mxu3 %vm481_vm3, %v790_v10  ;;  %v663_v59 = vadd.f32 %v2411_v51, %v655_v45  ;;  %v777_v61 = vadd.f32 %v2411_v51, %v769_v52  ;;  %v1013_v62 = vadd.f32 %v2411_v51, %v1005_v55  ;;  %v932_v7 = vshrl.u32 %v2060_v53, 16 }
  0x50   : > { %v1006_v3 = vmul.f32 %v2395_v40, %v998_v54  ;;  %v291_v63 = vpack.c.bf16 %v286_v57, %v285_v56  ;;  %v664_v4 = vadd.f32 %v2411_v51, %v656_v58  ;;  %v778_v10 = vadd.f32 %v2411_v51, %v770_v60 }
  0x51   : > { %v671_v9 = vmax.f32 %v663_v59, 0.0  ;;  %v785_v5 = vmax.f32 %v777_v61, 0.0  ;;  %v1021_v16 = vmax.f32 %v1013_v62, 0.0  ;;  %v934_v17 = vrot.slane %v932_v7, 4 }
  0x52   : > { %v1014_v12 = vadd.f32 %v2411_v51, %v1006_v3  ;;  %v935_v18 = vshll.u32 %v2060_v53, 16  ;;  %v672_v6 = vmax.f32 %v664_v4, 0.0  ;;  %v786_v20 = vmax.f32 %v778_v10, 0.0  ;;  %v2064_v4 = vld [vmem:[%s2339_s26 + $0x38] sm:$0xf] }
  0x53   : > { %v941_v21 = vshll.u32 %v2624_v0, 16  ;;  %v946_v23 = vshrl.u32 %v2062_v2, 16  ;;  %v949_v26 = vshll.u32 %v2062_v2, 16  ;;  %v955_v14 = vshll.u32 %v2630_v11, 16 }
  0x54   : > { %v1022_v24 = vmax.f32 %v1014_v12, 0.0  ;;  %v937_v13 = vrot.slane %v935_v18, 5  ;;  %v677_v19 = vpack.c.bf16 %v672_v6, %v671_v9  ;;  %v791_v28 = vpack.c.bf16 %v786_v20, %v785_v5 }
  0x55   : > { %2002 = vmatmul.msk.bf16.gmra.mxu1 %vm481_vm3, %v291_v63  ;;  %v943_v15 = vrot.slane %v941_v21, 5  ;;  %v948_v31 = vrot.slane %v946_v23, 4  ;;  %v951_v36 = vrot.slane %v949_v26, 5  ;;  %v957_v22 = vrot.slane %v955_v14, 5 }
  0x56   : > { %v1028_v33 = vpack.c.bf16 %v1022_v24, %v1021_v16  ;;  %v938_v35 = vor.u32 %v937_v13, %v934_v17  ;;  %v261_v38 = vunpack.c.l.bf16 %v2380_v29  ;;  %v262_v42 = vunpack.c.l.bf16 %v2404_v48  ;;  %v2035_v48 = vld [vmem:[%s2339_s26 + $0x40] sm:$0xf]  ;;  %v2670_v24 = vld [vmem:[%s2339_s26 + $0x3c] sm:$0x1] }
  0x57   : > { %v2010_v43 = vrot.slane %v582_v27, 9  ;;  %v629_v44 = vrot.slane %v2390_v39, 5  ;;  %v952_v47 = vor.u32 %v951_v36, %v948_v31  ;;  %v2011_v52 = vrot.slane %v583_v32, 9  ;;  %v2066_v13 = vld [vmem:[%s2339_s26 + $0x40] sm:$0xf] }
  0x58   : > { %2081 = vmatmul.msk.bf16.gmra.mxu0 %vm481_vm3, %v1028_v33  ;;  %v939_v45 = vrot.slane %v938_v35, 4  ;;  %v633_v53 = vrot.slane %v2428_v1, 5  ;;  %2026 = vmatmul.msk.bf16.gmra.mxu2 %vm481_vm3, %v677_v19  ;;  %v270_v54 = vmul.f32 %v2395_v40, %v261_v38  ;;  %v271_v55 = vmul.f32 %v2395_v40, %v262_v42  ;;  %v2676_v31 = vld [vmem:[%s2339_s26 + $0x44] sm:$0x1]  ;;  %v2084_v36 = vld [vmem:[%s2339_s26 + $0x8] sm:$0xe] }
  0x59   : > { %v630_v29 = vsel %vm2486_vm6, %v2010_v43, %v629_v44  ;;  %v763_v56 = vunpack.c.l.bf16 %v2034_v37  ;;  %v953_v57 = vrot.slane %v952_v47, 4  ;;  %v764_v2 = vunpack.c.l.bf16 %v2035_v48  ;;  %v2116_v44 = vld [vmem:[%s2339_s26 + $0x10] sm:$0xf] }
  0x5a   : > { %v944_v39 = vsel %vm2384_vm2, %v939_v45, %v943_v15  ;;  %v634_v58 = vsel %vm2486_vm6, %v2011_v52, %v633_v53  ;;  %v649_v1 = vunpack.c.l.bf16 %v630_v29  ;;  %v279_v60 = vadd.f32 %v2411_v51, %v270_v54  ;;  %v2117_v54 = vld [vmem:[%s2339_s26 + $0x18] sm:$0xf] }
  0x5b   : > { %v999_v59 = vunpack.c.l.bf16 %v944_v39  ;;  %v280_v61 = vadd.f32 %v2411_v51, %v271_v55  ;;  %v650_v3 = vunpack.c.l.bf16 %v634_v58  ;;  %v958_v62 = vsel %vm2384_vm2, %v953_v57, %v957_v22  ;;  %v2085_v22 = vld [vmem:[%s2339_s26 + $0x10] sm:$0xe] }
  0x5c   : > { %v657_v63 = vmul.f32 %v2395_v40, %v649_v1  ;;  %v771_v7 = vmul.f32 %v2395_v40, %v763_v56  ;;  %v1000_v9 = vunpack.c.l.bf16 %v958_v62  ;;  %v287_v5 = vmax.f32 %v279_v60, 0.0  ;;  %v2140_v39 = vld [vmem:[%s2339_s26 + $0x10] sm:$0xf] }
  0x5d   : > { %v1007_v10 = vmul.f32 %v2395_v40, %v999_v59  ;;  %v288_v12 = vmax.f32 %v280_v61, 0.0  ;;  %v658_v16 = vmul.f32 %v2395_v40, %v650_v3  ;;  %v772_v18 = vmul.f32 %v2395_v40, %v764_v2 }
  0x5e   : > { %v665_v17 = vadd.f32 %v2411_v51, %v657_v63  ;;  %v779_v6 = vadd.f32 %v2411_v51, %v771_v7  ;;  %v1008_v20 = vmul.f32 %v2395_v40, %v1000_v9  ;;  %v960_v26 = vshrl.u32 %v2064_v4, 16 }
  0x5f   : > { %2050 = vmatmul.msk.bf16.gmra.mxu3 %vm481_vm3, %v791_v28  ;;  %v1015_v21 = vadd.f32 %v2411_v51, %v1007_v10  ;;  %v292_v23 = vpack.c.bf16 %v288_v12, %v287_v5  ;;  %v666_v14 = vadd.f32 %v2411_v51, %v658_v16  ;;  %v780_v19 = vadd.f32 %v2411_v51, %v772_v18 }
  0x60   : > { %v673_v27 = vmax.f32 %v665_v17, 0.0  ;;  %v787_v15 = vmax.f32 %v779_v6, 0.0  ;;  %v1016_v28 = vadd.f32 %v2411_v51, %v1008_v20  ;;  %v962_v33 = vrot.slane %v960_v26, 4  ;;  %v2141_v20 = vld [vmem:[%s2339_s26 + $0x14] sm:$0x1] }
  0x61   : > { %v1023_v32 = vmax.f32 %v1015_v21, 0.0  ;;  %v963_v35 = vshll.u32 %v2064_v4, 16  ;;  %v674_v37 = vmax.f32 %v666_v14, 0.0  ;;  %v788_v38 = vmax.f32 %v780_v19, 0.0  ;;  %v2142_v26 = vld [vmem:[%s2339_s26 + $0x18] sm:$0xf] }
  0x62   : > { %v969_v42 = vshll.u32 %v2670_v24, 16  ;;  %v974_v43 = vshrl.u32 %v2066_v13, 16  ;;  %v1024_v45 = vmax.f32 %v1016_v28, 0.0  ;;  %v977_v52 = vshll.u32 %v2066_v13, 16 }
  0x63   : > { %v965_v47 = vrot.slane %v963_v35, 5  ;;  %v983_v53 = vshll.u32 %v2676_v31, 16  ;;  %v678_v55 = vpack.c.bf16 %v674_v37, %v673_v27  ;;  %v792_v29 = vpack.c.bf16 %v788_v38, %v787_v15 }
  0x64   : > { %v971_v48 = vrot.slane %v969_v42, 5  ;;  %v976_v56 = vrot.slane %v974_v43, 4  ;;  %v1029_v57 = vpack.c.bf16 %v1024_v45, %v1023_v32  ;;  %v979_v1 = vrot.slane %v977_v52, 5  ;;  %v2143_v42 = vld [vmem:[%s2339_s26 + $0x1c] sm:$0x1] }
  0x65   : > { %2003 = vmatmul.msk.bf16.gmra.mxu1 %vm481_vm3, %v292_v23  ;;  %v966_v58 = vor.u32 %v965_v47, %v962_v33  ;;  %v985_v59 = vrot.slane %v983_v53, 5  ;;  %v2092_v60 = vrot.slane %v2084_v36, 9  ;;  %v2093_v61 = vrot.slane %v2085_v22, 9 }
  0x66   : > { %v1275_v3 = vunpack.c.l.bf16 %v2116_v44  ;;  %v1276_v62 = vunpack.c.l.bf16 %v2117_v54  ;;  %v980_v2 = vor.u32 %v979_v1, %v976_v56  ;;  %v1394_v7 = vshrl.u32 %v2140_v39, 16  ;;  %v2172_v44 = vld [vmem:[%s2339_s26 + $0x10] sm:$0xe]  ;;  %v2173_v54 = vld [vmem:[%s2339_s26 + $0x18] sm:$0xe] }
  0x67   : > { %v967_v63 = vrot.slane %v966_v58, 4  ;;  %v1397_v4 = vshll.u32 %v2140_v39, 16  ;;  %v1124_v9 = vsel %vm2486_vm6, %v2092_v60, %v1123_v49  ;;  %v1128_v10 = vsel %vm2486_vm6, %v2093_v61, %v1127_v50 }
  0x68   : > { %2082 = vmatmul.msk.bf16.gmra.mxu0 %vm481_vm3, %v1029_v57  ;;  %v1283_v5 = vmul.f32 %v2395_v40, %v1275_v3  ;;  %v1284_v12 = vmul.f32 %v2395_v40, %v1276_v62  ;;  %2027 = vmatmul.msk.bf16.gmra.mxu2 %vm481_vm3, %v678_v55  ;;  %v981_v17 = vrot.slane %v980_v2, 4  ;;  %v1161_v8 = vunpack.c.l.bf16 %v1124_v9  ;;  %v2086_v57 = vld [vmem:[%s2339_s26 + $0x18] sm:$0xe] }
  0x69   : > { %v972_v16 = vsel %vm2384_vm2, %v967_v63, %v971_v48  ;;  %v1162_v18 = vunpack.c.l.bf16 %v1128_v10  ;;  %v1396_v50 = vrot.slane %v1394_v7, 4  ;;  %v1399_v14 = vrot.slane %v1397_v4, 5  ;;  %v2087_v63 = vld [vmem:[%s2339_s26 + $0x20] sm:$0xe] }
  0x6a   : > { %v1001_v6 = vunpack.c.l.bf16 %v972_v16  ;;  %v1291_v49 = vadd.f32 %v2411_v51, %v1283_v5  ;;  %v1292_v25 = vadd.f32 %v2411_v51, %v1284_v12  ;;  %v986_v21 = vsel %vm2384_vm2, %v981_v17, %v985_v59  ;;  %v2118_v17 = vld [vmem:[%s2339_s26 + $0x20] sm:$0xf] }
  0x6b   : > { %v1169_v23 = vmul.f32 %v2395_v40, %v1161_v8  ;;  %v1170_v13 = vmul.f32 %v2395_v40, %v1162_v18  ;;  %v1002_v27 = vunpack.c.l.bf16 %v986_v21  ;;  %v1400_v35 = vor.u32 %v1399_v14, %v1396_v50  ;;  %v2119_v8 = vld [vmem:[%s2339_s26 + $0x28] sm:$0xf] }
  0x6c   : > { %v1009_v19 = vmul.f32 %v2395_v40, %v1001_v6  ;;  %v1299_v15 = vmax.f32 %v1291_v49, 0.0  ;;  %v1300_v28 = vmax.f32 %v1292_v25, 0.0  ;;  %v1403_v36 = vshll.u32 %v2141_v20, 16 }
  0x6d   : > { %v1177_v32 = vadd.f32 %v2411_v51, %v1169_v23  ;;  %v1178_v33 = vadd.f32 %v2411_v51, %v1170_v13  ;;  %v1010_v22 = vmul.f32 %v2395_v40, %v1002_v27  ;;  %v1408_v43 = vshrl.u32 %v2142_v26, 16 }
  0x6e   : > { %v1017_v37 = vadd.f32 %v2411_v51, %v1009_v19  ;;  %v1307_v38 = vpack.c.bf16 %v1300_v28, %v1299_v15  ;;  %v1401_v52 = vrot.slane %v1400_v35, 4  ;;  %v1405_v53 = vrot.slane %v1403_v36, 5  ;;  %v2144_v19 = vld [vmem:[%s2339_s26 + $0x20] sm:$0xf] }
  0x6f   : > { %2051 = vmatmul.msk.bf16.gmra.mxu3 %vm481_vm3, %v792_v29  ;;  %v1185_v45 = vmax.f32 %v1177_v32, 0.0  ;;  %v1186_v47 = vmax.f32 %v1178_v33, 0.0  ;;  %v1018_v55 = vadd.f32 %v2411_v51, %v1010_v22  ;;  %v1410_v56 = vrot.slane %v1408_v43, 4 }
  0x70   : > { %v1025_v48 = vmax.f32 %v1017_v37, 0.0  ;;  %v1411_v39 = vshll.u32 %v2142_v26, 16  ;;  %v1406_v1 = vsel %vm2384_vm2, %v1401_v52, %v1405_v53  ;;  %v1417_v59 = vshll.u32 %v2143_v42, 16  ;;  %v2145_v52 = vld [vmem:[%s2339_s26 + $0x24] sm:$0x1] }
  0x71   : > { %v1193_v58 = vpack.c.bf16 %v1186_v47, %v1185_v45  ;;  %v2180_v29 = vrot.slane %v2172_v44, 9  ;;  %v1026_v60 = vmax.f32 %v1018_v55, 0.0  ;;  %v1513_v3 = vunpack.c.l.bf16 %v1406_v1 }
  0x72   : > { %v1413_v61 = vrot.slane %v1411_v39, 5  ;;  %v1641_v62 = vrot.slane %v2141_v20, 5  ;;  %v1419_v2 = vrot.slane %v1417_v59, 5  ;;  %v2181_v7 = vrot.slane %v2173_v54, 9 }
  0x73   : > { %v1645_v4 = vrot.slane %v2143_v42, 5  ;;  %v2094_v9 = vrot.slane %v2086_v57, 9  ;;  %v1030_v10 = vpack.c.bf16 %v1026_v60, %v1025_v48  ;;  %v1521_v12 = vmul.f32 %v2395_v40, %v1513_v3  ;;  %v2147_v60 = vld [vmem:[%s2339_s26 + $0x2c] sm:$0x1] }
  0x74   : > { %v1414_v5 = vor.u32 %v1413_v61, %v1410_v56  ;;  %v1642_v16 = vsel %vm2486_vm6, %v2180_v29, %v1641_v62  ;;  %v1131_v49 = vrot.slane %v2569_v41, 5  ;;  %v2095_v25 = vrot.slane %v2087_v63, 9 }
  0x75   : > { %2112 = vmatmul.msk.bf16.vlgmr.msra.gmra.mxu1 %vm481_vm3, %v1193_v58  ;;  %v1646_v18 = vsel %vm2486_vm6, %v2181_v7, %v1645_v4  ;;  %v1679_v6 = vunpack.c.l.bf16 %v1642_v16  ;;  %v1529_v50 = vadd.f32 %v2411_v51, %v1521_v12  ;;  %v1135_v23 = vrot.slane %v2575_v46, 5  ;;  %v2146_v58 = vld [vmem:[%s2339_s26 + $0x28] sm:$0xf]  ;;  %v2174_v7 = vld [vmem:[%s2339_s26 + $0x20] sm:$0xe] }
  0x76   : > { %v1415_v20 = vrot.slane %v1414_v5, 4  ;;  %v1680_v21 = vunpack.c.l.bf16 %v1646_v18  ;;  %v1132_v26 = vsel %vm2486_vm6, %v2094_v9, %v1131_v49  ;;  %v1277_v14 = vunpack.c.l.bf16 %v2118_v17  ;;  %v2088_v18 = vld [vmem:[%s2339_s26 + $0x28] sm:$0xe] }
  0x77   : > { %v1687_v13 = vmul.f32 %v2395_v40, %v1679_v6  ;;  %v1278_v27 = vunpack.c.l.bf16 %v2119_v8  ;;  %v1537_v15 = vmax.f32 %v1529_v50, 0.0  ;;  %v1136_v46 = vsel %vm2486_vm6, %v2095_v25, %v1135_v23  ;;  %v2089_v50 = vld [vmem:[%s2339_s26 + $0x30] sm:$0xe] }
  0x78   : > { %2083 = vmatmul.msk.bf16.gmra.mxu0 %vm481_vm3, %v1030_v10  ;;  %v1420_v41 = vsel %vm2384_vm2, %v1415_v20, %v1419_v2  ;;  %v1688_v28 = vmul.f32 %v2395_v40, %v1680_v21  ;;  %2136 = vmatmul.msk.bf16.vlgmr.msra.gmra.mxu2 %vm481_vm3, %v1307_v38  ;;  %v1163_v35 = vunpack.c.l.bf16 %v1132_v26  ;;  %v1164_v36 = vunpack.c.l.bf16 %v1136_v46 }
  0x79   : > { %v1514_v32 = vunpack.c.l.bf16 %v1420_v41  ;;  %v1695_v33 = vadd.f32 %v2411_v51, %v1687_v13  ;;  %v1285_v37 = vmul.f32 %v2395_v40, %v1277_v14  ;;  %v1286_v42 = vmul.f32 %v2395_v40, %v1278_v27 }
  0x7a   : > { %v1696_v22 = vadd.f32 %v2411_v51, %v1688_v28  ;;  %v1422_v43 = vshrl.u32 %v2144_v19, 16  ;;  %v1171_v47 = vmul.f32 %v2395_v40, %v1163_v35  ;;  %v1172_v38 = vmul.f32 %v2395_v40, %v1164_v36  ;;  %v2121_v35 = vld [vmem:[%s2339_s26 + $0x38] sm:$0xf] }
  0x7b   : > { %v1522_v44 = vmul.f32 %v2395_v40, %v1514_v32  ;;  %v1703_v45 = vmax.f32 %v1695_v33, 0.0  ;;  %v1293_v54 = vadd.f32 %v2411_v51, %v1285_v37  ;;  %v1294_v55 = vadd.f32 %v2411_v51, %v1286_v42 }
  0x7c   : > { %v1704_v53 = vmax.f32 %v1696_v22, 0.0  ;;  %v1424_v48 = vrot.slane %v1422_v43, 4  ;;  %v1179_v39 = vadd.f32 %v2411_v51, %v1171_v47  ;;  %v1180_v57 = vadd.f32 %v2411_v51, %v1172_v38 }
  0x7d   : > { %v1530_v56 = vadd.f32 %v2411_v51, %v1522_v44  ;;  %v1425_v1 = vshll.u32 %v2144_v19, 16  ;;  %v1301_v29 = vmax.f32 %v1293_v54, 0.0  ;;  %v1302_v40 = vmax.f32 %v1294_v55, 0.0  ;;  %v2175_v51 = vld [vmem:[%s2339_s26 + $0x28] sm:$0xe] }
  0x7e   : > { %v1711_v59 = vpack.c.bf16 %v1704_v53, %v1703_v45  ;;  %v1431_v61 = vshll.u32 %v2145_v52, 16  ;;  %v1187_v62 = vmax.f32 %v1179_v39, 0.0  ;;  %v1188_v63 = vmax.f32 %v1180_v57, 0.0 }
  0x7f   : > { %v1538_v3 = vmax.f32 %v1530_v56, 0.0  ;;  %v1427_v2 = vrot.slane %v1425_v1, 5  ;;  %v1308_v4 = vpack.c.bf16 %v1302_v40, %v1301_v29  ;;  %v1436_v10 = vshrl.u32 %v2146_v58, 16  ;;  %v2148_v29 = vld [vmem:[%s2339_s26 + $0x30] sm:$0xf] }
  0x80   : > { %v1433_v9 = vrot.slane %v1431_v61, 5  ;;  %v1439_v5 = vshll.u32 %v2146_v58, 16  ;;  %v1194_v16 = vpack.c.bf16 %v1188_v63, %v1187_v62  ;;  %v1445_v8 = vshll.u32 %v2147_v60, 16 }
  0x81   : > { %v1545_v12 = vpack.c.bf16 %v1538_v3, %v1537_v15  ;;  %v1428_v17 = vor.u32 %v1427_v2, %v1424_v48  ;;  %v1438_v6 = vrot.slane %v1436_v10, 4  ;;  %v2182_v25 = vrot.slane %v2174_v7, 9  ;;  %v2120_v15 = vld [vmem:[%s2339_s26 + $0x30] sm:$0xf] }
  0x82   : > { %v1441_v49 = vrot.slane %v1439_v5, 5  ;;  %v1649_v20 = vrot.slane %v2145_v52, 5  ;;  %v1447_v23 = vrot.slane %v1445_v8, 5  ;;  %v2183_v13 = vrot.slane %v2175_v51, 9  ;;  %v2150_v51 = vld [vmem:[%s2339_s26 + $0x38] sm:$0xf] }
  0x83   : > { %2168 = vmatmul.msk.bf16.vlgmr.msra.gmra.mxu3 %vm481_vm3, %v1545_v12  ;;  %v1429_v21 = vrot.slane %v1428_v17, 4  ;;  %v1653_v26 = vrot.slane %v2147_v60, 5  ;;  %v2096_v19 = vrot.slane %v2088_v18, 9  ;;  %v1139_v41 = vrot.slane %v2624_v0, 5  ;;  %v2780_v0 = vld [vmem:[%s2987_s1] ss:$0 sm:$0xff] }
  0x84   : > { %v1442_v14 = vor.u32 %v1441_v49, %v1438_v6  ;;  %v1650_v27 = vsel %vm2486_vm6, %v2182_v25, %v1649_v20  ;;  %v2097_v33 = vrot.slane %v2089_v50, 9  ;;  %v1143_v44 = vrot.slane %v2630_v11, 5  ;;  %v2793_v11 = vld [vmem:[%s2987_s1 + $0x1] ss:$0 sm:$0xff]  ;;  %v2151_v18 = vld [vmem:[%s2339_s26 + $0x3c] sm:$0x1] }
  0x85   : > { %2113 = vmatmul.msk.bf16.gmra.mxu1 %vm481_vm3, %v1194_v16  ;;  %v1434_v28 = vsel %vm2384_vm2, %v1429_v21, %v1433_v9  ;;  %v1654_v46 = vsel %vm2486_vm6, %v2183_v13, %v1653_v26  ;;  %v1681_v32 = vunpack.c.l.bf16 %v1650_v27  ;;  %v1140_v42 = vsel %vm2486_vm6, %v2096_v19, %v1139_v41  ;;  %v2176_v21 = vld [vmem:[%s2339_s26 + $0x30] sm:$0xe]  ;;  %v2177_v27 = vld [vmem:[%s2339_s26 + $0x38] sm:$0xe] }
  0x86   : > { %v1443_v36 = vrot.slane %v1442_v14, 4  ;;  %v1515_v22 = vunpack.c.l.bf16 %v1434_v28  ;;  %v1682_v37 = vunpack.c.l.bf16 %v1654_v46  ;;  %v1165_v45 = vunpack.c.l.bf16 %v1140_v42  ;;  %v2090_v46 = vld [vmem:[%s2339_s26 + $0x38] sm:$0xe] }
  0x87   : > { %v1689_v43 = vmul.f32 %v2780_v0, %v1681_v32  ;;  %v1279_v47 = vunpack.c.l.bf16 %v2120_v15  ;;  %v1280_v54 = vunpack.c.l.bf16 %v2121_v35  ;;  %v1144_v56 = vsel %vm2486_vm6, %v2097_v33, %v1143_v44 }
  0x88   : > { %2200 = vmatmul.msk.bf16.vlgmr.msra.gmra.mxu0 %vm481_vm3, %v1711_v59  ;;  %v1448_v38 = vsel %vm2384_vm2, %v1443_v36, %v1447_v23  ;;  %v1523_v52 = vmul.f32 %v2780_v0, %v1515_v22  ;;  %v1690_v53 = vmul.f32 %v2780_v0, %v1682_v37  ;;  %2137 = vmatmul.msk.bf16.gmra.mxu2 %vm481_vm3, %v1308_v4  ;;  %v1166_v1 = vunpack.c.l.bf16 %v1144_v56  ;;  %v2149_v4 = vld [vmem:[%s2339_s26 + $0x34] sm:$0x1]  ;;  %v2091_v22 = vld [vmem:[%s2339_s26 + $0x40] sm:$0xe] }
  0x89   : > { %v1516_v55 = vunpack.c.l.bf16 %v1448_v38  ;;  %v1697_v48 = vadd.f32 %v2793_v11, %v1689_v43  ;;  %v1173_v39 = vmul.f32 %v2780_v0, %v1165_v45  ;;  %v1287_v59 = vmul.f32 %v2780_v0, %v1279_v47 }
  0x8a   : > { %v1531_v57 = vadd.f32 %v2793_v11, %v1523_v52  ;;  %v1698_v58 = vadd.f32 %v2793_v11, %v1690_v53  ;;  %v1288_v3 = vmul.f32 %v2780_v0, %v1280_v54  ;;  %v1174_v2 = vmul.f32 %v2780_v0, %v1166_v1  ;;  %v2122_v1 = vld [vmem:[%s2339_s26 + $0x40] sm:$0xf] }
  0x8b   : > { %v1524_v40 = vmul.f32 %v2780_v0, %v1516_v55  ;;  %v1705_v60 = vmax.f32 %v1697_v48, 0.0  ;;  %v1181_v61 = vadd.f32 %v2793_v11, %v1173_v39  ;;  %v1295_v7 = vadd.f32 %v2793_v11, %v1287_v59 }
  0x8c   : > { %v1539_v62 = vmax.f32 %v1531_v57, 0.0  ;;  %v1706_v63 = vmax.f32 %v1698_v58, 0.0  ;;  %v1296_v5 = vadd.f32 %v2793_v11, %v1288_v3  ;;  %v1450_v12 = vshrl.u32 %v2148_v29, 16 }
  0x8d   : > { %v1532_v9 = vadd.f32 %v2793_v11, %v1524_v40  ;;  %v1189_v10 = vmax.f32 %v1181_v61, 0.0  ;;  %v1182_v17 = vadd.f32 %v2793_v11, %v1174_v2  ;;  %v1303_v8 = vmax.f32 %v1295_v7, 0.0 }
  0x8e   : > { %v1712_v16 = vpack.c.bf16 %v1706_v63, %v1705_v60  ;;  %v1453_v6 = vshll.u32 %v2148_v29, 16  ;;  %v1304_v25 = vmax.f32 %v1296_v5, 0.0  ;;  %v1452_v20 = vrot.slane %v1450_v12, 4  ;;  %v2123_v60 = vld [vmem:[%s2339_s26 + $0x48] sm:$0xf] }
  0x8f   : > { %v1540_v49 = vmax.f32 %v1532_v9, 0.0  ;;  %v1459_v50 = vshll.u32 %v2149_v4, 16  ;;  %v1190_v23 = vmax.f32 %v1182_v17, 0.0  ;;  %v1464_v26 = vshrl.u32 %v2150_v51, 16 }
  0x90   : > { %v1455_v13 = vrot.slane %v1453_v6, 5  ;;  %v1467_v14 = vshll.u32 %v2150_v51, 16  ;;  %v1309_v41 = vpack.c.bf16 %v1304_v25, %v1303_v8  ;;  %v1473_v28 = vshll.u32 %v2151_v18, 16 }
  0x91   : > { %v1546_v19 = vpack.c.bf16 %v1540_v49, %v1539_v62  ;;  %v1461_v15 = vrot.slane %v1459_v50, 5  ;;  %v1195_v32 = vpack.c.bf16 %v1190_v23, %v1189_v10  ;;  %v1466_v35 = vrot.slane %v1464_v26, 4  ;;  %v2154_v26 = vld [vmem:[%s2339_s26 + $0x48] sm:$0xf] }
  0x92   : > { %v1456_v33 = vor.u32 %v1455_v13, %v1452_v20  ;;  %v1469_v36 = vrot.slane %v1467_v14, 5  ;;  %v1475_v37 = vrot.slane %v1473_v28, 5  ;;  %v2184_v42 = vrot.slane %v2176_v21, 9  ;;  %v2153_v13 = vld [vmem:[%s2339_s26 + $0x44] sm:$0x1] }
  0x93   : > { %2169 = vmatmul.msk.bf16.gmra.mxu3 %vm481_vm3, %v1546_v19  ;;  %v1657_v43 = vrot.slane %v2149_v4, 5  ;;  %v2185_v44 = vrot.slane %v2177_v27, 9  ;;  %v1661_v38 = vrot.slane %v2151_v18, 5  ;;  %v2098_v52 = vrot.slane %v2090_v46, 9  ;;  %v2152_v18 = vld [vmem:[%s2339_s26 + $0x40] sm:$0xf] }
  0x94   : > { %v1457_v45 = vrot.slane %v1456_v33, 4  ;;  %v1470_v47 = vor.u32 %v1469_v36, %v1466_v35  ;;  %v1147_v54 = vrot.slane %v2670_v24, 5  ;;  %v2099_v55 = vrot.slane %v2091_v22, 9  ;;  %v2178_v35 = vld [vmem:[%s2339_s26 + $0x40] sm:$0xe] }
  0x95   : > { %2114 = vmatmul.msk.bf16.gmra.mxu1 %vm481_vm3, %v1195_v32  ;;  %v1658_v53 = vsel %vm2486_vm6, %v2184_v42, %v1657_v43  ;;  %v1151_v48 = vrot.slane %v2676_v31, 5  ;;  %v1662_v57 = vsel %vm2486_vm6, %v2185_v44, %v1661_v38  ;;  %v1281_v4 = vunpack.c.l.bf16 %v2122_v1  ;;  %v2179_v38 = vld [vmem:[%s2339_s26 + $0x48] sm:$0xe] }
  0x96   : > { %v1462_v56 = vsel %vm2384_vm2, %v1457_v45, %v1461_v15  ;;  %v1471_v39 = vrot.slane %v1470_v47, 4  ;;  %v1683_v58 = vunpack.c.l.bf16 %v1658_v53  ;;  %v1684_v29 = vunpack.c.l.bf16 %v1662_v57 }
  0x97   : > { %v1517_v59 = vunpack.c.l.bf16 %v1462_v56  ;;  %v1148_v40 = vsel %vm2486_vm6, %v2098_v52, %v1147_v54  ;;  %v1152_v24 = vsel %vm2486_vm6, %v2099_v55, %v1151_v48  ;;  %v1282_v51 = vunpack.c.l.bf16 %v2123_v60 }
  0x98   : > { %2201 = vmatmul.msk.bf16.gmra.mxu0 %vm481_vm3, %v1712_v16  ;;  %v1476_v31 = vsel %vm2384_vm2, %v1471_v39, %v1475_v37  ;;  %v1691_v61 = vmul.f32 %v2780_v0, %v1683_v58  ;;  %v1167_v3 = vunpack.c.l.bf16 %v1148_v40  ;;  %v1168_v62 = vunpack.c.l.bf16 %v1152_v24  ;;  %2138 = vmatmul.msk.bf16.gmra.mxu2 %vm481_vm3, %v1309_v41  ;;  %v2155_v41 = vld [vmem:[%s2339_s26 + $0x4c] sm:$0x1]  ;;  %s2206_s26 = sshll.u32 %s3000_s15, 5 }
  0x99   : > { %v1518_v63 = vunpack.c.l.bf16 %v1476_v31  ;;  %v1525_v2 = vmul.f32 %v2780_v0, %v1517_v59  ;;  %v1692_v7 = vmul.f32 %v2780_v0, %v1684_v29  ;;  %v1289_v8 = vmul.f32 %v2780_v0, %v1281_v4  ;;  %s2933_s27 = scalar_lea.vmem %s2989_s3, %s2206_s26 }
  0x9a   : > { %v1699_v9 = vadd.f32 %v2793_v11, %v1691_v61  ;;  %v1175_v10 = vmul.f32 %v2780_v0, %v1167_v3  ;;  %v1176_v5 = vmul.f32 %v2780_v0, %v1168_v62  ;;  %v1290_v25 = vmul.f32 %v2780_v0, %v1282_v51 }
  0x9b   : > { %v1526_v12 = vmul.f32 %v2780_v0, %v1518_v63  ;;  %v1533_v16 = vadd.f32 %v2793_v11, %v1525_v2  ;;  %v1700_v17 = vadd.f32 %v2793_v11, %v1692_v7  ;;  %v1297_v23 = vadd.f32 %v2793_v11, %v1289_v8 }
  0x9c   : > { %v1183_v6 = vadd.f32 %v2793_v11, %v1175_v10  ;;  %v1184_v49 = vadd.f32 %v2793_v11, %v1176_v5  ;;  %v1707_v21 = vmax.f32 %v1699_v9, 0.0  ;;  %v1298_v19 = vadd.f32 %v2793_v11, %v1290_v25 }
  0x9d   : > { %v1534_v20 = vadd.f32 %v2793_v11, %v1526_v12  ;;  %v1541_v50 = vmax.f32 %v1533_v16, 0.0  ;;  %v1478_v15 = vshrl.u32 %v2152_v18, 16  ;;  %v1708_v46 = vmax.f32 %v1700_v17, 0.0 }
  0x9e   : > { %v1191_v14 = vmax.f32 %v1183_v6, 0.0  ;;  %v1192_v27 = vmax.f32 %v1184_v49, 0.0  ;;  %v1305_v32 = vmax.f32 %v1297_v23, 0.0  ;;  %v1481_v33 = vshll.u32 %v2152_v18, 16 }
  0x9f   : > { %v1542_v28 = vmax.f32 %v1534_v20, 0.0  ;;  %v1306_v22 = vmax.f32 %v1298_v19, 0.0  ;;  %v1480_v37 = vrot.slane %v1478_v15, 4  ;;  %v1487_v42 = vshll.u32 %v2153_v13, 16 }
  0xa0   : > { %v1196_v36 = vpack.c.bf16 %v1192_v27, %v1191_v14  ;;  %v1483_v44 = vrot.slane %v1481_v33, 5  ;;  %v1492_v45 = vshrl.u32 %v2154_v26, 16  ;;  %v1495_v47 = vshll.u32 %v2154_v26, 16 }
  0xa1   : > { %v1547_v43 = vpack.c.bf16 %v1542_v28, %v1541_v50  ;;  %v1489_v53 = vrot.slane %v1487_v42, 5  ;;  %v1501_v54 = vshll.u32 %v2155_v41, 16  ;;  %v2186_v55 = vrot.slane %v2178_v35, 9 }
  0xa2   : > { %v2860_v52 = vpop.f32.mrf.mxu1  ;;  %v1484_v48 = vor.u32 %v1483_v44, %v1480_v37  ;;  %v1494_v56 = vrot.slane %v1492_v45, 4  ;;  %v1497_v39 = vrot.slane %v1495_v47, 5  ;;  %v1665_v57 = vrot.slane %v2153_v13, 5 }
  0xa3   : > { %2170 = vmatmul.msk.bf16.gmra.mxu3 %vm481_vm3, %v1547_v43  ;;  %v1713_v58 = vpack.c.bf16 %v1708_v46, %v1707_v21  ;;  %v1310_v1 = vpack.c.bf16 %v1306_v22, %v1305_v32  ;;  %v2187_v59 = vrot.slane %v2179_v38, 9  ;;  %v1669_v29 = vrot.slane %v2155_v41, 5 }
  0xa4   : > { %v1485_v40 = vrot.slane %v1484_v48, 4  ;;  %v1498_v24 = vor.u32 %v1497_v39, %v1494_v56  ;;  %v1503_v60 = vrot.slane %v1501_v54, 5  ;;  %v1666_v31 = vsel %vm2486_vm6, %v2186_v55, %v1665_v57 }
  0xa5   : > { %2115 = vmatmul.msk.bf16.gmra.mxu1 %vm481_vm3, %v1196_v36  ;;  %v1670_v61 = vsel %vm2486_vm6, %v2187_v59, %v1669_v29  ;;  %v1685_v3 = vunpack.c.l.bf16 %v1666_v31 }
  0xa6   : > { %v1490_v62 = vsel %vm2384_vm2, %v1485_v40, %v1489_v53  ;;  %v1499_v63 = vrot.slane %v1498_v24, 4  ;;  %v1686_v2 = vunpack.c.l.bf16 %v1670_v61 }
  0xa7   : > { %v1519_v7 = vunpack.c.l.bf16 %v1490_v62  ;;  %v1693_v4 = vmul.f32 %v2780_v0, %v1685_v3 }
  0xa8   : > { %2202 = vmatmul.msk.bf16.gmra.mxu0 %vm481_vm3, %v1713_v58  ;;  %2139 = vmatmul.msk.bf16.gmra.mxu2 %vm481_vm3, %v1310_v1  ;;  %v1504_v9 = vsel %vm2384_vm2, %v1499_v63, %v1503_v60  ;;  %v1694_v10 = vmul.f32 %v2780_v0, %v1686_v2 }
  0xa9   : > { %v1520_v34 = vunpack.c.l.bf16 %v1504_v9  ;;  %v1527_v5 = vmul.f32 %v2780_v0, %v1519_v7  ;;  %v1701_v8 = vadd.f32 %v2793_v11, %v1693_v4 }
  0xaa   : > { %v2877_v51 = vpop.f32.mrf.mxu1  ;;  %v1702_v18 = vadd.f32 %v2793_v11, %v1694_v10 }
  0xab   : > { %v2879_v12 = vpop.f32.mrf.mxu2  ;;  %v1528_v16 = vmul.f32 %v2780_v0, %v1520_v34  ;;  %v1535_v17 = vadd.f32 %v2793_v11, %v1527_v5  ;;  %v1709_v25 = vmax.f32 %v1701_v8, 0.0 }
  0xac   : > { %v1710_v20 = vmax.f32 %v1702_v18, 0.0 }
  0xad   : > { %v1536_v30 = vadd.f32 %v2793_v11, %v1528_v16  ;;  %v1543_v6 = vmax.f32 %v1535_v17, 0.0 }
  0xae   : > { %v1714_v0 = vpack.c.bf16 %v1710_v20, %v1709_v25 }
  0xaf   : > { %v1544_v49 = vmax.f32 %v1536_v30, 0.0 }
  0xb1   : > { %v1548_v50 = vpack.c.bf16 %v1544_v49, %v1543_v6 }
  0xb2   : > { %v2886_v21 = vpop.f32.mrf.mxu3  ;;  %v556_v23 = vpop.f32.mrf.mxu1 }
  0xb3   : > { %v2888_v13 = vpop.f32.mrf.mxu2  ;;  %2171 = vmatmul.msk.bf16.gmra.mxu3 %vm481_vm3, %v1548_v50 }
  0xb5   : > { %v503_v26 = vpop.f32.mrf.mxu0 }
  0xb6   : > { %v557_v40 = vadd.f32 %v556_v23, %v503_v26 }
  0xb8   : > { %2203 = vmatmul.msk.bf16.gmra.mxu0 %vm481_vm3, %v1714_v0 }
  0xba   : > { %v2892_v14 = vpop.f32.mrf.mxu3  ;;  %v558_v27 = vpop.f32.mrf.mxu1 }
  0xbb   : > { %v717_v11 = vpop.f32.mrf.mxu2 }
  0xbc   : > { %v737_v60 = vadd.f32 %v717_v11, %v557_v40 }
  0xbd   : > { %v505_v19 = vpop.f32.mrf.mxu0 }
  0xbe   : > { %v559_v63 = vadd.f32 %v558_v27, %v505_v19 }
  0xc2   : > { %v831_v41 = vpop.f32.mrf.mxu3  ;;  %v561_v15 = vpop.f32.mrf.mxu1 }
  0xc3   : > { %v719_v28 = vpop.f32.mrf.mxu2  ;;  %v851_v61 = vadd.f32 %v831_v41, %v737_v60  ;;  %v562_v17 = vadd.f32 %v561_v15, %v2860_v52 }
  0xc4   : > { %v738_v7 = vadd.f32 %v719_v28, %v559_v63 }
  0xc5   : > { %v1069_v46 = vpop.f32.mrf.mxu0 }
  0xc6   : > { %v1089_v4 = vadd.f32 %v1069_v46, %v851_v61 }
  0xca   : > { %v833_v32 = vpop.f32.mrf.mxu3  ;;  %v563_v33 = vpop.f32.mrf.mxu1 }
  0xcb   : > { %v722_v35 = vpop.f32.mrf.mxu2  ;;  %v852_v10 = vadd.f32 %v833_v32, %v738_v7  ;;  %v564_v52 = vadd.f32 %v563_v33, %v2877_v51 }
  0xcc   : > { %v739_v30 = vadd.f32 %v722_v35, %v562_v17 }
  0xcd   : > { %v1071_v36 = vpop.f32.mrf.mxu0 }
  0xce   : > { %v1090_v49 = vadd.f32 %v1071_v36, %v852_v10 }
  0xd2   : > { %v836_v22 = vpop.f32.mrf.mxu3  ;;  %v2894_v37 = vpop.f32.mrf.mxu1 }
  0xd3   : > { %v724_v42 = vpop.f32.mrf.mxu2  ;;  %v853_v50 = vadd.f32 %v836_v22, %v739_v30  ;;  %v567_v51 = vadd.f32 %v2894_v37, %v2879_v12 }
  0xd4   : > { %v740_v11 = vadd.f32 %v724_v42, %v564_v52 }
  0xd5   : > { %v1074_v43 = vpop.f32.mrf.mxu0 }
  0xd6   : > { %v1091_v28 = vadd.f32 %v1074_v43, %v853_v50 }
  0xda   : > { %v838_v44 = vpop.f32.mrf.mxu3  ;;  %v2896_v45 = vpop.f32.mrf.mxu1 }
  0xdb   : > { %v2898_v47 = vpop.f32.mrf.mxu2  ;;  %v854_v35 = vadd.f32 %v838_v44, %v740_v11 }
  0xdc   : > { %v741_v61 = vadd.f32 %v2898_v47, %v567_v51 }
  0xdd   : > { %v2900_v38 = vpop.f32.mrf.mxu0 }
  0xde   : > { %v1092_v44 = vadd.f32 %v2900_v38, %v854_v35 }
  0xe2   : > { %v2902_v53 = vpop.f32.mrf.mxu3  ;;  %v2904_v54 = vpop.f32.mrf.mxu1 }
  0xe3   : > { %v2906_v55 = vpop.f32.mrf.mxu2 }
  0xe5   : > { %v2908_v48 = vpop.f32.mrf.mxu0 }
  0xea   : > { %v2910_v56 = vpop.f32.mrf.mxu3  ;;  %v2912_v39 = vpop.f32.mrf.mxu1 }
  0xeb   : > { %v2914_v57 = vpop.f32.mrf.mxu2 }
  0xed   : > { %v2916_v58 = vpop.f32.mrf.mxu0 }
  0xf2   : > { %v2918_v1 = vpop.f32.mrf.mxu3  ;;  %v1235_v59 = vpop.f32.mrf.mxu1 }
  0xf3   : > { %v2920_v29 = vpop.f32.mrf.mxu2  ;;  %v1255_v9 = vadd.f32 %v1235_v59, %v1089_v4 }
  0xf5   : > { %v2922_v24 = vpop.f32.mrf.mxu0 }
  0xfa   : > { %v1237_v31 = vpop.f32.mrf.mxu1  ;;  %v2924_v3 = vpop.f32.mrf.mxu3 }
  0xfb   : > { %v1349_v62 = vpop.f32.mrf.mxu2  ;;  %v1256_v20 = vadd.f32 %v1237_v31, %v1090_v49 }
  0xfc   : > { %v1369_v34 = vadd.f32 %v1349_v62, %v1255_v9  ;;  %v855_v9 = vadd.f32 %v2902_v53, %v741_v61 }
  0xfd   : > { %v2926_v2 = vpop.f32.mrf.mxu0 }
  0xfe   : > { %v1093_v30 = vadd.f32 %v2908_v48, %v855_v9 }
 0x102   : > { %v1240_v16 = vpop.f32.mrf.mxu1 }
 0x103   : > { %v1351_v5 = vpop.f32.mrf.mxu2  ;;  %v1257_v32 = vadd.f32 %v1240_v16, %v1091_v28 }
 0x104   : > { %v1370_v0 = vadd.f32 %v1351_v5, %v1256_v20  ;;  %v569_v5 = vadd.f32 %v2896_v45, %v2888_v13 }
 0x105   : > { %v1753_v8 = vpop.f32.mrf.mxu0 }
 0x106   : > { %v1587_v18 = vpop.f32.mrf.mxu3  ;;  %v742_v38 = vadd.f32 %v2906_v55, %v569_v5  ;;  %v572_v55 = vadd.f32 %v2904_v54, %v2886_v21  ;;  %v574_v54 = vadd.f32 %v2912_v39, %v2892_v14 }
 0x107   : > { %v1607_v6 = vadd.f32 %v1587_v18, %v1369_v34 }
 0x108   : > { %v856_v49 = vadd.f32 %v2910_v56, %v742_v38  ;;  %v743_v56 = vadd.f32 %v2914_v57, %v572_v55 }
 0x109   : > { %v1773_v25 = vadd.f32 %v1753_v8, %v1607_v6 }
 0x10a   : > { %v1242_v41 = vpop.f32.mrf.mxu1 }
 0x10b   : > { %v1781_v23 = vpack.c.bf16 %v1773_v25, %v1773_v25  ;;  %v1354_v26 = vpop.f32.mrf.mxu2  ;;  %v1811_v36 = vmul.f32 %v1773_v25, %v1773_v25  ;;  %v1258_v4 = vadd.f32 %v1242_v41, %v1092_v44 }
 0x10c   : > { %v1371_v60 = vadd.f32 %v1354_v26, %v1257_v32  ;;  %v857_v32 = vadd.f32 %v2918_v1, %v743_v56 }
 0x10d   : > { %1790 = vst.msk [vmem:[%s2933_s27] sm:$0xf] %vm1789_vm7, %v1781_v23  ;;  %v1755_v27 = vpop.f32.mrf.mxu0 }
 0x10e   : > { %v1589_v19 = vpop.f32.mrf.mxu3 }
 0x10f   : > { %v1608_v15 = vadd.f32 %v1589_v19, %v1370_v0 }
 0x111   : > { %v1774_v46 = vadd.f32 %v1755_v27, %v1608_v15  ;;  %v1094_v27 = vadd.f32 %v2916_v58, %v856_v49 }
 0x112   : > { %v1245_v63 = vpop.f32.mrf.mxu1 }
 0x113   : > { %v1782_v59 = vpack.c.bf16 %v1774_v46, %v1774_v46  ;;  %v1798_v22 = vadd.f32 %v1774_v46, %v1773_v25  ;;  %v1812_v40 = vmul.f32 %v1774_v46, %v1774_v46  ;;  %v1356_v33 = vpop.f32.mrf.mxu2  ;;  %v1259_v6 = vadd.f32 %v1245_v63, %v1093_v30 }
 0x114   : > { %v1372_v37 = vadd.f32 %v1356_v33, %v1258_v4 }
 0x115   : > { %1791 = vst.msk [vmem:[%s2933_s27 + $0x4] sm:$0xf] %vm1789_vm7, %v1782_v59  ;;  %v1819_v31 = vadd.f32 %v1812_v40, %v1811_v36  ;;  %v1758_v42 = vpop.f32.mrf.mxu0  ;;  %v1095_v40 = vadd.f32 %v2922_v24, %v857_v32 }
 0x116   : > { %v1592_v43 = vpop.f32.mrf.mxu3 }
 0x117   : > { %v1609_v62 = vadd.f32 %v1592_v43, %v1371_v60 }
 0x119   : > { %v1775_v7 = vadd.f32 %v1758_v42, %v1609_v62 }
 0x11a   : > { %v1247_v25 = vpop.f32.mrf.mxu1 }
 0x11b   : > { %v1783_v10 = vpack.c.bf16 %v1775_v7, %v1775_v7  ;;  %v1799_v34 = vadd.f32 %v1798_v22, %v1775_v7  ;;  %v1813_v12 = vmul.f32 %v1775_v7, %v1775_v7  ;;  %v1359_v16 = vpop.f32.mrf.mxu2  ;;  %v1260_v19 = vadd.f32 %v1247_v25, %v1094_v27 }
 0x11c   : > { %v1373_v45 = vadd.f32 %v1359_v16, %v1259_v6  ;;  %v744_v22 = vadd.f32 %v2920_v29, %v574_v54 }
 0x11d   : > { %1792 = vst.msk [vmem:[%s2933_s27 + $0x8] sm:$0xf] %vm1789_vm7, %v1783_v10  ;;  %v1820_v47 = vadd.f32 %v1819_v31, %v1813_v12  ;;  %v1760_v17 = vpop.f32.mrf.mxu0 }
 0x11e   : > { %v1594_v8 = vpop.f32.mrf.mxu3  ;;  %v858_v42 = vadd.f32 %v2924_v3, %v744_v22 }
 0x11f   : > { %v1610_v18 = vadd.f32 %v1594_v8, %v1372_v37 }
 0x120   : > { %v1096_v29 = vadd.f32 %v2926_v2, %v858_v42 }
 0x121   : > { %v1776_v53 = vadd.f32 %v1760_v17, %v1610_v18 }
 0x122   : > { %v1250_v35 = vpop.f32.mrf.mxu1 }
 0x123   : > { %v1784_v20 = vpack.c.bf16 %v1776_v53, %v1776_v53  ;;  %v1800_v50 = vadd.f32 %v1799_v34, %v1776_v53  ;;  %v1814_v13 = vmul.f32 %v1776_v53, %v1776_v53  ;;  %v1361_v52 = vpop.f32.mrf.mxu2  ;;  %v1261_v51 = vadd.f32 %v1250_v35, %v1095_v40 }
 0x124   : > { %v1374_v46 = vadd.f32 %v1361_v52, %v1260_v19 }
 0x125   : > { %1793 = vst.msk [vmem:[%s2933_s27 + $0xc] sm:$0xf] %vm1789_vm7, %v1784_v20  ;;  %v1821_v23 = vadd.f32 %v1820_v47, %v1814_v13  ;;  %v1763_v0 = vpop.f32.mrf.mxu0 }
 0x126   : > { %v1597_v26 = vpop.f32.mrf.mxu3 }
 0x127   : > { %v1611_v48 = vadd.f32 %v1597_v26, %v1373_v45 }
 0x129   : > { %v1777_v11 = vadd.f32 %v1763_v0, %v1611_v48 }
 0x12a   : > { %v1252_v14 = vpop.f32.mrf.mxu1 }
 0x12b   : > { %v1785_v41 = vpack.c.bf16 %v1777_v11, %v1777_v11  ;;  %v1801_v15 = vadd.f32 %v1800_v50, %v1777_v11  ;;  %v1815_v28 = vmul.f32 %v1777_v11, %v1777_v11  ;;  %v1364_v57 = vpop.f32.mrf.mxu2  ;;  %v1262_v7 = vadd.f32 %v1252_v14, %v1096_v29 }
 0x12c   : > { %v1375_v61 = vadd.f32 %v1364_v57, %v1261_v51 }
 0x12d   : > { %1794 = vst.msk [vmem:[%s2933_s27 + $0x10] sm:$0xf] %vm1789_vm7, %v1785_v41  ;;  %v1822_v36 = vadd.f32 %v1821_v23, %v1815_v28  ;;  %v1765_v21 = vpop.f32.mrf.mxu0 }
 0x12e   : > { %v1599_v58 = vpop.f32.mrf.mxu3 }
 0x12f   : > { %v1612_v59 = vadd.f32 %v1599_v58, %v1374_v46 }
 0x131   : > { %v1778_v60 = vadd.f32 %v1765_v21, %v1612_v59 }
 0x133   : > { %v1786_v33 = vpack.c.bf16 %v1778_v60, %v1778_v60  ;;  %v1802_v1 = vadd.f32 %v1801_v15, %v1778_v60  ;;  %v1816_v31 = vmul.f32 %v1778_v60, %v1778_v60  ;;  %v1366_v63 = vpop.f32.mrf.mxu2 }
 0x134   : > { %v1376_v34 = vadd.f32 %v1366_v63, %v1262_v7 }
 0x135   : > { %1795 = vst.msk [vmem:[%s2933_s27 + $0x14] sm:$0xf] %vm1789_vm7, %v1786_v33  ;;  %v1823_v43 = vadd.f32 %v1822_v36, %v1816_v31  ;;  %v1768_v39 = vpop.f32.mrf.mxu0 }
 0x136   : > { %v1602_v62 = vpop.f32.mrf.mxu3 }
 0x137   : > { %v1613_v44 = vadd.f32 %v1602_v62, %v1375_v61 }
 0x139   : > { %v1779_v24 = vadd.f32 %v1768_v39, %v1613_v44 }
 0x13b   : > { %v1787_v4 = vpack.c.bf16 %v1779_v24, %v1779_v24  ;;  %v1803_v9 = vadd.f32 %v1802_v1, %v1779_v24  ;;  %v1817_v10 = vmul.f32 %v1779_v24, %v1779_v24 }
 0x13d   : > { %1796 = vst.msk [vmem:[%s2933_s27 + $0x18] sm:$0xf] %vm1789_vm7, %v1787_v4  ;;  %v1824_v3 = vadd.f32 %v1823_v43, %v1817_v10  ;;  %v1770_v5 = vpop.f32.mrf.mxu0 }
 0x13e   : > { %v1604_v12 = vpop.f32.mrf.mxu3 }
 0x13f   : > { %v1614_v37 = vadd.f32 %v1604_v12, %v1376_v34 }
 0x141   : > { %v1780_v16 = vadd.f32 %v1770_v5, %v1614_v37 }
 0x143   : > { %v1788_v47 = vpack.c.bf16 %v1780_v16, %v1780_v16  ;;  %v1804_v17 = vadd.f32 %v1803_v9, %v1780_v16  ;;  %v1818_v38 = vmul.f32 %v1780_v16, %v1780_v16 }
 0x145   : > { %1797 = vst.msk [vmem:[%s2933_s27 + $0x1c] sm:$0xf] %vm1789_vm7, %v1788_v47  ;;  %v1805_v2 = vrot.slane %v1804_v17, 4  ;;  %v1825_v8 = vadd.f32 %v1824_v3, %v1818_v38 }
 0x147   : > { %v1806_v18 = vadd.f32 %v1805_v2, %v1804_v17  ;;  %v1826_v30 = vrot.slane %v1825_v8, 4 }
 0x149   : > { %v1807_v53 = vrot.slane %v1806_v18, 2  ;;  %v1827_v6 = vadd.f32 %v1826_v30, %v1825_v8 }
 0x14b   : > { %v1808_v49 = vadd.f32 %v1807_v53, %v1806_v18  ;;  %v1828_v25 = vrot.slane %v1827_v6, 2 }
 0x14d   : > { %v1809_v20 = vrot.slane %v1808_v49, 1  ;;  %v1829_v50 = vadd.f32 %v1828_v25, %v1827_v6 }
 0x14f   : > { %v1830_v13 = vrot.slane %v1829_v50, 1  ;;  %v1810_v45 = vadd.f32 %v1809_v20, %v1808_v49 }
 0x151   : > { %v1831_v23 = vadd.f32 %v1830_v13, %v1829_v50 }
 0x153   : > { %v1833_v0 = vsel %vm1832_vm8, %v1810_v45, %v1831_v23 }
 0x154   : > { %1834 = vst [vmem:[%s239_s5] sm:$0x3] %v1833_v0 }
 0x155 PF: > { %s15_s17 = sadd.s32 1, %s2282_s17   ;;  %s2995_s15 = smov %s2278_s16 }
 0x156   : > { %p12_p5 = scmp.ge.s32.totalorder %s15_s17, 4   ;;  %s2996_s16 = smov %s2998_s18 }
 0x158   :  { %14 = sbr.rel (!%p12_p5) target bundleno = 2 (0x2), region = 85 }

</bundles_post_ra>
